<compile_context>
chip_gen: v7x
topology: tpu7x:2x2x1
jax: 0.10.0
libtpu: 0.0.40
codegen_flags: <defaults>
</compile_context>

<pallas_src>
import functools

import jax
import jax.numpy as jnp
from jax.experimental import pallas as pl
from jax.experimental.pallas import tpu as pltpu

LANE = 128  # channel dims padded to the 128-lane width -> lane-dense loads/stores


def _round_up(x, m):
    return ((x + m - 1) // m) * m


def _compute_vmem_limit():
    # Generation-aware scoped-VMEM limit: ~56 MiB usable on v7x (64 MiB physical),
    # up to 100 MiB on v5e/v6e (128 MiB physical); conservative 48 MiB fallback.
    default = 48 * 1024 * 1024
    try:
        cap = int(pltpu.get_tpu_info().vmem_capacity_bytes)
    except Exception:
        return default
    if cap <= 0:
        return default
    return max(32 * 1024 * 1024, min(cap - 8 * 1024 * 1024, 100 * 1024 * 1024))


_VMEM_LIMIT = _compute_vmem_limit()


# ----------------------------------------------------------------------------
# Host-side weight / bias prep (cheap)
# ----------------------------------------------------------------------------
def _prep_conv_weight(w, cin_pad, cout_pad):
    # torch [Cout, Cin, 3, 3] -> [3, 3, cin_pad, cout_pad] bf16 (zero padded).
    cout, cin, _, _ = w.shape
    wt = jnp.transpose(w, (2, 3, 1, 0))
    wt = jnp.pad(wt, ((0, 0), (0, 0), (0, cin_pad - cin), (0, cout_pad - cout)))
    return wt.astype(jnp.bfloat16)


def _prep_conv1_weight(w, cout_pad):
    # torch [Cout, Cin, 3, 3] -> [9*Cin, cout_pad] bf16, rows ordered (ky, kx, cin)
    # to match the host-side patch packing (taps folded into the contraction dim).
    cout, cin, kh, kw = w.shape
    wt = jnp.transpose(w, (2, 3, 1, 0)).reshape(kh * kw * cin, cout)
    wt = jnp.pad(wt, ((0, 0), (0, cout_pad - cout)))
    return wt.astype(jnp.bfloat16)


def _prep_bias(b, cout_pad):
    return jnp.pad(b, (0, cout_pad - b.shape[0])).reshape(1, cout_pad).astype(jnp.float32)


# ----------------------------------------------------------------------------
# Pallas kernels
# ----------------------------------------------------------------------------
def _conv1_kernel(x_ref, w_ref, b_ref, o_ref):
    # x_ref: [1, TR, K] bf16   w_ref: [K, CoutP] bf16   b_ref: [1, CoutP] f32
    # o_ref: [1, TR, CoutP]    (K = 9*Cin: taps folded into the contraction dim)
    acc = jnp.dot(x_ref[0], w_ref[...], preferred_element_type=jnp.float32)
    o_ref[0] = jnp.maximum(acc + b_ref[...], 0.0).astype(o_ref.dtype)


def _conv_s2_kernel(x_ref, w_ref, b_ref, o_ref, *, relu):
    # Stride-2 3x3 conv over space-to-depth parity phases of the padded input.
    # x_ref: [1, 4, Hq, Wq, Cin] bf16   w_ref: [3, 3, Cin, CoutP] bf16
    # b_ref: [1, CoutP] f32             o_ref: [1, Ho*Wo, CoutP]
    _, m, coutp = o_ref.shape
    cin = w_ref.shape[2]
    hq, wq = x_ref.shape[2], x_ref.shape[3]
    ho, wo = hq - 1, wq - 1
    acc = jnp.zeros((m, coutp), jnp.float32)
    for ky in range(3):
        for kx in range(3):
            ph = (ky % 2) * 2 + (kx % 2)
            r0, c0 = ky // 2, kx // 2
            xt = x_ref[0, ph, r0:r0 + ho, c0:c0 + wo, :]        # static ref-slice window
            lhs = xt.reshape(m, cin).astype(jnp.bfloat16)       # fold spatial into M
            acc = acc + jnp.dot(lhs, w_ref[ky, kx],
                                preferred_element_type=jnp.float32)
    acc = acc + b_ref[...]
    if relu:
        acc = jnp.maximum(acc, 0.0)
    o_ref[0] = acc.astype(o_ref.dtype)


def _head_kernel(x_ref, w1_ref, b1_ref, w2_ref, b2_ref, o_ref):
    # Fused classifier head: 3x3 conv (+bias+ReLU) then 1x1 conv; hidden never leaves VMEM.
    # x_ref: [1, Hq+2, Wq+2, C] bf16  w1: [3,3,C,Cmid] bf16  w2: [Cmid, NCP] bf16
    # o_ref: [1, Hq*Wq, NCP]
    _, m, _ = o_ref.shape
    c = w1_ref.shape[2]
    cmid = w1_ref.shape[3]
    hq = x_ref.shape[1] - 2
    wq = x_ref.shape[2] - 2
    acc = jnp.zeros((m, cmid), jnp.float32)
    for ky in range(3):
        for kx in range(3):
            xt = x_ref[0, ky:ky + hq, kx:kx + wq, :]            # static ref-slice window
            lhs = xt.reshape(m, c).astype(jnp.bfloat16)
            acc = acc + jnp.dot(lhs, w1_ref[ky, kx],
                                preferred_element_type=jnp.float32)
    hidden = jnp.maximum(acc + b1_ref[...], 0.0).astype(jnp.bfloat16)
    out = jnp.dot(hidden, w2_ref[...], preferred_element_type=jnp.float32)
    o_ref[0] = (out + b2_ref[...]).astype(o_ref.dtype)


def _bilinear_kernel(x_ref, wh_ref, wwt_ref, o_ref):
    # x: [CB, Hin, Win] bf16   wh: [Hout, Hin] bf16   wwt: [Win, Wout] bf16
    # o: [CB, Hout, Wout] f32
    cb, hin, win = x_ref.shape
    wout = wwt_ref.shape[1]
    # Stage 1 (W interpolation): fold CB*Hin into M -> a single 2D matmul.
    t = jnp.dot(x_ref[...].reshape(cb * hin, win), wwt_ref[...],
                preferred_element_type=jnp.float32)
    t = t.reshape(cb, hin, wout).astype(jnp.bfloat16)
    wh = wh_ref[...]
    # Stage 2 (H interpolation): small unrolled loop of plain 2D dots (no broadcast weights).
    for ci in range(cb):
        o_ref[ci] = jnp.dot(wh, t[ci],
                            preferred_element_type=jnp.float32).astype(o_ref.dtype)


# ----------------------------------------------------------------------------
# Wrappers
# ----------------------------------------------------------------------------
def conv3x3_s2_smallcin_pallas(x, w, b, *, out_dtype=jnp.bfloat16, row_tile=512):
    # First conv: 3x3, stride 2, pad 1, small Cin.  Taps folded into K host-side (K=9*Cin),
    # so the kernel is one row-tiled [TR, K] @ [K, 128] matmul per step.
    batch, h, wdt, cin = x.shape
    assert h % 2 == 0 and wdt % 2 == 0
    ho, wo = h // 2, wdt // 2
    xp = jnp.pad(x, ((0, 0), (1, 1), (1, 1), (0, 0)))
    taps = [xp[:, ky:ky + 2 * ho:2, kx:kx + 2 * wo:2, :]
            for ky in range(3) for kx in range(3)]
    patches = jnp.concatenate(taps, axis=-1).reshape(batch, ho * wo, 9 * cin)
    patches = patches.astype(jnp.bfloat16)
    m = ho * wo
    tr = min(row_tile, _round_up(m, 8))
    mp = _round_up(m, tr)
    if mp != m:
        patches = jnp.pad(patches, ((0, 0), (0, mp - m), (0, 0)))
    k = 9 * cin
    wt = _prep_conv1_weight(w, LANE)                                   # [9*Cin, 128]
    bp = _prep_bias(b, LANE)
    flops = 2 * batch * mp * k * LANE
    bytes_acc = patches.size * 2 + wt.size * 2 + bp.size * 4 + batch * mp * LANE * 2
    out = pl.pallas_call(
        _conv1_kernel,
        out_shape=jax.ShapeDtypeStruct((batch, mp, LANE), out_dtype),
        grid=(batch, mp // tr),
        in_specs=[
            pl.BlockSpec((1, tr, k), lambda i, r: (i, r, 0)),
            pl.BlockSpec((k, LANE), lambda i, r: (0, 0)),
            pl.BlockSpec((1, LANE), lambda i, r: (0, 0)),
        ],
        out_specs=pl.BlockSpec((1, tr, LANE), lambda i, r: (i, r, 0)),
        compiler_params=pltpu.CompilerParams(
            dimension_semantics=("parallel", "parallel"),
            vmem_limit_bytes=_VMEM_LIMIT),
        cost_estimate=pl.CostEstimate(flops=int(flops), transcendentals=0,
                                      bytes_accessed=int(bytes_acc)),
    )(patches, wt, bp)
    return out[:, :m, :].reshape(batch, ho, wo, LANE)


def conv3x3_s2_pallas(x, w, b, *, relu=True, out_dtype=jnp.bfloat16):
    # 3x3 stride-2 pad-1 conv over a lane-dense NHWC activation (Cin = 128).
    batch, h, wdt, cinp = x.shape
    assert h % 2 == 0 and wdt % 2 == 0
    ho, wo = h // 2, wdt // 2
    hq, wq = ho + 1, wo + 1
    xp = jnp.pad(x, ((0, 0), (1, 1), (1, 1), (0, 0)))
    # Space-to-depth parity phases of the padded input: every stride-2 tap becomes a
    # contiguous window of exactly one phase (no strided loads inside the kernel).
    phases = jnp.stack([xp[:, py::2, px::2, :] for py in (0, 1) for px in (0, 1)],
                       axis=1).astype(jnp.bfloat16)                   # [B, 4, Hq, Wq, Cin]
    wt = _prep_conv_weight(w, cinp, LANE)
    bp = _prep_bias(b, LANE)
    m = ho * wo
    kernel = functools.partial(_conv_s2_kernel, relu=relu)
    flops = 2 * batch * m * 9 * cinp * LANE
    bytes_acc = phases.size * 2 + wt.size * 2 + bp.size * 4 + batch * m * LANE * 2
    out = pl.pallas_call(
        kernel,
        out_shape=jax.ShapeDtypeStruct((batch, m, LANE), out_dtype),
        grid=(batch,),
        in_specs=[
            pl.BlockSpec((1, 4, hq, wq, cinp), lambda i: (i, 0, 0, 0, 0)),
            pl.BlockSpec((3, 3, cinp, LANE), lambda i: (0, 0, 0, 0)),
            pl.BlockSpec((1, LANE), lambda i: (0, 0)),
        ],
        out_specs=pl.BlockSpec((1, m, LANE), lambda i: (i, 0, 0)),
        compiler_params=pltpu.CompilerParams(
            dimension_semantics=("parallel",), vmem_limit_bytes=_VMEM_LIMIT),
        cost_estimate=pl.CostEstimate(flops=int(flops), transcendentals=0,
                                      bytes_accessed=int(bytes_acc)),
    )(phases, wt, bp)
    return out.reshape(batch, ho, wo, LANE)


def head_pallas(f, w1, b1, w2, b2, *, out_dtype=jnp.bfloat16):
    # Fused classifier head: 3x3 conv (+bias+ReLU) then 1x1 conv to (padded) num_classes.
    batch, hq, wq, c = f.shape
    fp = jnp.pad(f, ((0, 0), (1, 1), (1, 1), (0, 0))).astype(jnp.bfloat16)
    w1t = _prep_conv_weight(w1, c, LANE)
    b1p = _prep_bias(b1, LANE)
    nc, cmid = w2.shape[0], w2.shape[1]
    w2t = jnp.pad(w2.reshape(nc, cmid).T,
                  ((0, LANE - cmid), (0, LANE - nc))).astype(jnp.bfloat16)   # [128, 128]
    b2p = _prep_bias(b2, LANE)
    m = hq * wq
    flops = 2 * batch * m * (9 * c * LANE + LANE * LANE)
    bytes_acc = fp.size * 2 + w1t.size * 2 + w2t.size * 2 + batch * m * LANE * 2
    out = pl.pallas_call(
        _head_kernel,
        out_shape=jax.ShapeDtypeStruct((batch, m, LANE), out_dtype),
        grid=(batch,),
        in_specs=[
            pl.BlockSpec((1, hq + 2, wq + 2, c), lambda i: (i, 0, 0, 0)),
            pl.BlockSpec((3, 3, c, LANE), lambda i: (0, 0, 0, 0)),
            pl.BlockSpec((1, LANE), lambda i: (0, 0)),
            pl.BlockSpec((LANE, LANE), lambda i: (0, 0)),
            pl.BlockSpec((1, LANE), lambda i: (0, 0)),
        ],
        out_specs=pl.BlockSpec((1, m, LANE), lambda i: (i, 0, 0)),
        compiler_params=pltpu.CompilerParams(
            dimension_semantics=("parallel",), vmem_limit_bytes=_VMEM_LIMIT),
        cost_estimate=pl.CostEstimate(flops=int(flops), transcendentals=0,
                                      bytes_accessed=int(bytes_acc)),
    )(fp, w1t, b1p, w2t, b2p)
    return out.reshape(batch, hq, wq, LANE)


def _bilinear_matrix(in_size, out_size):
    # PyTorch interpolate(mode='bilinear', align_corners=False) source-index rule.
    scale = in_size / out_size
    dst = jnp.arange(out_size, dtype=jnp.float32)
    src = jnp.maximum(scale * (dst + 0.5) - 0.5, 0.0)
    i0 = jnp.minimum(jnp.floor(src).astype(jnp.int32), in_size - 1)
    i1 = jnp.minimum(i0 + 1, in_size - 1)
    l1 = src - i0.astype(jnp.float32)
    l0 = 1.0 - l1
    oh0 = jax.nn.one_hot(i0, in_size, dtype=jnp.float32)
    oh1 = jax.nn.one_hot(i1, in_size, dtype=jnp.float32)
    return oh0 * l0[:, None] + oh1 * l1[:, None]                       # [out_size, in_size]


def bilinear_upsample_pallas(x_nchw, out_h, out_w):
    batch, ch, hin, win = x_nchw.shape
    wh = _bilinear_matrix(hin, out_h).astype(jnp.bfloat16)             # [Hout, Hin]
    wwt = _bilinear_matrix(win, out_w).T.astype(jnp.bfloat16)          # [Win, Wout]
    bc = batch * ch
    # Channel block sized from a conservative VMEM budget (double-buffered in/out blocks).
    per_ch = 2 * out_h * out_w * 4 + 2 * hin * win * 2 + hin * out_w * 4
    cblk = max(1, min(32, (24 * 1024 * 1024) // max(per_ch, 1)))
    cblk = int(min(cblk, _round_up(bc, 8)))
    bcp = _round_up(bc, cblk)
    xf = x_nchw.reshape(bc, hin, win).astype(jnp.bfloat16)
    if bcp != bc:
        xf = jnp.pad(xf, ((0, bcp - bc), (0, 0), (0, 0)))
    flops = 2 * bcp * (hin * win * out_w + out_h * hin * out_w)
    bytes_acc = 2 * (bcp * hin * win + out_h * hin + win * out_w) + 4 * bcp * out_h * out_w
    out = pl.pallas_call(
        _bilinear_kernel,
        out_shape=jax.ShapeDtypeStruct((bcp, out_h, out_w), jnp.float32),
        grid=(bcp // cblk,),
        in_specs=[
            pl.BlockSpec((cblk, hin, win), lambda i: (i, 0, 0)),
            pl.BlockSpec((out_h, hin), lambda i: (0, 0)),
            pl.BlockSpec((win, out_w), lambda i: (0, 0)),
        ],
        out_specs=pl.BlockSpec((cblk, out_h, out_w), lambda i: (i, 0, 0)),
        compiler_params=pltpu.CompilerParams(
            dimension_semantics=("parallel",), vmem_limit_bytes=_VMEM_LIMIT),
        cost_estimate=pl.CostEstimate(flops=int(flops), transcendentals=0,
                                      bytes_accessed=int(bytes_acc)),
    )(xf, wh, wwt)
    return out[:bc].reshape(batch, ch, out_h, out_w)


# ----------------------------------------------------------------------------
# CustomDeepLabV3 forward
# ----------------------------------------------------------------------------
def custom_deeplabv3_forward(x, p):
    # x: [B, Cin, H, W] (NCHW, PyTorch layout).  Returns {'out': [B, num_classes, H, W]} f32.
    _, _, h, w = x.shape
    num_classes = p['cl_w2'].shape[0]
    xh = jnp.transpose(x, (0, 2, 3, 1))                                # NCHW -> NHWC once
    # Backbone stand-in: two stride-2 3x3 convs + ReLU (downsamples H, W by 4).
    f = conv3x3_s2_smallcin_pallas(xh, p['bb_w1'], p['bb_b1'])         # [B, H/2, W/2, 128] bf16
    f = conv3x3_s2_pallas(f, p['bb_w2'], p['bb_b2'], relu=True)        # [B, H/4, W/4, 128] bf16
    # "size after downsampling": (B, C2(+lane pad), H//4, W//4)
    logits = head_pallas(f, p['cl_w1'], p['cl_b1'], p['cl_w2'], p['cl_b2'])
    logits = logits[..., :num_classes]                                 # strip lane padding
    # "size after segmentation head": (B, num_classes, H//4, W//4)
    logits = jnp.transpose(logits, (0, 3, 1, 2))                       # tiny tensor -> NCHW
    out = bilinear_upsample_pallas(logits, h, w)                       # (B, num_classes, H, W)
    # "size after upsampling": (B, num_classes, H, W)
    return {'out': out}


# ----------------------------------------------------------------------------
# Main
# ----------------------------------------------------------------------------
if __name__ == "__main__":
    key = jax.random.PRNGKey(0)
    keys = jax.random.split(key, 9)

    # Small but tile-friendly shapes: H, W multiples of 32 keep H/4, W/4 sublane-aligned.
    B, CIN, H, W = 2, 3, 32, 32
    C1, C2, NUM_CLASSES = 16, 32, 6

    x = jax.random.normal(keys[0], (B, CIN, H, W), dtype=jnp.float32)

    params = {
        # backbone (stand-in for resnet50 feature extractor)
        'bb_w1': 0.1 * jax.random.normal(keys[1], (C1, CIN, 3, 3), dtype=jnp.float32),
        'bb_b1': 0.01 * jax.random.normal(keys[2], (C1,), dtype=jnp.float32),
        'bb_w2': 0.1 * jax.random.normal(keys[3], (C2, C1, 3, 3), dtype=jnp.float32),
        'bb_b2': 0.01 * jax.random.normal(keys[4], (C2,), dtype=jnp.float32),
        # classifier (stand-in for DeepLabV3 head)
        'cl_w1': 0.1 * jax.random.normal(keys[5], (C2, C2, 3, 3), dtype=jnp.float32),
        'cl_b1': 0.01 * jax.random.normal(keys[6], (C2,), dtype=jnp.float32),
        'cl_w2': 0.1 * jax.random.normal(keys[7], (NUM_CLASSES, C2, 1, 1), dtype=jnp.float32),
        'cl_b2': 0.01 * jax.random.normal(keys[8], (NUM_CLASSES,), dtype=jnp.float32),
    }

    fwd = jax.jit(custom_deeplabv3_forward)
    result = fwd(x, params)
    out = jax.block_until_ready(result['out'])

    assert out.shape == (B, NUM_CLASSES, H, W), out.shape
    assert out.dtype == jnp.float32
    assert bool(jnp.all(jnp.isfinite(out)))

    print("KERNEL_OK")
</pallas_src>

<mosaic_0001>
module attributes {stable_mosaic.version = 11 : i64} {
  func.func @_conv1_kernel(%arg0: i32, %arg1: i32, %arg2: memref<1x256x27xbf16, #tpu.memory_space<vmem>>, %arg3: memref<27x128xbf16, #tpu.memory_space<vmem>>, %arg4: memref<1x128xf32, #tpu.memory_space<vmem>>, %arg5: memref<1x256x128xbf16, #tpu.memory_space<vmem>>) attributes {dimension_semantics = [#tpu.dimension_semantics<parallel>, #tpu.dimension_semantics<parallel>], iteration_bounds = array<i64: 2, 1>, scalar_prefetch = 0 : i64, scratch_operands = 0 : i64, tpu.core_type = #tpu.core_type<tc>, window_params = [{transform_indices = @transform_0, window_bounds = array<i64: 1, 256, 27>}, {pipeline_mode = #tpu.pipeline_mode<synchronous>, transform_indices = @transform_1, window_bounds = array<i64: 27, 128>}, {pipeline_mode = #tpu.pipeline_mode<synchronous>, transform_indices = @transform_2, window_bounds = array<i64: 1, 128>}, {transform_indices = @transform_3, window_bounds = array<i64: 1, 256, 128>}]} {
    %c0 = arith.constant 0 : index
    %c0_0 = arith.constant 0 : index
    %c0_1 = arith.constant 0 : index
    %0 = vector.load %arg2[%c0, %c0_0, %c0_1] : memref<1x256x27xbf16, #tpu.memory_space<vmem>>, vector<1x256x27xbf16>
    %1 = vector.shape_cast %0 : vector<1x256x27xbf16> to vector<256x27xbf16>
    %c0_2 = arith.constant 0 : index
    %c0_3 = arith.constant 0 : index
    %2 = vector.load %arg3[%c0_2, %c0_3] : memref<27x128xbf16, #tpu.memory_space<vmem>>, vector<27x128xbf16>
    %cst = arith.constant dense<0.000000e+00> : vector<256x128xf32>
    %3 = tpu.matmul %1, %2, %cst {dimension_numbers = #tpu.dot_dimension_numbers<[1], [0], [0], [1], [0, 0, 1, 1], [], []>} : vector<256x27xbf16>, vector<27x128xbf16>, vector<256x128xf32> -> vector<256x128xf32>
    %c0_4 = arith.constant 0 : index
    %c0_5 = arith.constant 0 : index
    %4 = vector.load %arg4[%c0_4, %c0_5] : memref<1x128xf32, #tpu.memory_space<vmem>>, vector<1x128xf32>
    %5 = vector.broadcast %4 : vector<1x128xf32> to vector<256x128xf32>
    %6 = arith.addf %3, %5 : vector<256x128xf32>
    %cst_6 = arith.constant 0.000000e+00 : f32
    %7 = vector.broadcast %cst_6 : f32 to vector<256x128xf32>
    %8 = arith.maximumf %6, %7 : vector<256x128xf32>
    %9 = arith.truncf %8 : vector<256x128xf32> to vector<256x128xbf16>
    %c0_7 = arith.constant 0 : index
    %c0_8 = arith.constant 0 : index
    %c0_9 = arith.constant 0 : index
    %10 = vector.load %arg5[%c0_7, %c0_8, %c0_9] : memref<1x256x128xbf16, #tpu.memory_space<vmem>>, vector<1x256x128xbf16>
    %11 = vector.shape_cast %10 : vector<1x256x128xbf16> to vector<256x128xbf16>
    %12 = vector.shape_cast %9 : vector<256x128xbf16> to vector<1x256x128xbf16>
    tpu.vector_store %arg5[%c0_7, %c0_8, %c0_9], %12 {strides = array<i32>} : memref<1x256x128xbf16, #tpu.memory_space<vmem>>, vector<1x256x128xbf16>,
    return
  }
  func.func @transform_0(%arg0: i32, %arg1: i32) -> (i32, i32, i32) {
    %c0_i32 = arith.constant 0 : i32
    %c0_i32_0 = arith.constant 0 : i32
    return %arg0, %arg1, %c0_i32 : i32, i32, i32
  }
  func.func @transform_1(%arg0: i32, %arg1: i32) -> (i32, i32) {
    %c0_i32 = arith.constant 0 : i32
    %c0_i32_0 = arith.constant 0 : i32
    %c0_i32_1 = arith.constant 0 : i32
    return %c0_i32, %c0_i32_0 : i32, i32
  }
  func.func @transform_2(%arg0: i32, %arg1: i32) -> (i32, i32) {
    %c0_i32 = arith.constant 0 : i32
    %c0_i32_0 = arith.constant 0 : i32
    %c0_i32_1 = arith.constant 0 : i32
    return %c0_i32, %c0_i32_0 : i32, i32
  }
  func.func @transform_3(%arg0: i32, %arg1: i32) -> (i32, i32, i32) {
    %c0_i32 = arith.constant 0 : i32
    %c0_i32_0 = arith.constant 0 : i32
    return %arg0, %arg1, %c0_i32 : i32, i32, i32
  }
}

module attributes {stable_mosaic.version = 11 : i64} {
  func.func @_conv_s2_kernel(%arg0: i32, %arg1: memref<1x4x9x9x128xbf16, #tpu.memory_space<vmem>>, %arg2: memref<3x3x128x128xbf16, #tpu.memory_space<vmem>>, %arg3: memref<1x128xf32, #tpu.memory_space<vmem>>, %arg4: memref<1x64x128xbf16, #tpu.memory_space<vmem>>) attributes {dimension_semantics = [#tpu.dimension_semantics<parallel>], iteration_bounds = array<i64: 2>, scalar_prefetch = 0 : i64, scratch_operands = 0 : i64, tpu.core_type = #tpu.core_type<tc>, window_params = [{transform_indices = @transform_0, window_bounds = array<i64: 1, 4, 9, 9, 128>}, {pipeline_mode = #tpu.pipeline_mode<synchronous>, transform_indices = @transform_1, window_bounds = array<i64: 3, 3, 128, 128>}, {pipeline_mode = #tpu.pipeline_mode<synchronous>, transform_indices = @transform_2, window_bounds = array<i64: 1, 128>}, {transform_indices = @transform_3, window_bounds = array<i64: 1, 64, 128>}]} {
    %cst = arith.constant 0.000000e+00 : f32
    %0 = vector.broadcast %cst : f32 to vector<64x128xf32>
    %c0 = arith.constant 0 : index
    %c0_0 = arith.constant 0 : index
    %c0_1 = arith.constant 0 : index
    %c0_2 = arith.constant 0 : index
    %c0_3 = arith.constant 0 : index
    %1 = vector.load %arg1[%c0, %c0_0, %c0_1, %c0_2, %c0_3] : memref<1x4x9x9x128xbf16, #tpu.memory_space<vmem>>, vector<1x1x8x8x128xbf16>
    %2 = vector.shape_cast %1 : vector<1x1x8x8x128xbf16> to vector<8x8x128xbf16>
    %3 = vector.shape_cast %2 : vector<8x8x128xbf16> to vector<64x128xbf16>
    %c0_4 = arith.constant 0 : index
    %c0_5 = arith.constant 0 : index
    %c0_6 = arith.constant 0 : index
    %c0_7 = arith.constant 0 : index
    %4 = vector.load %arg2[%c0_4, %c0_5, %c0_6, %c0_7] : memref<3x3x128x128xbf16, #tpu.memory_space<vmem>>, vector<1x1x128x128xbf16>
    %5 = vector.shape_cast %4 : vector<1x1x128x128xbf16> to vector<128x128xbf16>
    %cst_8 = arith.constant dense<0.000000e+00> : vector<64x128xf32>
    %6 = tpu.matmul %3, %5, %cst_8 {dimension_numbers = #tpu.dot_dimension_numbers<[1], [0], [0], [1], [0, 0, 1, 1], [], []>} : vector<64x128xbf16>, vector<128x128xbf16>, vector<64x128xf32> -> vector<64x128xf32>
    %7 = arith.addf %0, %6 : vector<64x128xf32>
    %c0_9 = arith.constant 0 : index
    %c1 = arith.constant 1 : index
    %c0_10 = arith.constant 0 : index
    %c0_11 = arith.constant 0 : index
    %c0_12 = arith.constant 0 : index
    %8 = vector.load %arg1[%c0_9, %c1, %c0_10, %c0_11, %c0_12] : memref<1x4x9x9x128xbf16, #tpu.memory_space<vmem>>, vector<1x1x8x8x128xbf16>
    %9 = vector.shape_cast %8 : vector<1x1x8x8x128xbf16> to vector<8x8x128xbf16>
    %10 = vector.shape_cast %9 : vector<8x8x128xbf16> to vector<64x128xbf16>
    %c0_13 = arith.constant 0 : index
    %c1_14 = arith.constant 1 : index
    %c0_15 = arith.constant 0 : index
    %c0_16 = arith.constant 0 : index
    %11 = vector.load %arg2[%c0_13, %c1_14, %c0_15, %c0_16] : memref<3x3x128x128xbf16, #tpu.memory_space<vmem>>, vector<1x1x128x128xbf16>
    %12 = vector.shape_cast %11 : vector<1x1x128x128xbf16> to vector<128x128xbf16>
    %cst_17 = arith.constant dense<0.000000e+00> : vector<64x128xf32>
    %13 = tpu.matmul %10, %12, %cst_17 {dimension_numbers = #tpu.dot_dimension_numbers<[1], [0], [0], [1], [0, 0, 1, 1], [], []>} : vector<64x128xbf16>, vector<128x128xbf16>, vector<64x128xf32> -> vector<64x128xf32>
    %14 = arith.addf %7, %13 : vector<64x128xf32>
    %c0_18 = arith.constant 0 : index
    %c0_19 = arith.constant 0 : index
    %c0_20 = arith.constant 0 : index
    %c1_21 = arith.constant 1 : index
    %c0_22 = arith.constant 0 : index
    %15 = vector.load %arg1[%c0_18, %c0_19, %c0_20, %c1_21, %c0_22] : memref<1x4x9x9x128xbf16, #tpu.memory_space<vmem>>, vector<1x1x8x8x128xbf16>
    %16 = vector.shape_cast %15 : vector<1x1x8x8x128xbf16> to vector<8x8x128xbf16>
    %17 = vector.shape_cast %16 : vector<8x8x128xbf16> to vector<64x128xbf16>
    %c0_23 = arith.constant 0 : index
    %c2 = arith.constant 2 : index
    %c0_24 = arith.constant 0 : index
    %c0_25 = arith.constant 0 : index
    %18 = vector.load %arg2[%c0_23, %c2, %c0_24, %c0_25] : memref<3x3x128x128xbf16, #tpu.memory_space<vmem>>, vector<1x1x128x128xbf16>
    %19 = vector.shape_cast %18 : vector<1x1x128x128xbf16> to vector<128x128xbf16>
    %cst_26 = arith.constant dense<0.000000e+00> : vector<64x128xf32>
    %20 = tpu.matmul %17, %19, %cst_26 {dimension_numbers = #tpu.dot_dimension_numbers<[1], [0], [0], [1], [0, 0, 1, 1], [], []>} : vector<64x128xbf16>, vector<128x128xbf16>, vector<64x128xf32> -> vector<64x128xf32>
    %21 = arith.addf %14, %20 : vector<64x128xf32>
    %c0_27 = arith.constant 0 : index
    %c2_28 = arith.constant 2 : index
    %c0_29 = arith.constant 0 : index
    %c0_30 = arith.constant 0 : index
    %c0_31 = arith.constant 0 : index
    %22 = vector.load %arg1[%c0_27, %c2_28, %c0_29, %c0_30, %c0_31] : memref<1x4x9x9x128xbf16, #tpu.memory_space<vmem>>, vector<1x1x8x8x128xbf16>
    %23 = vector.shape_cast %22 : vector<1x1x8x8x128xbf16> to vector<8x8x128xbf16>
    %24 = vector.shape_cast %23 : vector<8x8x128xbf16> to vector<64x128xbf16>
    %c1_32 = arith.constant 1 : index
    %c0_33 = arith.constant 0 : index
    %c0_34 = arith.constant 0 : index
    %c0_35 = arith.constant 0 : index
    %25 = vector.load %arg2[%c1_32, %c0_33, %c0_34, %c0_35] : memref<3x3x128x128xbf16, #tpu.memory_space<vmem>>, vector<1x1x128x128xbf16>
    %26 = vector.shape_cast %25 : vector<1x1x128x128xbf16> to vector<128x128xbf16>
    %cst_36 = arith.constant dense<0.000000e+00> : vector<64x128xf32>
    %27 = tpu.matmul %24, %26, %cst_36 {dimension_numbers = #tpu.dot_dimension_numbers<[1], [0], [0], [1], [0, 0, 1, 1], [], []>} : vector<64x128xbf16>, vector<128x128xbf16>, vector<64x128xf32> -> vector<64x128xf32>
    %28 = arith.addf %21, %27 : vector<64x128xf32>
    %c0_37 = arith.constant 0 : index
    %c3 = arith.constant 3 : index
    %c0_38 = arith.constant 0 : index
    %c0_39 = arith.constant 0 : index
    %c0_40 = arith.constant 0 : index
    %29 = vector.load %arg1[%c0_37, %c3, %c0_38, %c0_39, %c0_40] : memref<1x4x9x9x128xbf16, #tpu.memory_space<vmem>>, vector<1x1x8x8x128xbf16>
    %30 = vector.shape_cast %29 : vector<1x1x8x8x128xbf16> to vector<8x8x128xbf16>
    %31 = vector.shape_cast %30 : vector<8x8x128xbf16> to vector<64x128xbf16>
    %c1_41 = arith.constant 1 : index
    %c1_42 = arith.constant 1 : index
    %c0_43 = arith.constant 0 : index
    %c0_44 = arith.constant 0 : index
    %32 = vector.load %arg2[%c1_41, %c1_42, %c0_43, %c0_44] : memref<3x3x128x128xbf16, #tpu.memory_space<vmem>>, vector<1x1x128x128xbf16>
    %33 = vector.shape_cast %32 : vector<1x1x128x128xbf16> to vector<128x128xbf16>
    %cst_45 = arith.constant dense<0.000000e+00> : vector<64x128xf32>
    %34 = tpu.matmul %31, %33, %cst_45 {dimension_numbers = #tpu.dot_dimension_numbers<[1], [0], [0], [1], [0, 0, 1, 1], [], []>} : vector<64x128xbf16>, vector<128x128xbf16>, vector<64x128xf32> -> vector<64x128xf32>
    %35 = arith.addf %28, %34 : vector<64x128xf32>
    %c0_46 = arith.constant 0 : index
    %c2_47 = arith.constant 2 : index
    %c0_48 = arith.constant 0 : index
    %c1_49 = arith.constant 1 : index
    %c0_50 = arith.constant 0 : index
    %36 = vector.load %arg1[%c0_46, %c2_47, %c0_48, %c1_49, %c0_50] : memref<1x4x9x9x128xbf16, #tpu.memory_space<vmem>>, vector<1x1x8x8x128xbf16>
    %37 = vector.shape_cast %36 : vector<1x1x8x8x128xbf16> to vector<8x8x128xbf16>
    %38 = vector.shape_cast %37 : vector<8x8x128xbf16> to vector<64x128xbf16>
    %c1_51 = arith.constant 1 : index
    %c2_52 = arith.constant 2 : index
    %c0_53 = arith.constant 0 : index
    %c0_54 = arith.constant 0 : index
    %39 = vector.load %arg2[%c1_51, %c2_52, %c0_53, %c0_54] : memref<3x3x128x128xbf16, #tpu.memory_space<vmem>>, vector<1x1x128x128xbf16>
    %40 = vector.shape_cast %39 : vector<1x1x128x128xbf16> to vector<128x128xbf16>
    %cst_55 = arith.constant dense<0.000000e+00> : vector<64x128xf32>
    %41 = tpu.matmul %38, %40, %cst_55 {dimension_numbers = #tpu.dot_dimension_numbers<[1], [0], [0], [1], [0, 0, 1, 1], [], []>} : vector<64x128xbf16>, vector<128x128xbf16>, vector<64x128xf32> -> vector<64x128xf32>
    %42 = arith.addf %35, %41 : vector<64x128xf32>
    %c0_56 = arith.constant 0 : index
    %c0_57 = arith.constant 0 : index
    %c1_58 = arith.constant 1 : index
    %c0_59 = arith.constant 0 : index
    %c0_60 = arith.constant 0 : index
    %43 = vector.load %arg1[%c0_56, %c0_57, %c1_58, %c0_59, %c0_60] : memref<1x4x9x9x128xbf16, #tpu.memory_space<vmem>>, vector<1x1x8x8x128xbf16>
    %44 = vector.shape_cast %43 : vector<1x1x8x8x128xbf16> to vector<8x8x128xbf16>
    %45 = vector.shape_cast %44 : vector<8x8x128xbf16> to vector<64x128xbf16>
    %c2_61 = arith.constant 2 : index
    %c0_62 = arith.constant 0 : index
    %c0_63 = arith.constant 0 : index
    %c0_64 = arith.constant 0 : index
    %46 = vector.load %arg2[%c2_61, %c0_62, %c0_63, %c0_64] : memref<3x3x128x128xbf16, #tpu.memory_space<vmem>>, vector<1x1x128x128xbf16>
    %47 = vector.shape_cast %46 : vector<1x1x128x128xbf16> to vector<128x128xbf16>
    %cst_65 = arith.constant dense<0.000000e+00> : vector<64x128xf32>
    %48 = tpu.matmul %45, %47, %cst_65 {dimension_numbers = #tpu.dot_dimension_numbers<[1], [0], [0], [1], [0, 0, 1, 1], [], []>} : vector<64x128xbf16>, vector<128x128xbf16>, vector<64x128xf32> -> vector<64x128xf32>
    %49 = arith.addf %42, %48 : vector<64x128xf32>
    %c0_66 = arith.constant 0 : index
    %c1_67 = arith.constant 1 : index
    %c1_68 = arith.constant 1 : index
    %c0_69 = arith.constant 0 : index
    %c0_70 = arith.constant 0 : index
    %50 = vector.load %arg1[%c0_66, %c1_67, %c1_68, %c0_69, %c0_70] : memref<1x4x9x9x128xbf16, #tpu.memory_space<vmem>>, vector<1x1x8x8x128xbf16>
    %51 = vector.shape_cast %50 : vector<1x1x8x8x128xbf16> to vector<8x8x128xbf16>
    %52 = vector.shape_cast %51 : vector<8x8x128xbf16> to vector<64x128xbf16>
    %c2_71 = arith.constant 2 : index
    %c1_72 = arith.constant 1 : index
    %c0_73 = arith.constant 0 : index
    %c0_74 = arith.constant 0 : index
    %53 = vector.load %arg2[%c2_71, %c1_72, %c0_73, %c0_74] : memref<3x3x128x128xbf16, #tpu.memory_space<vmem>>, vector<1x1x128x128xbf16>
    %54 = vector.shape_cast %53 : vector<1x1x128x128xbf16> to vector<128x128xbf16>
    %cst_75 = arith.constant dense<0.000000e+00> : vector<64x128xf32>
    %55 = tpu.matmul %52, %54, %cst_75 {dimension_numbers = #tpu.dot_dimension_numbers<[1], [0], [0], [1], [0, 0, 1, 1], [], []>} : vector<64x128xbf16>, vector<128x128xbf16>, vector<64x128xf32> -> vector<64x128xf32>
    %56 = arith.addf %49, %55 : vector<64x128xf32>
    %c0_76 = arith.constant 0 : index
    %c0_77 = arith.constant 0 : index
    %c1_78 = arith.constant 1 : index
    %c1_79 = arith.constant 1 : index
    %c0_80 = arith.constant 0 : index
    %57 = vector.load %arg1[%c0_76, %c0_77, %c1_78, %c1_79, %c0_80] : memref<1x4x9x9x128xbf16, #tpu.memory_space<vmem>>, vector<1x1x8x8x128xbf16>
    %58 = vector.shape_cast %57 : vector<1x1x8x8x128xbf16> to vector<8x8x128xbf16>
    %59 = vector.shape_cast %58 : vector<8x8x128xbf16> to vector<64x128xbf16>
    %c2_81 = arith.constant 2 : index
    %c2_82 = arith.constant 2 : index
    %c0_83 = arith.constant 0 : index
    %c0_84 = arith.constant 0 : index
    %60 = vector.load %arg2[%c2_81, %c2_82, %c0_83, %c0_84] : memref<3x3x128x128xbf16, #tpu.memory_space<vmem>>, vector<1x1x128x128xbf16>
    %61 = vector.shape_cast %60 : vector<1x1x128x128xbf16> to vector<128x128xbf16>
    %cst_85 = arith.constant dense<0.000000e+00> : vector<64x128xf32>
    %62 = tpu.matmul %59, %61, %cst_85 {dimension_numbers = #tpu.dot_dimension_numbers<[1], [0], [0], [1], [0, 0, 1, 1], [], []>} : vector<64x128xbf16>, vector<128x128xbf16>, vector<64x128xf32> -> vector<64x128xf32>
    %63 = arith.addf %56, %62 : vector<64x128xf32>
    %c0_86 = arith.constant 0 : index
    %c0_87 = arith.constant 0 : index
    %64 = vector.load %arg3[%c0_86, %c0_87] : memref<1x128xf32, #tpu.memory_space<vmem>>, vector<1x128xf32>
    %65 = vector.broadcast %64 : vector<1x128xf32> to vector<64x128xf32>
    %66 = arith.addf %63, %65 : vector<64x128xf32>
    %cst_88 = arith.constant 0.000000e+00 : f32
    %67 = vector.broadcast %cst_88 : f32 to vector<64x128xf32>
    %68 = arith.maximumf %66, %67 : vector<64x128xf32>
    %69 = arith.truncf %68 : vector<64x128xf32> to vector<64x128xbf16>
    %c0_89 = arith.constant 0 : index
    %c0_90 = arith.constant 0 : index
    %c0_91 = arith.constant 0 : index
    %70 = vector.load %arg4[%c0_89, %c0_90, %c0_91] : memref<1x64x128xbf16, #tpu.memory_space<vmem>>, vector<1x64x128xbf16>
    %71 = vector.shape_cast %70 : vector<1x64x128xbf16> to vector<64x128xbf16>
    %72 = vector.shape_cast %69 : vector<64x128xbf16> to vector<1x64x128xbf16>
    tpu.vector_store %arg4[%c0_89, %c0_90, %c0_91], %72 {strides = array<i32>} : memref<1x64x128xbf16, #tpu.memory_space<vmem>>, vector<1x64x128xbf16>,
    return
  }
  func.func @transform_0(%arg0: i32) -> (i32, i32, i32, i32, i32) {
    %c0_i32 = arith.constant 0 : i32
    %c0_i32_0 = arith.constant 0 : i32
    %c0_i32_1 = arith.constant 0 : i32
    %c0_i32_2 = arith.constant 0 : i32
    %c0_i32_3 = arith.constant 0 : i32
    return %arg0, %c0_i32, %c0_i32_0, %c0_i32_1, %c0_i32_2 : i32, i32, i32, i32, i32
  }
  func.func @transform_1(%arg0: i32) -> (i32, i32, i32, i32) {
    %c0_i32 = arith.constant 0 : i32
    %c0_i32_0 = arith.constant 0 : i32
    %c0_i32_1 = arith.constant 0 : i32
    %c0_i32_2 = arith.constant 0 : i32
    %c0_i32_3 = arith.constant 0 : i32
    return %c0_i32, %c0_i32_0, %c0_i32_1, %c0_i32_2 : i32, i32, i32, i32
  }
  func.func @transform_2(%arg0: i32) -> (i32, i32) {
    %c0_i32 = arith.constant 0 : i32
    %c0_i32_0 = arith.constant 0 : i32
    %c0_i32_1 = arith.constant 0 : i32
    return %c0_i32, %c0_i32_0 : i32, i32
  }
  func.func @transform_3(%arg0: i32) -> (i32, i32, i32) {
    %c0_i32 = arith.constant 0 : i32
    %c0_i32_0 = arith.constant 0 : i32
    %c0_i32_1 = arith.constant 0 : i32
    return %arg0, %c0_i32, %c0_i32_0 : i32, i32, i32
  }
}

module attributes {stable_mosaic.version = 11 : i64} {
  func.func @_head_kernel(%arg0: i32, %arg1: memref<1x10x10x128xbf16, #tpu.memory_space<vmem>>, %arg2: memref<3x3x128x128xbf16, #tpu.memory_space<vmem>>, %arg3: memref<1x128xf32, #tpu.memory_space<vmem>>, %arg4: memref<128x128xbf16, #tpu.memory_space<vmem>>, %arg5: memref<1x128xf32, #tpu.memory_space<vmem>>, %arg6: memref<1x64x128xbf16, #tpu.memory_space<vmem>>) attributes {dimension_semantics = [#tpu.dimension_semantics<parallel>], iteration_bounds = array<i64: 2>, scalar_prefetch = 0 : i64, scratch_operands = 0 : i64, tpu.core_type = #tpu.core_type<tc>, window_params = [{transform_indices = @transform_0, window_bounds = array<i64: 1, 10, 10, 128>}, {pipeline_mode = #tpu.pipeline_mode<synchronous>, transform_indices = @transform_1, window_bounds = array<i64: 3, 3, 128, 128>}, {pipeline_mode = #tpu.pipeline_mode<synchronous>, transform_indices = @transform_2, window_bounds = array<i64: 1, 128>}, {pipeline_mode = #tpu.pipeline_mode<synchronous>, transform_indices = @transform_3, window_bounds = array<i64: 128, 128>}, {pipeline_mode = #tpu.pipeline_mode<synchronous>, transform_indices = @transform_4, window_bounds = array<i64: 1, 128>}, {transform_indices = @transform_5, window_bounds = array<i64: 1, 64, 128>}]} {
    %cst = arith.constant 0.000000e+00 : f32
    %0 = vector.broadcast %cst : f32 to vector<64x128xf32>
    %c0 = arith.constant 0 : index
    %c0_0 = arith.constant 0 : index
    %c0_1 = arith.constant 0 : index
    %c0_2 = arith.constant 0 : index
    %1 = vector.load %arg1[%c0, %c0_0, %c0_1, %c0_2] : memref<1x10x10x128xbf16, #tpu.memory_space<vmem>>, vector<1x8x8x128xbf16>
    %2 = vector.shape_cast %1 : vector<1x8x8x128xbf16> to vector<8x8x128xbf16>
    %3 = vector.shape_cast %2 : vector<8x8x128xbf16> to vector<64x128xbf16>
    %c0_3 = arith.constant 0 : index
    %c0_4 = arith.constant 0 : index
    %c0_5 = arith.constant 0 : index
    %c0_6 = arith.constant 0 : index
    %4 = vector.load %arg2[%c0_3, %c0_4, %c0_5, %c0_6] : memref<3x3x128x128xbf16, #tpu.memory_space<vmem>>, vector<1x1x128x128xbf16>
    %5 = vector.shape_cast %4 : vector<1x1x128x128xbf16> to vector<128x128xbf16>
    %cst_7 = arith.constant dense<0.000000e+00> : vector<64x128xf32>
    %6 = tpu.matmul %3, %5, %cst_7 {dimension_numbers = #tpu.dot_dimension_numbers<[1], [0], [0], [1], [0, 0, 1, 1], [], []>} : vector<64x128xbf16>, vector<128x128xbf16>, vector<64x128xf32> -> vector<64x128xf32>
    %7 = arith.addf %0, %6 : vector<64x128xf32>
    %c0_8 = arith.constant 0 : index
    %c0_9 = arith.constant 0 : index
    %c1 = arith.constant 1 : index
    %c0_10 = arith.constant 0 : index
    %8 = vector.load %arg1[%c0_8, %c0_9, %c1, %c0_10] : memref<1x10x10x128xbf16, #tpu.memory_space<vmem>>, vector<1x8x8x128xbf16>
    %9 = vector.shape_cast %8 : vector<1x8x8x128xbf16> to vector<8x8x128xbf16>
    %10 = vector.shape_cast %9 : vector<8x8x128xbf16> to vector<64x128xbf16>
    %c0_11 = arith.constant 0 : index
    %c1_12 = arith.constant 1 : index
    %c0_13 = arith.constant 0 : index
    %c0_14 = arith.constant 0 : index
    %11 = vector.load %arg2[%c0_11, %c1_12, %c0_13, %c0_14] : memref<3x3x128x128xbf16, #tpu.memory_space<vmem>>, vector<1x1x128x128xbf16>
    %12 = vector.shape_cast %11 : vector<1x1x128x128xbf16> to vector<128x128xbf16>
    %cst_15 = arith.constant dense<0.000000e+00> : vector<64x128xf32>
    %13 = tpu.matmul %10, %12, %cst_15 {dimension_numbers = #tpu.dot_dimension_numbers<[1], [0], [0], [1], [0, 0, 1, 1], [], []>} : vector<64x128xbf16>, vector<128x128xbf16>, vector<64x128xf32> -> vector<64x128xf32>
    %14 = arith.addf %7, %13 : vector<64x128xf32>
    %c0_16 = arith.constant 0 : index
    %c0_17 = arith.constant 0 : index
    %c2 = arith.constant 2 : index
    %c0_18 = arith.constant 0 : index
    %15 = vector.load %arg1[%c0_16, %c0_17, %c2, %c0_18] : memref<1x10x10x128xbf16, #tpu.memory_space<vmem>>, vector<1x8x8x128xbf16>
    %16 = vector.shape_cast %15 : vector<1x8x8x128xbf16> to vector<8x8x128xbf16>
    %17 = vector.shape_cast %16 : vector<8x8x128xbf16> to vector<64x128xbf16>
    %c0_19 = arith.constant 0 : index
    %c2_20 = arith.constant 2 : index
    %c0_21 = arith.constant 0 : index
    %c0_22 = arith.constant 0 : index
    %18 = vector.load %arg2[%c0_19, %c2_20, %c0_21, %c0_22] : memref<3x3x128x128xbf16, #tpu.memory_space<vmem>>, vector<1x1x128x128xbf16>
    %19 = vector.shape_cast %18 : vector<1x1x128x128xbf16> to vector<128x128xbf16>
    %cst_23 = arith.constant dense<0.000000e+00> : vector<64x128xf32>
    %20 = tpu.matmul %17, %19, %cst_23 {dimension_numbers = #tpu.dot_dimension_numbers<[1], [0], [0], [1], [0, 0, 1, 1], [], []>} : vector<64x128xbf16>, vector<128x128xbf16>, vector<64x128xf32> -> vector<64x128xf32>
    %21 = arith.addf %14, %20 : vector<64x128xf32>
    %c0_24 = arith.constant 0 : index
    %c1_25 = arith.constant 1 : index
    %c0_26 = arith.constant 0 : index
    %c0_27 = arith.constant 0 : index
    %22 = vector.load %arg1[%c0_24, %c1_25, %c0_26, %c0_27] : memref<1x10x10x128xbf16, #tpu.memory_space<vmem>>, vector<1x8x8x128xbf16>
    %23 = vector.shape_cast %22 : vector<1x8x8x128xbf16> to vector<8x8x128xbf16>
    %24 = vector.shape_cast %23 : vector<8x8x128xbf16> to vector<64x128xbf16>
    %c1_28 = arith.constant 1 : index
    %c0_29 = arith.constant 0 : index
    %c0_30 = arith.constant 0 : index
    %c0_31 = arith.constant 0 : index
    %25 = vector.load %arg2[%c1_28, %c0_29, %c0_30, %c0_31] : memref<3x3x128x128xbf16, #tpu.memory_space<vmem>>, vector<1x1x128x128xbf16>
    %26 = vector.shape_cast %25 : vector<1x1x128x128xbf16> to vector<128x128xbf16>
    %cst_32 = arith.constant dense<0.000000e+00> : vector<64x128xf32>
    %27 = tpu.matmul %24, %26, %cst_32 {dimension_numbers = #tpu.dot_dimension_numbers<[1], [0], [0], [1], [0, 0, 1, 1], [], []>} : vector<64x128xbf16>, vector<128x128xbf16>, vector<64x128xf32> -> vector<64x128xf32>
    %28 = arith.addf %21, %27 : vector<64x128xf32>
    %c0_33 = arith.constant 0 : index
    %c1_34 = arith.constant 1 : index
    %c1_35 = arith.constant 1 : index
    %c0_36 = arith.constant 0 : index
    %29 = vector.load %arg1[%c0_33, %c1_34, %c1_35, %c0_36] : memref<1x10x10x128xbf16, #tpu.memory_space<vmem>>, vector<1x8x8x128xbf16>
    %30 = vector.shape_cast %29 : vector<1x8x8x128xbf16> to vector<8x8x128xbf16>
    %31 = vector.shape_cast %30 : vector<8x8x128xbf16> to vector<64x128xbf16>
    %c1_37 = arith.constant 1 : index
    %c1_38 = arith.constant 1 : index
    %c0_39 = arith.constant 0 : index
    %c0_40 = arith.constant 0 : index
    %32 = vector.load %arg2[%c1_37, %c1_38, %c0_39, %c0_40] : memref<3x3x128x128xbf16, #tpu.memory_space<vmem>>, vector<1x1x128x128xbf16>
    %33 = vector.shape_cast %32 : vector<1x1x128x128xbf16> to vector<128x128xbf16>
    %cst_41 = arith.constant dense<0.000000e+00> : vector<64x128xf32>
    %34 = tpu.matmul %31, %33, %cst_41 {dimension_numbers = #tpu.dot_dimension_numbers<[1], [0], [0], [1], [0, 0, 1, 1], [], []>} : vector<64x128xbf16>, vector<128x128xbf16>, vector<64x128xf32> -> vector<64x128xf32>
    %35 = arith.addf %28, %34 : vector<64x128xf32>
    %c0_42 = arith.constant 0 : index
    %c1_43 = arith.constant 1 : index
    %c2_44 = arith.constant 2 : index
    %c0_45 = arith.constant 0 : index
    %36 = vector.load %arg1[%c0_42, %c1_43, %c2_44, %c0_45] : memref<1x10x10x128xbf16, #tpu.memory_space<vmem>>, vector<1x8x8x128xbf16>
    %37 = vector.shape_cast %36 : vector<1x8x8x128xbf16> to vector<8x8x128xbf16>
    %38 = vector.shape_cast %37 : vector<8x8x128xbf16> to vector<64x128xbf16>
    %c1_46 = arith.constant 1 : index
    %c2_47 = arith.constant 2 : index
    %c0_48 = arith.constant 0 : index
    %c0_49 = arith.constant 0 : index
    %39 = vector.load %arg2[%c1_46, %c2_47, %c0_48, %c0_49] : memref<3x3x128x128xbf16, #tpu.memory_space<vmem>>, vector<1x1x128x128xbf16>
    %40 = vector.shape_cast %39 : vector<1x1x128x128xbf16> to vector<128x128xbf16>
    %cst_50 = arith.constant dense<0.000000e+00> : vector<64x128xf32>
    %41 = tpu.matmul %38, %40, %cst_50 {dimension_numbers = #tpu.dot_dimension_numbers<[1], [0], [0], [1], [0, 0, 1, 1], [], []>} : vector<64x128xbf16>, vector<128x128xbf16>, vector<64x128xf32> -> vector<64x128xf32>
    %42 = arith.addf %35, %41 : vector<64x128xf32>
    %c0_51 = arith.constant 0 : index
    %c2_52 = arith.constant 2 : index
    %c0_53 = arith.constant 0 : index
    %c0_54 = arith.constant 0 : index
    %43 = vector.load %arg1[%c0_51, %c2_52, %c0_53, %c0_54] : memref<1x10x10x128xbf16, #tpu.memory_space<vmem>>, vector<1x8x8x128xbf16>
    %44 = vector.shape_cast %43 : vector<1x8x8x128xbf16> to vector<8x8x128xbf16>
    %45 = vector.shape_cast %44 : vector<8x8x128xbf16> to vector<64x128xbf16>
    %c2_55 = arith.constant 2 : index
    %c0_56 = arith.constant 0 : index
    %c0_57 = arith.constant 0 : index
    %c0_58 = arith.constant 0 : index
    %46 = vector.load %arg2[%c2_55, %c0_56, %c0_57, %c0_58] : memref<3x3x128x128xbf16, #tpu.memory_space<vmem>>, vector<1x1x128x128xbf16>
    %47 = vector.shape_cast %46 : vector<1x1x128x128xbf16> to vector<128x128xbf16>
    %cst_59 = arith.constant dense<0.000000e+00> : vector<64x128xf32>
    %48 = tpu.matmul %45, %47, %cst_59 {dimension_numbers = #tpu.dot_dimension_numbers<[1], [0], [0], [1], [0, 0, 1, 1], [], []>} : vector<64x128xbf16>, vector<128x128xbf16>, vector<64x128xf32> -> vector<64x128xf32>
    %49 = arith.addf %42, %48 : vector<64x128xf32>
    %c0_60 = arith.constant 0 : index
    %c2_61 = arith.constant 2 : index
    %c1_62 = arith.constant 1 : index
    %c0_63 = arith.constant 0 : index
    %50 = vector.load %arg1[%c0_60, %c2_61, %c1_62, %c0_63] : memref<1x10x10x128xbf16, #tpu.memory_space<vmem>>, vector<1x8x8x128xbf16>
    %51 = vector.shape_cast %50 : vector<1x8x8x128xbf16> to vector<8x8x128xbf16>
    %52 = vector.shape_cast %51 : vector<8x8x128xbf16> to vector<64x128xbf16>
    %c2_64 = arith.constant 2 : index
    %c1_65 = arith.constant 1 : index
    %c0_66 = arith.constant 0 : index
    %c0_67 = arith.constant 0 : index
    %53 = vector.load %arg2[%c2_64, %c1_65, %c0_66, %c0_67] : memref<3x3x128x128xbf16, #tpu.memory_space<vmem>>, vector<1x1x128x128xbf16>
    %54 = vector.shape_cast %53 : vector<1x1x128x128xbf16> to vector<128x128xbf16>
    %cst_68 = arith.constant dense<0.000000e+00> : vector<64x128xf32>
    %55 = tpu.matmul %52, %54, %cst_68 {dimension_numbers = #tpu.dot_dimension_numbers<[1], [0], [0], [1], [0, 0, 1, 1], [], []>} : vector<64x128xbf16>, vector<128x128xbf16>, vector<64x128xf32> -> vector<64x128xf32>
    %56 = arith.addf %49, %55 : vector<64x128xf32>
    %c0_69 = arith.constant 0 : index
    %c2_70 = arith.constant 2 : index
    %c2_71 = arith.constant 2 : index
    %c0_72 = arith.constant 0 : index
    %57 = vector.load %arg1[%c0_69, %c2_70, %c2_71, %c0_72] : memref<1x10x10x128xbf16, #tpu.memory_space<vmem>>, vector<1x8x8x128xbf16>
    %58 = vector.shape_cast %57 : vector<1x8x8x128xbf16> to vector<8x8x128xbf16>
    %59 = vector.shape_cast %58 : vector<8x8x128xbf16> to vector<64x128xbf16>
    %c2_73 = arith.constant 2 : index
    %c2_74 = arith.constant 2 : index
    %c0_75 = arith.constant 0 : index
    %c0_76 = arith.constant 0 : index
    %60 = vector.load %arg2[%c2_73, %c2_74, %c0_75, %c0_76] : memref<3x3x128x128xbf16, #tpu.memory_space<vmem>>, vector<1x1x128x128xbf16>
    %61 = vector.shape_cast %60 : vector<1x1x128x128xbf16> to vector<128x128xbf16>
    %cst_77 = arith.constant dense<0.000000e+00> : vector<64x128xf32>
    %62 = tpu.matmul %59, %61, %cst_77 {dimension_numbers = #tpu.dot_dimension_numbers<[1], [0], [0], [1], [0, 0, 1, 1], [], []>} : vector<64x128xbf16>, vector<128x128xbf16>, vector<64x128xf32> -> vector<64x128xf32>
    %63 = arith.addf %56, %62 : vector<64x128xf32>
    %c0_78 = arith.constant 0 : index
    %c0_79 = arith.constant 0 : index
    %64 = vector.load %arg3[%c0_78, %c0_79] : memref<1x128xf32, #tpu.memory_space<vmem>>, vector<1x128xf32>
    %65 = vector.broadcast %64 : vector<1x128xf32> to vector<64x128xf32>
    %66 = arith.addf %63, %65 : vector<64x128xf32>
    %cst_80 = arith.constant 0.000000e+00 : f32
    %67 = vector.broadcast %cst_80 : f32 to vector<64x128xf32>
    %68 = arith.maximumf %66, %67 : vector<64x128xf32>
    %69 = arith.truncf %68 : vector<64x128xf32> to vector<64x128xbf16>
    %c0_81 = arith.constant 0 : index
    %c0_82 = arith.constant 0 : index
    %70 = vector.load %arg4[%c0_81, %c0_82] : memref<128x128xbf16, #tpu.memory_space<vmem>>, vector<128x128xbf16>
    %cst_83 = arith.constant dense<0.000000e+00> : vector<64x128xf32>
    %71 = tpu.matmul %69, %70, %cst_83 {dimension_numbers = #tpu.dot_dimension_numbers<[1], [0], [0], [1], [0, 0, 1, 1], [], []>} : vector<64x128xbf16>, vector<128x128xbf16>, vector<64x128xf32> -> vector<64x128xf32>
    %c0_84 = arith.constant 0 : index
    %c0_85 = arith.constant 0 : index
    %72 = vector.load %arg5[%c0_84, %c0_85] : memref<1x128xf32, #tpu.memory_space<vmem>>, vector<1x128xf32>
    %73 = vector.broadcast %72 : vector<1x128xf32> to vector<64x128xf32>
    %74 = arith.addf %71, %73 : vector<64x128xf32>
    %75 = arith.truncf %74 : vector<64x128xf32> to vector<64x128xbf16>
    %c0_86 = arith.constant 0 : index
    %c0_87 = arith.constant 0 : index
    %c0_88 = arith.constant 0 : index
    %76 = vector.load %arg6[%c0_86, %c0_87, %c0_88] : memref<1x64x128xbf16, #tpu.memory_space<vmem>>, vector<1x64x128xbf16>
    %77 = vector.shape_cast %76 : vector<1x64x128xbf16> to vector<64x128xbf16>
    %78 = vector.shape_cast %75 : vector<64x128xbf16> to vector<1x64x128xbf16>
    tpu.vector_store %arg6[%c0_86, %c0_87, %c0_88], %78 {strides = array<i32>} : memref<1x64x128xbf16, #tpu.memory_space<vmem>>, vector<1x64x128xbf16>,
    return
  }
  func.func @transform_0(%arg0: i32) -> (i32, i32, i32, i32) {
    %c0_i32 = arith.constant 0 : i32
    %c0_i32_0 = arith.constant 0 : i32
    %c0_i32_1 = arith.constant 0 : i32
    %c0_i32_2 = arith.constant 0 : i32
    return %arg0, %c0_i32, %c0_i32_0, %c0_i32_1 : i32, i32, i32, i32
  }
  func.func @transform_1(%arg0: i32) -> (i32, i32, i32, i32) {
    %c0_i32 = arith.constant 0 : i32
    %c0_i32_0 = arith.constant 0 : i32
    %c0_i32_1 = arith.constant 0 : i32
    %c0_i32_2 = arith.constant 0 : i32
    %c0_i32_3 = arith.constant 0 : i32
    return %c0_i32, %c0_i32_0, %c0_i32_1, %c0_i32_2 : i32, i32, i32, i32
  }
  func.func @transform_2(%arg0: i32) -> (i32, i32) {
    %c0_i32 = arith.constant 0 : i32
    %c0_i32_0 = arith.constant 0 : i32
    %c0_i32_1 = arith.constant 0 : i32
    return %c0_i32, %c0_i32_0 : i32, i32
  }
  func.func @transform_3(%arg0: i32) -> (i32, i32) {
    %c0_i32 = arith.constant 0 : i32
    %c0_i32_0 = arith.constant 0 : i32
    %c0_i32_1 = arith.constant 0 : i32
    return %c0_i32, %c0_i32_0 : i32, i32
  }
  func.func @transform_4(%arg0: i32) -> (i32, i32) {
    %c0_i32 = arith.constant 0 : i32
    %c0_i32_0 = arith.constant 0 : i32
    %c0_i32_1 = arith.constant 0 : i32
    return %c0_i32, %c0_i32_0 : i32, i32
  }
  func.func @transform_5(%arg0: i32) -> (i32, i32, i32) {
    %c0_i32 = arith.constant 0 : i32
    %c0_i32_0 = arith.constant 0 : i32
    %c0_i32_1 = arith.constant 0 : i32
    return %arg0, %c0_i32, %c0_i32_0 : i32, i32, i32
  }
}

module attributes {stable_mosaic.version = 11 : i64} {
  func.func @_bilinear_kernel(%arg0: i32, %arg1: memref<16x8x8xbf16, #tpu.memory_space<vmem>>, %arg2: memref<32x8xbf16, #tpu.memory_space<vmem>>, %arg3: memref<8x32xbf16, #tpu.memory_space<vmem>>, %arg4: memref<16x32x32xf32, #tpu.memory_space<vmem>>) attributes {dimension_semantics = [#tpu.dimension_semantics<parallel>], iteration_bounds = array<i64: 1>, scalar_prefetch = 0 : i64, scratch_operands = 0 : i64, tpu.core_type = #tpu.core_type<tc>, window_params = [{transform_indices = @transform_0, window_bounds = array<i64: 16, 8, 8>}, {pipeline_mode = #tpu.pipeline_mode<synchronous>, transform_indices = @transform_1, window_bounds = array<i64: 32, 8>}, {pipeline_mode = #tpu.pipeline_mode<synchronous>, transform_indices = @transform_2, window_bounds = array<i64: 8, 32>}, {transform_indices = @transform_3, window_bounds = array<i64: 16, 32, 32>}]} {
    %c0 = arith.constant 0 : index
    %c0_0 = arith.constant 0 : index
    %c0_1 = arith.constant 0 : index
    %0 = vector.load %arg1[%c0, %c0_0, %c0_1] : memref<16x8x8xbf16, #tpu.memory_space<vmem>>, vector<16x8x8xbf16>
    %1 = vector.shape_cast %0 : vector<16x8x8xbf16> to vector<128x8xbf16>
    %c0_2 = arith.constant 0 : index
    %c0_3 = arith.constant 0 : index
    %2 = vector.load %arg3[%c0_2, %c0_3] : memref<8x32xbf16, #tpu.memory_space<vmem>>, vector<8x32xbf16>
    %cst = arith.constant dense<0.000000e+00> : vector<128x32xf32>
    %3 = tpu.matmul %1, %2, %cst {dimension_numbers = #tpu.dot_dimension_numbers<[1], [0], [0], [1], [0, 0, 1, 1], [], []>} : vector<128x8xbf16>, vector<8x32xbf16>, vector<128x32xf32> -> vector<128x32xf32>
    %4 = vector.shape_cast %3 : vector<128x32xf32> to vector<16x8x32xf32>
    %5 = arith.truncf %4 : vector<16x8x32xf32> to vector<16x8x32xbf16>
    %c0_4 = arith.constant 0 : index
    %c0_5 = arith.constant 0 : index
    %6 = vector.load %arg2[%c0_4, %c0_5] : memref<32x8xbf16, #tpu.memory_space<vmem>>, vector<32x8xbf16>
    %7 = vector.extract_strided_slice %5 {offsets = [0, 0, 0], sizes = [1, 8, 32], strides = [1, 1, 1]} : vector<16x8x32xbf16> to vector<1x8x32xbf16>
    %8 = vector.shape_cast %7 : vector<1x8x32xbf16> to vector<8x32xbf16>
    %cst_6 = arith.constant dense<0.000000e+00> : vector<32x32xf32>
    %9 = tpu.matmul %6, %8, %cst_6 {dimension_numbers = #tpu.dot_dimension_numbers<[1], [0], [0], [1], [0, 0, 1, 1], [], []>} : vector<32x8xbf16>, vector<8x32xbf16>, vector<32x32xf32> -> vector<32x32xf32>
    %c0_7 = arith.constant 0 : index
    %c0_8 = arith.constant 0 : index
    %c0_9 = arith.constant 0 : index
    %10 = vector.load %arg4[%c0_7, %c0_8, %c0_9] : memref<16x32x32xf32, #tpu.memory_space<vmem>>, vector<1x32x32xf32>
    %11 = vector.shape_cast %10 : vector<1x32x32xf32> to vector<32x32xf32>
    %12 = vector.shape_cast %9 : vector<32x32xf32> to vector<1x32x32xf32>
    tpu.vector_store %arg4[%c0_7, %c0_8, %c0_9], %12 {strides = array<i32>} : memref<16x32x32xf32, #tpu.memory_space<vmem>>, vector<1x32x32xf32>,
    %13 = vector.extract_strided_slice %5 {offsets = [1, 0, 0], sizes = [1, 8, 32], strides = [1, 1, 1]} : vector<16x8x32xbf16> to vector<1x8x32xbf16>
    %14 = vector.shape_cast %13 : vector<1x8x32xbf16> to vector<8x32xbf16>
    %cst_10 = arith.constant dense<0.000000e+00> : vector<32x32xf32>
    %15 = tpu.matmul %6, %14, %cst_10 {dimension_numbers = #tpu.dot_dimension_numbers<[1], [0], [0], [1], [0, 0, 1, 1], [], []>} : vector<32x8xbf16>, vector<8x32xbf16>, vector<32x32xf32> -> vector<32x32xf32>
    %c1 = arith.constant 1 : index
    %c0_11 = arith.constant 0 : index
    %c0_12 = arith.constant 0 : index
    %16 = vector.load %arg4[%c1, %c0_11, %c0_12] : memref<16x32x32xf32, #tpu.memory_space<vmem>>, vector<1x32x32xf32>
    %17 = vector.shape_cast %16 : vector<1x32x32xf32> to vector<32x32xf32>
    %18 = vector.shape_cast %15 : vector<32x32xf32> to vector<1x32x32xf32>
    tpu.vector_store %arg4[%c1, %c0_11, %c0_12], %18 {strides = array<i32>} : memref<16x32x32xf32, #tpu.memory_space<vmem>>, vector<1x32x32xf32>,
    %19 = vector.extract_strided_slice %5 {offsets = [2, 0, 0], sizes = [1, 8, 32], strides = [1, 1, 1]} : vector<16x8x32xbf16> to vector<1x8x32xbf16>
    %20 = vector.shape_cast %19 : vector<1x8x32xbf16> to vector<8x32xbf16>
    %cst_13 = arith.constant dense<0.000000e+00> : vector<32x32xf32>
    %21 = tpu.matmul %6, %20, %cst_13 {dimension_numbers = #tpu.dot_dimension_numbers<[1], [0], [0], [1], [0, 0, 1, 1], [], []>} : vector<32x8xbf16>, vector<8x32xbf16>, vector<32x32xf32> -> vector<32x32xf32>
    %c2 = arith.constant 2 : index
    %c0_14 = arith.constant 0 : index
    %c0_15 = arith.constant 0 : index
    %22 = vector.load %arg4[%c2, %c0_14, %c0_15] : memref<16x32x32xf32, #tpu.memory_space<vmem>>, vector<1x32x32xf32>
    %23 = vector.shape_cast %22 : vector<1x32x32xf32> to vector<32x32xf32>
    %24 = vector.shape_cast %21 : vector<32x32xf32> to vector<1x32x32xf32>
    tpu.vector_store %arg4[%c2, %c0_14, %c0_15], %24 {strides = array<i32>} : memref<16x32x32xf32, #tpu.memory_space<vmem>>, vector<1x32x32xf32>,
    %25 = vector.extract_strided_slice %5 {offsets = [3, 0, 0], sizes = [1, 8, 32], strides = [1, 1, 1]} : vector<16x8x32xbf16> to vector<1x8x32xbf16>
    %26 = vector.shape_cast %25 : vector<1x8x32xbf16> to vector<8x32xbf16>
    %cst_16 = arith.constant dense<0.000000e+00> : vector<32x32xf32>
    %27 = tpu.matmul %6, %26, %cst_16 {dimension_numbers = #tpu.dot_dimension_numbers<[1], [0], [0], [1], [0, 0, 1, 1], [], []>} : vector<32x8xbf16>, vector<8x32xbf16>, vector<32x32xf32> -> vector<32x32xf32>
    %c3 = arith.constant 3 : index
    %c0_17 = arith.constant 0 : index
    %c0_18 = arith.constant 0 : index
    %28 = vector.load %arg4[%c3, %c0_17, %c0_18] : memref<16x32x32xf32, #tpu.memory_space<vmem>>, vector<1x32x32xf32>
    %29 = vector.shape_cast %28 : vector<1x32x32xf32> to vector<32x32xf32>
    %30 = vector.shape_cast %27 : vector<32x32xf32> to vector<1x32x32xf32>
    tpu.vector_store %arg4[%c3, %c0_17, %c0_18], %30 {strides = array<i32>} : memref<16x32x32xf32, #tpu.memory_space<vmem>>, vector<1x32x32xf32>,
    %31 = vector.extract_strided_slice %5 {offsets = [4, 0, 0], sizes = [1, 8, 32], strides = [1, 1, 1]} : vector<16x8x32xbf16> to vector<1x8x32xbf16>
    %32 = vector.shape_cast %31 : vector<1x8x32xbf16> to vector<8x32xbf16>
    %cst_19 = arith.constant dense<0.000000e+00> : vector<32x32xf32>
    %33 = tpu.matmul %6, %32, %cst_19 {dimension_numbers = #tpu.dot_dimension_numbers<[1], [0], [0], [1], [0, 0, 1, 1], [], []>} : vector<32x8xbf16>, vector<8x32xbf16>, vector<32x32xf32> -> vector<32x32xf32>
    %c4 = arith.constant 4 : index
    %c0_20 = arith.constant 0 : index
    %c0_21 = arith.constant 0 : index
    %34 = vector.load %arg4[%c4, %c0_20, %c0_21] : memref<16x32x32xf32, #tpu.memory_space<vmem>>, vector<1x32x32xf32>
    %35 = vector.shape_cast %34 : vector<1x32x32xf32> to vector<32x32xf32>
    %36 = vector.shape_cast %33 : vector<32x32xf32> to vector<1x32x32xf32>
    tpu.vector_store %arg4[%c4, %c0_20, %c0_21], %36 {strides = array<i32>} : memref<16x32x32xf32, #tpu.memory_space<vmem>>, vector<1x32x32xf32>,
    %37 = vector.extract_strided_slice %5 {offsets = [5, 0, 0], sizes = [1, 8, 32], strides = [1, 1, 1]} : vector<16x8x32xbf16> to vector<1x8x32xbf16>
    %38 = vector.shape_cast %37 : vector<1x8x32xbf16> to vector<8x32xbf16>
    %cst_22 = arith.constant dense<0.000000e+00> : vector<32x32xf32>
    %39 = tpu.matmul %6, %38, %cst_22 {dimension_numbers = #tpu.dot_dimension_numbers<[1], [0], [0], [1], [0, 0, 1, 1], [], []>} : vector<32x8xbf16>, vector<8x32xbf16>, vector<32x32xf32> -> vector<32x32xf32>
    %c5 = arith.constant 5 : index
    %c0_23 = arith.constant 0 : index
    %c0_24 = arith.constant 0 : index
    %40 = vector.load %arg4[%c5, %c0_23, %c0_24] : memref<16x32x32xf32, #tpu.memory_space<vmem>>, vector<1x32x32xf32>
    %41 = vector.shape_cast %40 : vector<1x32x32xf32> to vector<32x32xf32>
    %42 = vector.shape_cast %39 : vector<32x32xf32> to vector<1x32x32xf32>
    tpu.vector_store %arg4[%c5, %c0_23, %c0_24], %42 {strides = array<i32>} : memref<16x32x32xf32, #tpu.memory_space<vmem>>, vector<1x32x32xf32>,
    %43 = vector.extract_strided_slice %5 {offsets = [6, 0, 0], sizes = [1, 8, 32], strides = [1, 1, 1]} : vector<16x8x32xbf16> to vector<1x8x32xbf16>
    %44 = vector.shape_cast %43 : vector<1x8x32xbf16> to vector<8x32xbf16>
    %cst_25 = arith.constant dense<0.000000e+00> : vector<32x32xf32>
    %45 = tpu.matmul %6, %44, %cst_25 {dimension_numbers = #tpu.dot_dimension_numbers<[1], [0], [0], [1], [0, 0, 1, 1], [], []>} : vector<32x8xbf16>, vector<8x32xbf16>, vector<32x32xf32> -> vector<32x32xf32>
    %c6 = arith.constant 6 : index
    %c0_26 = arith.constant 0 : index
    %c0_27 = arith.constant 0 : index
    %46 = vector.load %arg4[%c6, %c0_26, %c0_27] : memref<16x32x32xf32, #tpu.memory_space<vmem>>, vector<1x32x32xf32>
    %47 = vector.shape_cast %46 : vector<1x32x32xf32> to vector<32x32xf32>
    %48 = vector.shape_cast %45 : vector<32x32xf32> to vector<1x32x32xf32>
    tpu.vector_store %arg4[%c6, %c0_26, %c0_27], %48 {strides = array<i32>} : memref<16x32x32xf32, #tpu.memory_space<vmem>>, vector<1x32x32xf32>,
    %49 = vector.extract_strided_slice %5 {offsets = [7, 0, 0], sizes = [1, 8, 32], strides = [1, 1, 1]} : vector<16x8x32xbf16> to vector<1x8x32xbf16>
    %50 = vector.shape_cast %49 : vector<1x8x32xbf16> to vector<8x32xbf16>
    %cst_28 = arith.constant dense<0.000000e+00> : vector<32x32xf32>
    %51 = tpu.matmul %6, %50, %cst_28 {dimension_numbers = #tpu.dot_dimension_numbers<[1], [0], [0], [1], [0, 0, 1, 1], [], []>} : vector<32x8xbf16>, vector<8x32xbf16>, vector<32x32xf32> -> vector<32x32xf32>
    %c7 = arith.constant 7 : index
    %c0_29 = arith.constant 0 : index
    %c0_30 = arith.constant 0 : index
    %52 = vector.load %arg4[%c7, %c0_29, %c0_30] : memref<16x32x32xf32, #tpu.memory_space<vmem>>, vector<1x32x32xf32>
    %53 = vector.shape_cast %52 : vector<1x32x32xf32> to vector<32x32xf32>
    %54 = vector.shape_cast %51 : vector<32x32xf32> to vector<1x32x32xf32>
    tpu.vector_store %arg4[%c7, %c0_29, %c0_30], %54 {strides = array<i32>} : memref<16x32x32xf32, #tpu.memory_space<vmem>>, vector<1x32x32xf32>,
    %55 = vector.extract_strided_slice %5 {offsets = [8, 0, 0], sizes = [1, 8, 32], strides = [1, 1, 1]} : vector<16x8x32xbf16> to vector<1x8x32xbf16>
    %56 = vector.shape_cast %55 : vector<1x8x32xbf16> to vector<8x32xbf16>
    %cst_31 = arith.constant dense<0.000000e+00> : vector<32x32xf32>
    %57 = tpu.matmul %6, %56, %cst_31 {dimension_numbers = #tpu.dot_dimension_numbers<[1], [0], [0], [1], [0, 0, 1, 1], [], []>} : vector<32x8xbf16>, vector<8x32xbf16>, vector<32x32xf32> -> vector<32x32xf32>
    %c8 = arith.constant 8 : index
    %c0_32 = arith.constant 0 : index
    %c0_33 = arith.constant 0 : index
    %58 = vector.load %arg4[%c8, %c0_32, %c0_33] : memref<16x32x32xf32, #tpu.memory_space<vmem>>, vector<1x32x32xf32>
    %59 = vector.shape_cast %58 : vector<1x32x32xf32> to vector<32x32xf32>
    %60 = vector.shape_cast %57 : vector<32x32xf32> to vector<1x32x32xf32>
    tpu.vector_store %arg4[%c8, %c0_32, %c0_33], %60 {strides = array<i32>} : memref<16x32x32xf32, #tpu.memory_space<vmem>>, vector<1x32x32xf32>,
    %61 = vector.extract_strided_slice %5 {offsets = [9, 0, 0], sizes = [1, 8, 32], strides = [1, 1, 1]} : vector<16x8x32xbf16> to vector<1x8x32xbf16>
    %62 = vector.shape_cast %61 : vector<1x8x32xbf16> to vector<8x32xbf16>
    %cst_34 = arith.constant dense<0.000000e+00> : vector<32x32xf32>
    %63 = tpu.matmul %6, %62, %cst_34 {dimension_numbers = #tpu.dot_dimension_numbers<[1], [0], [0], [1], [0, 0, 1, 1], [], []>} : vector<32x8xbf16>, vector<8x32xbf16>, vector<32x32xf32> -> vector<32x32xf32>
    %c9 = arith.constant 9 : index
    %c0_35 = arith.constant 0 : index
    %c0_36 = arith.constant 0 : index
    %64 = vector.load %arg4[%c9, %c0_35, %c0_36] : memref<16x32x32xf32, #tpu.memory_space<vmem>>, vector<1x32x32xf32>
    %65 = vector.shape_cast %64 : vector<1x32x32xf32> to vector<32x32xf32>
    %66 = vector.shape_cast %63 : vector<32x32xf32> to vector<1x32x32xf32>
    tpu.vector_store %arg4[%c9, %c0_35, %c0_36], %66 {strides = array<i32>} : memref<16x32x32xf32, #tpu.memory_space<vmem>>, vector<1x32x32xf32>,
    %67 = vector.extract_strided_slice %5 {offsets = [10, 0, 0], sizes = [1, 8, 32], strides = [1, 1, 1]} : vector<16x8x32xbf16> to vector<1x8x32xbf16>
    %68 = vector.shape_cast %67 : vector<1x8x32xbf16> to vector<8x32xbf16>
    %cst_37 = arith.constant dense<0.000000e+00> : vector<32x32xf32>
    %69 = tpu.matmul %6, %68, %cst_37 {dimension_numbers = #tpu.dot_dimension_numbers<[1], [0], [0], [1], [0, 0, 1, 1], [], []>} : vector<32x8xbf16>, vector<8x32xbf16>, vector<32x32xf32> -> vector<32x32xf32>
    %c10 = arith.constant 10 : index
    %c0_38 = arith.constant 0 : index
    %c0_39 = arith.constant 0 : index
    %70 = vector.load %arg4[%c10, %c0_38, %c0_39] : memref<16x32x32xf32, #tpu.memory_space<vmem>>, vector<1x32x32xf32>
    %71 = vector.shape_cast %70 : vector<1x32x32xf32> to vector<32x32xf32>
    %72 = vector.shape_cast %69 : vector<32x32xf32> to vector<1x32x32xf32>
    tpu.vector_store %arg4[%c10, %c0_38, %c0_39], %72 {strides = array<i32>} : memref<16x32x32xf32, #tpu.memory_space<vmem>>, vector<1x32x32xf32>,
    %73 = vector.extract_strided_slice %5 {offsets = [11, 0, 0], sizes = [1, 8, 32], strides = [1, 1, 1]} : vector<16x8x32xbf16> to vector<1x8x32xbf16>
    %74 = vector.shape_cast %73 : vector<1x8x32xbf16> to vector<8x32xbf16>
    %cst_40 = arith.constant dense<0.000000e+00> : vector<32x32xf32>
    %75 = tpu.matmul %6, %74, %cst_40 {dimension_numbers = #tpu.dot_dimension_numbers<[1], [0], [0], [1], [0, 0, 1, 1], [], []>} : vector<32x8xbf16>, vector<8x32xbf16>, vector<32x32xf32> -> vector<32x32xf32>
    %c11 = arith.constant 11 : index
    %c0_41 = arith.constant 0 : index
    %c0_42 = arith.constant 0 : index
    %76 = vector.load %arg4[%c11, %c0_41, %c0_42] : memref<16x32x32xf32, #tpu.memory_space<vmem>>, vector<1x32x32xf32>
    %77 = vector.shape_cast %76 : vector<1x32x32xf32> to vector<32x32xf32>
    %78 = vector.shape_cast %75 : vector<32x32xf32> to vector<1x32x32xf32>
    tpu.vector_store %arg4[%c11, %c0_41, %c0_42], %78 {strides = array<i32>} : memref<16x32x32xf32, #tpu.memory_space<vmem>>, vector<1x32x32xf32>,
    %79 = vector.extract_strided_slice %5 {offsets = [12, 0, 0], sizes = [1, 8, 32], strides = [1, 1, 1]} : vector<16x8x32xbf16> to vector<1x8x32xbf16>
    %80 = vector.shape_cast %79 : vector<1x8x32xbf16> to vector<8x32xbf16>
    %cst_43 = arith.constant dense<0.000000e+00> : vector<32x32xf32>
    %81 = tpu.matmul %6, %80, %cst_43 {dimension_numbers = #tpu.dot_dimension_numbers<[1], [0], [0], [1], [0, 0, 1, 1], [], []>} : vector<32x8xbf16>, vector<8x32xbf16>, vector<32x32xf32> -> vector<32x32xf32>
    %c12 = arith.constant 12 : index
    %c0_44 = arith.constant 0 : index
    %c0_45 = arith.constant 0 : index
    %82 = vector.load %arg4[%c12, %c0_44, %c0_45] : memref<16x32x32xf32, #tpu.memory_space<vmem>>, vector<1x32x32xf32>
    %83 = vector.shape_cast %82 : vector<1x32x32xf32> to vector<32x32xf32>
    %84 = vector.shape_cast %81 : vector<32x32xf32> to vector<1x32x32xf32>
    tpu.vector_store %arg4[%c12, %c0_44, %c0_45], %84 {strides = array<i32>} : memref<16x32x32xf32, #tpu.memory_space<vmem>>, vector<1x32x32xf32>,
    %85 = vector.extract_strided_slice %5 {offsets = [13, 0, 0], sizes = [1, 8, 32], strides = [1, 1, 1]} : vector<16x8x32xbf16> to vector<1x8x32xbf16>
    %86 = vector.shape_cast %85 : vector<1x8x32xbf16> to vector<8x32xbf16>
    %cst_46 = arith.constant dense<0.000000e+00> : vector<32x32xf32>
    %87 = tpu.matmul %6, %86, %cst_46 {dimension_numbers = #tpu.dot_dimension_numbers<[1], [0], [0], [1], [0, 0, 1, 1], [], []>} : vector<32x8xbf16>, vector<8x32xbf16>, vector<32x32xf32> -> vector<32x32xf32>
    %c13 = arith.constant 13 : index
    %c0_47 = arith.constant 0 : index
    %c0_48 = arith.constant 0 : index
    %88 = vector.load %arg4[%c13, %c0_47, %c0_48] : memref<16x32x32xf32, #tpu.memory_space<vmem>>, vector<1x32x32xf32>
    %89 = vector.shape_cast %88 : vector<1x32x32xf32> to vector<32x32xf32>
    %90 = vector.shape_cast %87 : vector<32x32xf32> to vector<1x32x32xf32>
    tpu.vector_store %arg4[%c13, %c0_47, %c0_48], %90 {strides = array<i32>} : memref<16x32x32xf32, #tpu.memory_space<vmem>>, vector<1x32x32xf32>,
    %91 = vector.extract_strided_slice %5 {offsets = [14, 0, 0], sizes = [1, 8, 32], strides = [1, 1, 1]} : vector<16x8x32xbf16> to vector<1x8x32xbf16>
    %92 = vector.shape_cast %91 : vector<1x8x32xbf16> to vector<8x32xbf16>
    %cst_49 = arith.constant dense<0.000000e+00> : vector<32x32xf32>
    %93 = tpu.matmul %6, %92, %cst_49 {dimension_numbers = #tpu.dot_dimension_numbers<[1], [0], [0], [1], [0, 0, 1, 1], [], []>} : vector<32x8xbf16>, vector<8x32xbf16>, vector<32x32xf32> -> vector<32x32xf32>
    %c14 = arith.constant 14 : index
    %c0_50 = arith.constant 0 : index
    %c0_51 = arith.constant 0 : index
    %94 = vector.load %arg4[%c14, %c0_50, %c0_51] : memref<16x32x32xf32, #tpu.memory_space<vmem>>, vector<1x32x32xf32>
    %95 = vector.shape_cast %94 : vector<1x32x32xf32> to vector<32x32xf32>
    %96 = vector.shape_cast %93 : vector<32x32xf32> to vector<1x32x32xf32>
    tpu.vector_store %arg4[%c14, %c0_50, %c0_51], %96 {strides = array<i32>} : memref<16x32x32xf32, #tpu.memory_space<vmem>>, vector<1x32x32xf32>,
    %97 = vector.extract_strided_slice %5 {offsets = [15, 0, 0], sizes = [1, 8, 32], strides = [1, 1, 1]} : vector<16x8x32xbf16> to vector<1x8x32xbf16>
    %98 = vector.shape_cast %97 : vector<1x8x32xbf16> to vector<8x32xbf16>
    %cst_52 = arith.constant dense<0.000000e+00> : vector<32x32xf32>
    %99 = tpu.matmul %6, %98, %cst_52 {dimension_numbers = #tpu.dot_dimension_numbers<[1], [0], [0], [1], [0, 0, 1, 1], [], []>} : vector<32x8xbf16>, vector<8x32xbf16>, vector<32x32xf32> -> vector<32x32xf32>
    %c15 = arith.constant 15 : index
    %c0_53 = arith.constant 0 : index
    %c0_54 = arith.constant 0 : index
    %100 = vector.load %arg4[%c15, %c0_53, %c0_54] : memref<16x32x32xf32, #tpu.memory_space<vmem>>, vector<1x32x32xf32>
    %101 = vector.shape_cast %100 : vector<1x32x32xf32> to vector<32x32xf32>
    %102 = vector.shape_cast %99 : vector<32x32xf32> to vector<1x32x32xf32>
    tpu.vector_store %arg4[%c15, %c0_53, %c0_54], %102 {strides = array<i32>} : memref<16x32x32xf32, #tpu.memory_space<vmem>>, vector<1x32x32xf32>,
    return
  }
  func.func @transform_0(%arg0: i32) -> (i32, i32, i32) {
    %c0_i32 = arith.constant 0 : i32
    %c0_i32_0 = arith.constant 0 : i32
    %c0_i32_1 = arith.constant 0 : i32
    return %arg0, %c0_i32, %c0_i32_0 : i32, i32, i32
  }
  func.func @transform_1(%arg0: i32) -> (i32, i32) {
    %c0_i32 = arith.constant 0 : i32
    %c0_i32_0 = arith.constant 0 : i32
    %c0_i32_1 = arith.constant 0 : i32
    return %c0_i32, %c0_i32_0 : i32, i32
  }
  func.func @transform_2(%arg0: i32) -> (i32, i32) {
    %c0_i32 = arith.constant 0 : i32
    %c0_i32_0 = arith.constant 0 : i32
    %c0_i32_1 = arith.constant 0 : i32
    return %c0_i32, %c0_i32_0 : i32, i32
  }
  func.func @transform_3(%arg0: i32) -> (i32, i32, i32) {
    %c0_i32 = arith.constant 0 : i32
    %c0_i32_0 = arith.constant 0 : i32
    %c0_i32_1 = arith.constant 0 : i32
    return %arg0, %c0_i32, %c0_i32_0 : i32, i32, i32
  }
}

</mosaic_0001>

<bundles_post_ra>
// kernel: custom_deeplabv3_forward.4
= control target key start
LH: loop header
LB: loop body
LE: loop exit
PB: predicated region body
PF: predicated region fallthrough
CT: control target
= control target key end

     0   :  { %s1194_s12 = smov 0   ;;  %s1196_s13 = smov 0   ;;  %s1329_s0 = inlined_call_operand.vmem [shape: bf16[2,256,27], index: 0, kind: input, shape index: {}]   ;;  %s1330_s1 = inlined_call_operand.vmem [shape: bf16[27,128], index: 1, kind: input, shape index: {}]   ;;  %s1331_s2 = inlined_call_operand.vmem [shape: f32[1,128], index: 2, kind: input, shape index: {}]   ;;  %s1332_s3 = inlined_call_operand.vmem [shape: bf16[2,256,128], index: 3, kind: output, shape index: {}]  }
   0x1   :  { %s1198_s14 = smov 0  }
   0x2 LB: > { %s25_s15 = sadd.s32 1, %s1167_s13  ;;  %p845_p0 = scmp.ge.s32.totalorder %s1171_s14, 1  ;;  %s1171_s14 = sphi %s1198_s14, %s13_s14   ;;  %s1167_s13 = sphi %s1196_s13, %s1334_s13   ;;  %s1163_s12 = sphi %s1194_s12, %s1333_s12  }
   0x3   : > { %p27_p1 = scmp.ge.s32.totalorder %s25_s15, 2  ;;  %p158_p2 = scmp.lt.s32.totalorder %s1171_s14, 3 }
   0x5   : > { %s1336_s15 = smov (%p27_p1, %s25_s15), 0  ;;  %p159_p3 = pnand %p845_p0, %p158_p2 }
   0x6   : > { %v1131_v0 = vld [vmem:[%s1330_s1] sm:$0xff] (!%p159_p3)   ;;  %vm394_vm0 = vcmask (!%p159_p3), 1044480   ;;  %v1132_v1 = vld [vmem:[%s1330_s1 + $0x8] sm:$0x3f] (!%p159_p3)   ;;  %vm395_vm1 = vcmask (!%p159_p3), 1045504   ;;  %p191_p4 = scmp.lt.s32.totalorder (!%p159_p3), %s1163_s12, 1 }
   0x7   : > { %162 = sbr.rel (%p159_p3) target bundleno = 266 (0x10a), region = 32  ;;  %1066 = vmatprep.subr.bf16.mxu0 (!%p159_p3), %v1131_v0  ;;  %1102 = vmatprep.subr.bf16.mxu1 (!%p159_p3), %v1131_v0  ;;  %v1173_v2 = vmov (!%p159_p3), 65535   ;;  %vm345_vm2 = vcmask (!%p159_p3), 220160   ;;  %v1263_v22 = vld [vmem:[%s1331_s2] ss:$0 sm:$0xff] (!%p159_p3) }
   0x8   : > { %1067 = vmatpush3.bf16.msra.mxu0 (!%p159_p3), %v1131_v0  ;;  %1104 = vmatpush3.bf16.msra.mxu1 (!%p159_p3), %v1131_v0  ;;  %v396_v3 = vsel (!%p159_p3), %vm394_vm0, 4294967295, %v1173_v2 }
   0x9   : > { %v397_v4 = vsel (!%p159_p3), %vm395_vm1, %v396_v3, 0 }
   0xa   : > { %v399_v5 = vand.u32 (!%p159_p3), %v1132_v1, %v397_v4 }
   0xc   : > { %1068 = vmatprep.subr.bf16.mxu0 (!%p159_p3), %v399_v5  ;;  %1103 = vmatprep.subr.bf16.mxu1 (!%p159_p3), %v399_v5 }
   0xd   : > { %1069 = vmatpush3.bf16.msra.mxu0 (!%p159_p3), %v399_v5  ;;  %1105 = vmatpush3.bf16.msra.mxu1 (!%p159_p3), %v399_v5 }
   0xe   : > { %s1338_s12 = smov (!%p191_p4, %s1163_s12), 1 }
   0xf   : > { %s919_s20 = sshll.u32 %s1338_s12, 7 }
  0x10   : > { %s1226_s23 = scalar_lea.vmem %s1329_s0, %s919_s20  ;;  %s1278_s28 = scalar_lea.vmem %s1332_s3, %s919_s20 }
  0x11   : > { %v1133_v6 = vld [vmem:[%s1226_s23] sm:$0xff]   ;;  %v1135_v8 = vld [vmem:[%s1226_s23 + $0x8] sm:$0xff]   ;;  %v1137_v10 = vld [vmem:[%s1226_s23 + $0x10] sm:$0xff]  }
  0x12   : > { %v1134_v7 = vld [vmem:[%s1226_s23 + $0x40] sm:$0xff]   ;;  %1070 = vmatprep.mubr.msk.bf16.mxu0 %vm345_vm2, %v1133_v6  ;;  %v1136_v9 = vld [vmem:[%s1226_s23 + $0x48] sm:$0xff]   ;;  %v1138_v11 = vld [vmem:[%s1226_s23 + $0x50] sm:$0xff]  }
  0x13   : > { %1086 = vmatprep.mubr.msk.bf16.mxu1 %vm345_vm2, %v1134_v7  ;;  %1071 = vmatmul.mubr.msk.bf16.vlgmr.msra.gmra.mrb[0].mxu0 %vm345_vm2, %v1135_v8  ;;  %v1139_v12 = vld [vmem:[%s1226_s23 + $0x18] sm:$0xff]   ;;  %v1141_v14 = vld [vmem:[%s1226_s23 + $0x20] sm:$0xff]   ;;  %v1143_v16 = vld [vmem:[%s1226_s23 + $0x28] sm:$0xff]  }
  0x14   : > { %1087 = vmatmul.mubr.msk.bf16.vlgmr.msra.gmra.mrb[0].mxu1 %vm345_vm2, %v1136_v9  ;;  %1074 = vmatprep.mubr.msk.bf16.mxu0 %vm345_vm2, %v1137_v10  ;;  %v1140_v13 = vld [vmem:[%s1226_s23 + $0x58] sm:$0xff]   ;;  %v1142_v15 = vld [vmem:[%s1226_s23 + $0x60] sm:$0xff]   ;;  %v1144_v17 = vld [vmem:[%s1226_s23 + $0x68] sm:$0xff]  }
  0x15   : > { %1090 = vmatprep.mubr.msk.bf16.mxu1 %vm345_vm2, %v1138_v11  ;;  %v1145_v18 = vld [vmem:[%s1226_s23 + $0x30] sm:$0xff]   ;;  %v1147_v20 = vld [vmem:[%s1226_s23 + $0x38] sm:$0xff]  }
  0x16   : > { %v1146_v19 = vld [vmem:[%s1226_s23 + $0x70] sm:$0xff]   ;;  %v1148_v21 = vld [vmem:[%s1226_s23 + $0x78] sm:$0xff]  }
  0x1b   : > { %1075 = vmatmul.mubr.msk.bf16.gmra.mrb[4].mxu0 %vm345_vm2, %v1139_v12 }
  0x1c   : > { %1091 = vmatmul.mubr.msk.bf16.gmra.mrb[4].mxu1 %vm345_vm2, %v1140_v13  ;;  %1078 = vmatprep.mubr.msk.bf16.mxu0 %vm345_vm2, %v1141_v14 }
  0x1d   : > { %1094 = vmatprep.mubr.msk.bf16.mxu1 %vm345_vm2, %v1142_v15 }
  0x23   : > { %1079 = vmatmul.mubr.msk.bf16.gmra.mrb[8].mxu0 %vm345_vm2, %v1143_v16 }
  0x24   : > { %1095 = vmatmul.mubr.msk.bf16.gmra.mrb[8].mxu1 %vm345_vm2, %v1144_v17  ;;  %1082 = vmatprep.mubr.msk.bf16.mxu0 %vm345_vm2, %v1145_v18 }
  0x25   : > { %1098 = vmatprep.mubr.msk.bf16.mxu1 %vm345_vm2, %v1146_v19 }
  0x2b   : > { %1083 = vmatmul.mubr.msk.bf16.gmra.mrb[12].mxu0 %vm345_vm2, %v1147_v20 }
  0x2c   : > { %1099 = vmatmul.mubr.msk.bf16.gmra.mrb[12].mxu1 %vm345_vm2, %v1148_v21 }
  0xe6   : > { %v1072_v23 = vpop.f32.mrb[0].mxu0 }
  0xe7   : > { %v444_v24 = vadd.f32 %v1072_v23, %v1263_v22  ;;  %v1088_v25 = vpop.f32.mrb[0].mxu1  ;;  %v435_v26 = vpop.f32.mrb[1].mxu0 }
  0xe8   : > { %v508_v27 = vadd.f32 %v1088_v25, %v1263_v22  ;;  %v436_v28 = vadd.f32 %v1263_v22, %v435_v26  ;;  %v499_v29 = vpop.f32.mrb[1].mxu1  ;;  %v1073_v30 = vpop.f32.mrb[2].mxu0 }
  0xe9   : > { %v500_v31 = vadd.f32 %v1263_v22, %v499_v29  ;;  %v447_v32 = vadd.f32 %v1073_v30, %v1263_v22  ;;  %v1089_v33 = vpop.f32.mrb[2].mxu1  ;;  %v438_v34 = vpop.f32.mrb[3].mxu0  ;;  %v564_v38 = vmax.f32 %v444_v24, 0.0 }
  0xea   : > { %v511_v35 = vadd.f32 %v1089_v33, %v1263_v22  ;;  %v439_v36 = vadd.f32 %v1263_v22, %v438_v34  ;;  %v502_v37 = vpop.f32.mrb[3].mxu1  ;;  %v580_v41 = vmax.f32 %v508_v27, 0.0  ;;  %v562_v42 = vmax.f32 %v436_v28, 0.0 }
  0xeb   : > { %v565_v39 = vmax.f32 %v447_v32, 0.0  ;;  %v503_v40 = vadd.f32 %v1263_v22, %v502_v37  ;;  %v578_v45 = vmax.f32 %v500_v31, 0.0 }
  0xec   : > { %v581_v43 = vmax.f32 %v511_v35, 0.0  ;;  %v563_v44 = vmax.f32 %v439_v36, 0.0 }
  0xed   : > { %v961_v46 = vpack.c.bf16 %v565_v39, %v564_v38  ;;  %v579_v47 = vmax.f32 %v503_v40, 0.0 }
  0xee   : > { %v1001_v48 = vpack.c.bf16 %v581_v43, %v580_v41  ;;  %v956_v49 = vpack.c.bf16 %v563_v44, %v562_v42  ;;  %v1076_v50 = vpop.f32.mrb[4].mxu0 }
  0xef   : > { %1033 = vst [vmem:[%s1278_s28 + $0x8] sm:$0xff] %v961_v46   ;;  %v996_v51 = vpack.c.bf16 %v579_v47, %v578_v45  ;;  %v460_v52 = vadd.f32 %v1076_v50, %v1263_v22  ;;  %v1092_v53 = vpop.f32.mrb[4].mxu1  ;;  %v451_v54 = vpop.f32.mrb[5].mxu0 }
  0xf0   : > { %1041 = vst [vmem:[%s1278_s28 + $0x48] sm:$0xff] %v1001_v48   ;;  %957 = vst [vmem:[%s1278_s28] sm:$0xff] %v956_v49   ;;  %v524_v55 = vadd.f32 %v1092_v53, %v1263_v22  ;;  %v452_v56 = vadd.f32 %v1263_v22, %v451_v54  ;;  %v515_v57 = vpop.f32.mrb[5].mxu1  ;;  %v1077_v58 = vpop.f32.mrb[6].mxu0 }
  0xf1   : > { %1040 = vst [vmem:[%s1278_s28 + $0x40] sm:$0xff] %v996_v51   ;;  %v516_v59 = vadd.f32 %v1263_v22, %v515_v57  ;;  %v463_v60 = vadd.f32 %v1077_v58, %v1263_v22  ;;  %v1093_v61 = vpop.f32.mrb[6].mxu1  ;;  %v454_v62 = vpop.f32.mrb[7].mxu0  ;;  %v568_v2 = vmax.f32 %v460_v52, 0.0 }
  0xf2   : > { %v527_v63 = vadd.f32 %v1093_v61, %v1263_v22  ;;  %v455_v0 = vadd.f32 %v1263_v22, %v454_v62  ;;  %v518_v1 = vpop.f32.mrb[7].mxu1  ;;  %v584_v5 = vmax.f32 %v524_v55, 0.0  ;;  %v566_v6 = vmax.f32 %v452_v56, 0.0 }
  0xf3   : > { %v569_v3 = vmax.f32 %v463_v60, 0.0  ;;  %v519_v4 = vadd.f32 %v1263_v22, %v518_v1  ;;  %v582_v9 = vmax.f32 %v516_v59, 0.0 }
  0xf4   : > { %v585_v7 = vmax.f32 %v527_v63, 0.0  ;;  %v567_v8 = vmax.f32 %v455_v0, 0.0 }
  0xf5   : > { %v971_v10 = vpack.c.bf16 %v569_v3, %v568_v2  ;;  %v583_v11 = vmax.f32 %v519_v4, 0.0 }
  0xf6   : > { %v1011_v12 = vpack.c.bf16 %v585_v7, %v584_v5  ;;  %v966_v13 = vpack.c.bf16 %v567_v8, %v566_v6  ;;  %v1080_v14 = vpop.f32.mrb[8].mxu0 }
  0xf7   : > { %1035 = vst [vmem:[%s1278_s28 + $0x18] sm:$0xff] %v971_v10   ;;  %v1006_v15 = vpack.c.bf16 %v583_v11, %v582_v9  ;;  %v476_v16 = vadd.f32 %v1080_v14, %v1263_v22  ;;  %v1096_v17 = vpop.f32.mrb[8].mxu1  ;;  %v467_v18 = vpop.f32.mrb[9].mxu0 }
  0xf8   : > { %1043 = vst [vmem:[%s1278_s28 + $0x58] sm:$0xff] %v1011_v12   ;;  %1034 = vst [vmem:[%s1278_s28 + $0x10] sm:$0xff] %v966_v13   ;;  %v540_v19 = vadd.f32 %v1096_v17, %v1263_v22  ;;  %v468_v20 = vadd.f32 %v1263_v22, %v467_v18  ;;  %v531_v21 = vpop.f32.mrb[9].mxu1  ;;  %v1081_v23 = vpop.f32.mrb[10].mxu0 }
  0xf9   : > { %1042 = vst [vmem:[%s1278_s28 + $0x50] sm:$0xff] %v1006_v15   ;;  %v532_v24 = vadd.f32 %v1263_v22, %v531_v21  ;;  %v479_v25 = vadd.f32 %v1081_v23, %v1263_v22  ;;  %v1097_v26 = vpop.f32.mrb[10].mxu1  ;;  %v470_v27 = vpop.f32.mrb[11].mxu0  ;;  %v572_v31 = vmax.f32 %v476_v16, 0.0 }
  0xfa   : > { %v543_v28 = vadd.f32 %v1097_v26, %v1263_v22  ;;  %v471_v29 = vadd.f32 %v1263_v22, %v470_v27  ;;  %v534_v30 = vpop.f32.mrb[11].mxu1  ;;  %v588_v34 = vmax.f32 %v540_v19, 0.0  ;;  %v570_v35 = vmax.f32 %v468_v20, 0.0 }
  0xfb   : > { %v573_v32 = vmax.f32 %v479_v25, 0.0  ;;  %v535_v33 = vadd.f32 %v1263_v22, %v534_v30  ;;  %v586_v38 = vmax.f32 %v532_v24, 0.0 }
  0xfc   : > { %v589_v36 = vmax.f32 %v543_v28, 0.0  ;;  %v571_v37 = vmax.f32 %v471_v29, 0.0 }
  0xfd   : > { %v981_v39 = vpack.c.bf16 %v573_v32, %v572_v31  ;;  %v587_v40 = vmax.f32 %v535_v33, 0.0 }
  0xfe   : > { %v1021_v41 = vpack.c.bf16 %v589_v36, %v588_v34  ;;  %v976_v42 = vpack.c.bf16 %v571_v37, %v570_v35  ;;  %v1084_v43 = vpop.f32.mrb[12].mxu0 }
  0xff   : > { %1037 = vst [vmem:[%s1278_s28 + $0x28] sm:$0xff] %v981_v39   ;;  %v1016_v44 = vpack.c.bf16 %v587_v40, %v586_v38  ;;  %v492_v45 = vadd.f32 %v1084_v43, %v1263_v22  ;;  %v1100_v46 = vpop.f32.mrb[12].mxu1  ;;  %v483_v47 = vpop.f32.mrb[13].mxu0 }
 0x100   : > { %1045 = vst [vmem:[%s1278_s28 + $0x68] sm:$0xff] %v1021_v41   ;;  %1036 = vst [vmem:[%s1278_s28 + $0x20] sm:$0xff] %v976_v42   ;;  %v556_v48 = vadd.f32 %v1100_v46, %v1263_v22  ;;  %v484_v49 = vadd.f32 %v1263_v22, %v483_v47  ;;  %v547_v50 = vpop.f32.mrb[13].mxu1  ;;  %v1085_v51 = vpop.f32.mrb[14].mxu0 }
 0x101   : > { %1044 = vst [vmem:[%s1278_s28 + $0x60] sm:$0xff] %v1016_v44   ;;  %v548_v52 = vadd.f32 %v1263_v22, %v547_v50  ;;  %v495_v53 = vadd.f32 %v1085_v51, %v1263_v22  ;;  %v1101_v54 = vpop.f32.mrb[14].mxu1  ;;  %v486_v55 = vpop.f32.mrb[15].mxu0  ;;  %v576_v59 = vmax.f32 %v492_v45, 0.0 }
 0x102   : > { %v559_v56 = vadd.f32 %v1101_v54, %v1263_v22  ;;  %v487_v57 = vadd.f32 %v1263_v22, %v486_v55  ;;  %v550_v58 = vpop.f32.mrb[15].mxu1  ;;  %v592_v62 = vmax.f32 %v556_v48, 0.0  ;;  %v574_v63 = vmax.f32 %v484_v49, 0.0 }
 0x103   : > { %v577_v60 = vmax.f32 %v495_v53, 0.0  ;;  %v551_v61 = vadd.f32 %v1263_v22, %v550_v58  ;;  %v590_v2 = vmax.f32 %v548_v52, 0.0 }
 0x104   : > { %v593_v0 = vmax.f32 %v559_v56, 0.0  ;;  %v575_v1 = vmax.f32 %v487_v57, 0.0 }
 0x105   : > { %v991_v3 = vpack.c.bf16 %v577_v60, %v576_v59  ;;  %v591_v4 = vmax.f32 %v551_v61, 0.0 }
 0x106   : > { %v1031_v5 = vpack.c.bf16 %v593_v0, %v592_v62  ;;  %v986_v6 = vpack.c.bf16 %v575_v1, %v574_v63 }
 0x107   : > { %1039 = vst [vmem:[%s1278_s28 + $0x38] sm:$0xff] %v991_v3   ;;  %v1026_v7 = vpack.c.bf16 %v591_v4, %v590_v2 }
 0x108   : > { %1047 = vst [vmem:[%s1278_s28 + $0x78] sm:$0xff] %v1031_v5   ;;  %1038 = vst [vmem:[%s1278_s28 + $0x30] sm:$0xff] %v986_v6  }
 0x109   : > { %1046 = vst [vmem:[%s1278_s28 + $0x70] sm:$0xff] %v1026_v7  }
 0x10a PF: > { %s13_s14 = sadd.s32 1, %s1171_s14   ;;  %s1333_s12 = smov %s1167_s13 }
 0x10b   : > { %p10_p5 = scmp.ge.s32.totalorder %s13_s14, 4   ;;  %s1334_s13 = smov %s1336_s15 }
 0x10d   :  { %12 = sbr.rel (!%p10_p5) target bundleno = 2 (0x2), region = 62 }

// kernel: custom_deeplabv3_forward.5
= control target key start
LH: loop header
LB: loop body
LE: loop exit
PB: predicated region body
PF: predicated region fallthrough
CT: control target
= control target key end

     0   :  { %s3043_s12 = smov 0   ;;  %s3411_s0 = inlined_call_operand.vmem [shape: bf16[2,4,9,9,128], index: 0, kind: input, shape index: {}]   ;;  %s3412_s1 = inlined_call_operand.vmem [shape: bf16[3,3,128,128], index: 1, kind: input, shape index: {}]   ;;  %s3413_s2 = inlined_call_operand.vmem [shape: f32[1,128], index: 2, kind: input, shape index: {}]   ;;  %s3414_s3 = inlined_call_operand.vmem [shape: bf16[2,64,128], index: 3, kind: output, shape index: {}]  }
   0x1 LB: > { %s2147_s13 = sadd.s32 4294967295, %s3021_s12   ;;  %p2151_p0 = scmp.ge.s32.totalorder %s3021_s12, 1  ;;  %s3021_s12 = sphi %s3043_s12, %s13_s12  }
   0x2   : > { %p137_p1 = scmp.lt.s32.totalorder %s3021_s12, 3 }
   0x4   : > { %p138_p2 = pnand %p2151_p0, %p137_p1 }
   0x5   : > { %v2919_v0 = vld [vmem:[%s3412_s1 + $0x40] sm:$0xff] (!%p138_p2)   ;;  %p161_p3 = scmp.lt.s32.totalorder (!%p138_p2), %s2147_s13, 1  ;;  %v2921_v2 = vld [vmem:[%s3412_s1 + $0x48] sm:$0xff] (!%p138_p2)   ;;  %v2923_v4 = vld [vmem:[%s3412_s1 + $0x50] sm:$0xff] (!%p138_p2)   ;;  %vm512_vm0 = vsmask.f32 (!%p138_p2), 3328 }
   0x6   : > { %141 = sbr.rel (%p138_p2) target bundleno = 391 (0x187), region = 32  ;;  %v2920_v1 = vld [vmem:[%s3412_s1 + $0x100] sm:$0xff] (!%p138_p2)   ;;  %2614 = vmatprep.subr.bf16.mxu1 (!%p138_p2), %v2919_v0  ;;  %v2922_v3 = vld [vmem:[%s3412_s1 + $0x108] sm:$0xff] (!%p138_p2)   ;;  %v2924_v5 = vld [vmem:[%s3412_s1 + $0x110] sm:$0xff] (!%p138_p2)   ;;  %vm513_vm1 = vsmask.f32 (!%p138_p2), 7440 }
   0x7   : > { %2710 = vmatprep.subr.bf16.mxu0 (!%p138_p2), %v2920_v1  ;;  %2615 = vmatpush3.bf16.msra.mxu1 (!%p138_p2), %v2919_v0  ;;  %v2925_v6 = vld [vmem:[%s3412_s1 + $0x58] sm:$0xff] (!%p138_p2)   ;;  %v2927_v8 = vld [vmem:[%s3412_s1 + $0x60] sm:$0xff] (!%p138_p2)   ;;  %v2929_v10 = vld [vmem:[%s3412_s1 + $0x68] sm:$0xff] (!%p138_p2)  }
   0x8   : > { %2711 = vmatpush3.bf16.msra.mxu0 (!%p138_p2), %v2920_v1  ;;  %2616 = vmatprep.subr.bf16.mxu1 (!%p138_p2), %v2921_v2  ;;  %v2926_v7 = vld [vmem:[%s3412_s1 + $0x118] sm:$0xff] (!%p138_p2)   ;;  %v2928_v9 = vld [vmem:[%s3412_s1 + $0x120] sm:$0xff] (!%p138_p2)   ;;  %v2930_v12 = vld [vmem:[%s3412_s1 + $0x128] sm:$0xff] (!%p138_p2)  }
   0x9   : > { %2712 = vmatprep.subr.bf16.mxu0 (!%p138_p2), %v2922_v3  ;;  %v2931_v14 = vld [vmem:[%s3412_s1 + $0x70] sm:$0xff] (!%p138_p2)   ;;  %v2933_v16 = vld [vmem:[%s3412_s1 + $0x78] sm:$0xff] (!%p138_p2)   ;;  %v2936_v18 = vld [vmem:[%s3412_s1] sm:$0xff] (!%p138_p2)  }
   0xa   : > { %v2932_v15 = vld [vmem:[%s3412_s1 + $0x130] sm:$0xff] (!%p138_p2)   ;;  %v2934_v17 = vld [vmem:[%s3412_s1 + $0x138] sm:$0xff] (!%p138_p2)   ;;  %v2938_v19 = vld [vmem:[%s3412_s1 + $0x140] sm:$0xff] (!%p138_p2)  }
   0xb   : > { %2617 = vmatpush3.bf16.msra.mxu1 (!%p138_p2), %v2921_v2  ;;  %v2941_v22 = vld [vmem:[%s3412_s1 + $0x8] sm:$0xff] (!%p138_p2)   ;;  %v2943_v26 = vld [vmem:[%s3412_s1 + $0x10] sm:$0xff] (!%p138_p2)   ;;  %v2945_v28 = vld [vmem:[%s3412_s1 + $0x18] sm:$0xff] (!%p138_p2)  }
   0xc   : > { %2713 = vmatpush3.bf16.msra.mxu0 (!%p138_p2), %v2922_v3  ;;  %2618 = vmatprep.subr.bf16.mxu1 (!%p138_p2), %v2923_v4  ;;  %v2942_v23 = vld [vmem:[%s3412_s1 + $0x148] sm:$0xff] (!%p138_p2)   ;;  %v2944_v27 = vld [vmem:[%s3412_s1 + $0x150] sm:$0xff] (!%p138_p2)   ;;  %v2946_v31 = vld [vmem:[%s3412_s1 + $0x158] sm:$0xff] (!%p138_p2)  }
   0xd   : > { %s3418_s13 = smov (!%p161_p3, %s2147_s13), 1  ;;  %2714 = vmatprep.subr.bf16.mxu0 %v2924_v5  ;;  %v2947_v38 = vld [vmem:[%s3412_s1 + $0x20] sm:$0xff]   ;;  %v2949_v47 = vld [vmem:[%s3412_s1 + $0x28] sm:$0xff]   ;;  %vm3158_vm2 = vmor %vm512_vm0, %vm513_vm1 }
   0xe   : > { %s2910_s30 = smul.u32 288, %s3418_s13  ;;  %v2948_v43 = vld [vmem:[%s3412_s1 + $0x160] sm:$0xff]   ;;  %v2950_v50 = vld [vmem:[%s3412_s1 + $0x168] sm:$0xff]   ;;  %v2952_v2 = vld [vmem:[%s3412_s1 + $0x30] sm:$0xff]   ;;  %s2474_s18 = sshll.u32 %s3418_s13, 5 }
   0xf   : > { %2619 = vmatpush3.bf16.msra.mxu1 %v2923_v4  ;;  %s170_s21 = scalar_lea.vmem %s3414_s3, %s2474_s18 }
  0x10   : > { %2715 = vmatpush3.bf16.msra.mxu0 %v2924_v5  ;;  %2620 = vmatprep.subr.bf16.mxu1 %v2925_v6  ;;  %s3087_s10 = scalar_lea.vmem %s3411_s0, %s2910_s30 }
  0x11   : > { %2716 = vmatprep.subr.bf16.mxu0 %v2926_v7  ;;  %v2935_v11 = vld [vmem:[%s3087_s10 + $0x48] ss:$8 sps:$4 sm:$0xff]   ;;  %v2937_v13 = vld [vmem:[%s3087_s10 + $0xd8] ss:$8 sps:$4 sm:$0xff]   ;;  %v2304_v34 = vld [vmem:[%s3087_s10 + $0x94] sm:$0x1] }
  0x12   : > { %2630 = vmatprep.mubr.bf16.mxu1 %v2935_v11  ;;  %2726 = vmatprep.mubr.bf16.mxu0 %v2937_v13  ;;  %v2939_v20 = vld [vmem:[%s3087_s10 + $0x58] ss:$8 sps:$4 sm:$0xff]   ;;  %v2940_v21 = vld [vmem:[%s3087_s10 + $0xe8] ss:$8 sps:$4 sm:$0xff]   ;;  %v2306_v39 = vld [vmem:[%s3087_s10 + $0x9c] sm:$0x1] }
  0x13   : > { %2621 = vmatpush3.bf16.msra.mxu1 %v2925_v6  ;;  %v2951_v24 = vld [vmem:[%s3087_s10 + $0x68] ss:$8 sps:$4 sm:$0xff]   ;;  %v2953_v25 = vld [vmem:[%s3087_s10 + $0xf8] ss:$8 sps:$4 sm:$0xff]   ;;  %v1149_v40 = vshll.u32 %v2304_v34, 16  ;;  %v1163_v46 = vshll.u32 %v2306_v39, 16 }
  0x14   : > { %2717 = vmatpush3.bf16.msra.mxu0 %v2926_v7  ;;  %2622 = vmatprep.subr.bf16.mxu1 %v2927_v8  ;;  %v2955_v29 = vld [vmem:[%s3087_s10 + $0x78] ss:$8 sps:$4 sm:$0xff]   ;;  %v2956_v30 = vld [vmem:[%s3087_s10 + $0x108] ss:$8 sps:$4 sm:$0xff]   ;;  %v2308_v57 = vld [vmem:[%s3087_s10 + $0xa4] sm:$0x1] }
  0x15   : > { %2718 = vmatprep.subr.bf16.mxu0 %v2928_v9  ;;  %v2959_v32 = vld [vmem:[%s3087_s10] ss:$8 sps:$4 sm:$0xff]   ;;  %v2303_v33 = vld [vmem:[%s3087_s10 + $0x90] sm:$0xf]  ;;  %v2305_v35 = vld [vmem:[%s3087_s10 + $0x98] sm:$0xf] }
  0x16   : > { %v1140_v36 = vshrl.u32 %v2303_v33, 16  ;;  %v1143_v37 = vshll.u32 %v2303_v33, 16  ;;  %v1154_v41 = vshrl.u32 %v2305_v35, 16  ;;  %v1157_v42 = vshll.u32 %v2305_v35, 16  ;;  %v2307_v56 = vld [vmem:[%s3087_s10 + $0xa0] sm:$0xf] }
  0x17   : > { %2623 = vmatpush3.bf16.msra.mxu1 %v2927_v8  ;;  %v1151_v52 = vrot.slane %v1149_v40, 5  ;;  %v1165_v55 = vrot.slane %v1163_v46, 5  ;;  %v2309_v59 = vld [vmem:[%s3087_s10 + $0xa8] sm:$0xf]  ;;  %v2310_v60 = vld [vmem:[%s3087_s10 + $0xac] sm:$0x1] }
  0x18   : > { %2719 = vmatpush3.bf16.msra.mxu0 %v2928_v9  ;;  %2624 = vmatprep.subr.bf16.mxu1 %v2929_v10  ;;  %v1142_v44 = vrot.slane %v1140_v36, 4  ;;  %v1145_v45 = vrot.slane %v1143_v37, 5  ;;  %v1156_v48 = vrot.slane %v1154_v41, 4  ;;  %v1159_v49 = vrot.slane %v1157_v42, 5  ;;  %v2954_v6 = vld [vmem:[%s3412_s1 + $0x170] sm:$0xff]  }
  0x19   : > { %2720 = vmatprep.subr.bf16.mxu0 %v2930_v12  ;;  %v1168_v61 = vshrl.u32 %v2307_v56, 16  ;;  %v1171_v63 = vshll.u32 %v2307_v56, 16  ;;  %v1177_v0 = vshll.u32 %v2308_v57, 16  ;;  %v1182_v1 = vshrl.u32 %v2309_v59, 16  ;;  %v2973_v37 = vld [vmem:[%s3087_s10 + $0x20] ss:$8 sps:$4 sm:$0xff]  }
  0x1a   : > { %v1146_v51 = vor.u32 %v1145_v45, %v1142_v44  ;;  %v1160_v54 = vor.u32 %v1159_v49, %v1156_v48  ;;  %v1185_v5 = vshll.u32 %v2309_v59, 16  ;;  %v2976_v48 = vld [vmem:[%s3087_s10 + $0x30] ss:$8 sps:$4 sm:$0xff]   ;;  %v2315_v49 = vld [vmem:[%s3087_s10 + $0xc0] sm:$0xf] }
  0x1b   : > { %2625 = vmatpush3.bf16.msra.mxu1 %v2929_v10  ;;  %v1170_v4 = vrot.slane %v1168_v61, 4  ;;  %v1173_v8 = vrot.slane %v1171_v63, 5  ;;  %v1184_v9 = vrot.slane %v1182_v1, 4  ;;  %v1191_v10 = vshll.u32 %v2310_v60, 16  ;;  %v2967_v59 = vld [vmem:[%s3412_s1 + $0x98] sm:$0xff]  }
  0x1c   : > { %2721 = vmatpush3.bf16.msra.mxu0 %v2930_v12  ;;  %2626 = vmatprep.subr.bf16.mxu1 %v2931_v14  ;;  %v1147_v58 = vrot.slane %v1146_v51, 4  ;;  %v1161_v62 = vrot.slane %v1160_v54, 4  ;;  %v1179_v12 = vrot.slane %v1177_v0, 5  ;;  %v1187_v13 = vrot.slane %v1185_v5, 5  ;;  %v2317_v51 = vld [vmem:[%s3087_s10 + $0xc8] sm:$0xf] }
  0x1d   : > { %2722 = vmatprep.subr.bf16.mxu0 %v2932_v15  ;;  %v1224_v56 = vshrl.u32 %v2315_v49, 16  ;;  %v1227_v57 = vshll.u32 %v2315_v49, 16  ;;  %v1238_v61 = vshrl.u32 %v2317_v51, 16 }
  0x1e   : > { %v1152_v3 = vsel %vm3158_vm2, %v1147_v58, %v1151_v52  ;;  %v1166_v7 = vsel %vm3158_vm2, %v1161_v62, %v1165_v55  ;;  %v2966_v52 = vld [vmem:[%s3412_s1 + $0x190] sm:$0xff]   ;;  %v2318_v55 = vld [vmem:[%s3087_s10 + $0xcc] sm:$0x1]  ;;  %v1241_v62 = vshll.u32 %v2317_v51, 16 }
  0x1f   : > { %2627 = vmatpush3.bf16.msra.mxu1 %v2931_v14  ;;  %v2335_v11 = vcombine.low %v1152_v3, %v1166_v7  ;;  %v2957_v14 = vld [vmem:[%s3412_s1 + $0x38] sm:$0xff]   ;;  %v1247_v63 = vshll.u32 %v2318_v55, 16  ;;  %v1226_v1 = vrot.slane %v1224_v56, 4 }
  0x20   : > { %2723 = vmatpush3.bf16.msra.mxu0 %v2932_v15  ;;  %2628 = vmatprep.subr.bf16.mxu1 %v2933_v16  ;;  %v1174_v15 = vor.u32 %v1173_v8, %v1170_v4  ;;  %v2968_v4 = vld [vmem:[%s3412_s1 + $0x198] sm:$0xff]   ;;  %v1243_v7 = vrot.slane %v1241_v62, 5 }
  0x21   : > { %2724 = vmatprep.subr.bf16.mxu0 %v2934_v17  ;;  %v1249_v8 = vrot.slane %v1247_v63, 5 }
  0x23   : > { %2629 = vmatpush3.bf16.msra.mxu1 %v2933_v16  ;;  %v1188_v16 = vor.u32 %v1187_v13, %v1184_v9  ;;  %v2969_v13 = vld [vmem:[%s3412_s1 + $0xa0] sm:$0xff]  }
  0x24   : > { %2725 = vmatpush3.bf16.msra.mxu0 %v2934_v17  ;;  %2638 = vmatprep.subr.bf16.mxu1 %v2936_v18  ;;  %v1175_v17 = vrot.slane %v1174_v15, 4 }
  0x25   : > { %2734 = vmatprep.subr.bf16.mxu0 %v2938_v19 }
  0x26   : > { %2631 = vmatmul.mubr.bf16.vlgmr.msra.gmra.mrb[0].mxu1 %v2939_v20  ;;  %v1189_v20 = vrot.slane %v1188_v16, 4  ;;  %v498_v16 = vld [vmem:[%s3087_s10 + $0x8] sm:$0xf] }
  0x27   : > { %2639 = vmatpush3.bf16.msra.mxu1 %v2936_v18  ;;  %2727 = vmatmul.mubr.bf16.vlgmr.msra.gmra.mrb[0].mxu0 %v2940_v21  ;;  %v1193_v18 = vrot.slane %v1191_v10, 5  ;;  %v2960_v21 = vld [vmem:[%s3412_s1 + $0x80] sm:$0xff]  }
  0x28   : > { %2735 = vmatpush3.bf16.msra.mxu0 %v2938_v19  ;;  %2640 = vmatprep.subr.bf16.mxu1 %v2941_v22  ;;  %v2958_v19 = vld [vmem:[%s3412_s1 + $0x178] sm:$0xff]  }
  0x29   : > { %2736 = vmatprep.subr.bf16.mxu0 %v2942_v23  ;;  %2634 = vmatprep.mubr.bf16.mxu1 %v2951_v24  ;;  %v2961_v24 = vld [vmem:[%s3412_s1 + $0x180] sm:$0xff]  }
  0x2a   : > { %2730 = vmatprep.mubr.bf16.mxu0 %v2953_v25  ;;  %v2962_v25 = vld [vmem:[%s3087_s10 + $0x10] ss:$8 sps:$4 sm:$0xff]  }
  0x2b   : > { %2641 = vmatpush3.bf16.msra.mxu1 %v2941_v22  ;;  %v1180_v22 = vsel %vm3158_vm2, %v1175_v17, %v1179_v12  ;;  %v497_v12 = vld [vmem:[%s3087_s10 + $0x4] sm:$0x1]  ;;  %v499_v17 = vld [vmem:[%s3087_s10 + $0xc] sm:$0x1] }
  0x2c   : > { %2737 = vmatpush3.bf16.msra.mxu0 %v2942_v23  ;;  %2642 = vmatprep.subr.bf16.mxu1 %v2943_v26  ;;  %v1194_v23 = vsel %vm3158_vm2, %v1189_v20, %v1193_v18 }
  0x2d   : > { %2738 = vmatprep.subr.bf16.mxu0 %v2944_v27 }
  0x2e   : > { %2635 = vmatmul.mubr.bf16.gmra.mrb[4].mxu1 %v2955_v29  ;;  %v2964_v29 = vld [vmem:[%s3412_s1 + $0x188] sm:$0xff]  }
  0x2f   : > { %2643 = vmatpush3.bf16.msra.mxu1 %v2943_v26  ;;  %2731 = vmatmul.mubr.bf16.gmra.mrb[4].mxu0 %v2956_v30  ;;  %v2963_v26 = vld [vmem:[%s3412_s1 + $0x88] sm:$0xff]   ;;  %v2312_v30 = vld [vmem:[%s3087_s10 + $0xb4] sm:$0x1] }
  0x30   : > { %2739 = vmatpush3.bf16.msra.mxu0 %v2944_v27  ;;  %2644 = vmatprep.subr.bf16.mxu1 %v2945_v28  ;;  %v2311_v27 = vld [vmem:[%s3087_s10 + $0xb0] sm:$0xf]  ;;  %v1205_v35 = vshll.u32 %v2312_v30, 16 }
  0x31   : > { %2740 = vmatprep.subr.bf16.mxu0 %v2946_v31  ;;  %2654 = vmatprep.mubr.bf16.mxu1 %v2959_v32  ;;  %v2314_v32 = vld [vmem:[%s3087_s10 + $0xbc] sm:$0x1]  ;;  %v1196_v33 = vshrl.u32 %v2311_v27, 16  ;;  %v1199_v34 = vshll.u32 %v2311_v27, 16  ;;  %v539_v27 = vshll.u32 %v499_v17, 16 }
  0x32   : > { %2750 = vmatprep.mubr.bf16.mxu0 %v2335_v11  ;;  %v1219_v39 = vshll.u32 %v2314_v32, 16  ;;  %v1207_v44 = vrot.slane %v1205_v35, 5  ;;  %v496_v11 = vld [vmem:[%s3087_s10] sm:$0xf]  ;;  %v2971_v32 = vld [vmem:[%s3412_s1 + $0xa8] sm:$0xff]  }
  0x33   : > { %2645 = vmatpush3.bf16.msra.mxu1 %v2945_v28  ;;  %v2336_v28 = vcombine.low %v1180_v22, %v1194_v23  ;;  %v1198_v40 = vrot.slane %v1196_v33, 4  ;;  %v1201_v41 = vrot.slane %v1199_v34, 5  ;;  %v516_v18 = vshrl.u32 %v496_v11, 16  ;;  %v507_v17 = vld [vmem:[%s3087_s10 + $0x2c] sm:$0x1] }
  0x34   : > { %2741 = vmatpush3.bf16.msra.mxu0 %v2946_v31  ;;  %2646 = vmatprep.subr.bf16.mxu1 %v2947_v38  ;;  %v2313_v31 = vld [vmem:[%s3087_s10 + $0xb8] sm:$0xf]  ;;  %v1221_v46 = vrot.slane %v1219_v39, 5  ;;  %v530_v22 = vshrl.u32 %v498_v16, 16  ;;  %v533_v23 = vshll.u32 %v498_v16, 16 }
  0x35   : > { %2742 = vmatprep.subr.bf16.mxu0 %v2948_v43  ;;  %v1210_v36 = vshrl.u32 %v2313_v31, 16  ;;  %v506_v16 = vld [vmem:[%s3087_s10 + $0x28] sm:$0xf] }
  0x36   : > { %v532_v30 = vrot.slane %v530_v22, 4  ;;  %v586_v22 = vshrl.u32 %v506_v16, 16 }
  0x37   : > { %2647 = vmatpush3.bf16.msra.mxu1 %v2947_v38  ;;  %v1213_v38 = vshll.u32 %v2313_v31, 16  ;;  %v1212_v42 = vrot.slane %v1210_v36, 4  ;;  %v535_v31 = vrot.slane %v533_v23, 5  ;;  %v541_v36 = vrot.slane %v539_v27, 5 }
  0x38   : > { %2743 = vmatpush3.bf16.msra.mxu0 %v2948_v43  ;;  %2648 = vmatprep.subr.bf16.mxu1 %v2949_v47  ;;  %v2965_v43 = vld [vmem:[%s3412_s1 + $0x90] sm:$0xff]   ;;  %v589_v23 = vshll.u32 %v506_v16, 16  ;;  %v2420_v16 = vld [vmem:[%s3087_s10 + $0xc] sm:$0x1] }
  0x39   : > { %2744 = vmatprep.subr.bf16.mxu0 %v2950_v50  ;;  %v1215_v45 = vrot.slane %v1213_v38, 5  ;;  %v2972_v38 = vld [vmem:[%s3412_s1 + $0x1a8] sm:$0xff]  }
  0x3b   : > { %2649 = vmatpush3.bf16.msra.mxu1 %v2949_v47  ;;  %v1202_v47 = vor.u32 %v1201_v41, %v1198_v40  ;;  %v1216_v54 = vor.u32 %v1215_v45, %v1212_v42  ;;  %v536_v40 = vor.u32 %v535_v31, %v532_v30  ;;  %v500_v41 = vld [vmem:[%s3087_s10 + $0x10] sm:$0xf]  ;;  %v591_v31 = vrot.slane %v589_v23, 5 }
  0x3c   : > { %2745 = vmatpush3.bf16.msra.mxu0 %v2950_v50  ;;  %2650 = vmatprep.subr.bf16.mxu1 %v2952_v2  ;;  %v2316_v50 = vld [vmem:[%s3087_s10 + $0xc4] sm:$0x1]  ;;  %v544_v45 = vshrl.u32 %v500_v41, 16  ;;  %v508_v30 = vld [vmem:[%s3087_s10 + $0x30] sm:$0xf] }
  0x3d   : > { %2746 = vmatprep.subr.bf16.mxu0 %v2954_v6  ;;  %v1233_v58 = vshll.u32 %v2316_v50, 16  ;;  %v1203_v60 = vrot.slane %v1202_v47, 4  ;;  %v1217_v0 = vrot.slane %v1216_v54, 4  ;;  %v503_v47 = vld [vmem:[%s3087_s10 + $0x1c] sm:$0x1] }
  0x3f   : > { %2651 = vmatpush3.bf16.msra.mxu1 %v2952_v2  ;;  %v1229_v2 = vrot.slane %v1227_v57, 5  ;;  %v1235_v3 = vrot.slane %v1233_v58, 5  ;;  %v1208_v5 = vsel %vm3158_vm2, %v1203_v60, %v1207_v44  ;;  %v1222_v9 = vsel %vm3158_vm2, %v1217_v0, %v1221_v46  ;;  %v502_v44 = vld [vmem:[%s3087_s10 + $0x18] sm:$0xf]  ;;  %v2975_v60 = vld [vmem:[%s3412_s1 + $0x1b0] sm:$0xff]  }
  0x40   : > { %2747 = vmatpush3.bf16.msra.mxu0 %v2954_v6  ;;  %2652 = vmatprep.subr.bf16.mxu1 %v2957_v14  ;;  %v1240_v6 = vrot.slane %v1238_v61, 4  ;;  %v537_v46 = vrot.slane %v536_v40, 4  ;;  %v558_v50 = vshrl.u32 %v502_v44, 16  ;;  %v561_v54 = vshll.u32 %v502_v44, 16 }
  0x41   : > { %2748 = vmatprep.subr.bf16.mxu0 %v2958_v19  ;;  %v1230_v10 = vor.u32 %v1229_v2, %v1226_v1  ;;  %v567_v58 = vshll.u32 %v503_v47, 16 }
  0x42   : > { %v1244_v15 = vor.u32 %v1243_v7, %v1240_v6  ;;  %v542_v55 = vsel %vm3158_vm2, %v537_v46, %v541_v36  ;;  %v560_v57 = vrot.slane %v558_v50, 4  ;;  %v563_v63 = vrot.slane %v561_v54, 5  ;;  %v2978_v6 = vld [vmem:[%s3412_s1 + $0x1b8] sm:$0xff]   ;;  %v2979_v7 = vld [vmem:[%s3412_s1 + $0xc0] sm:$0xff]  }
  0x43   : > { %2653 = vmatpush3.bf16.msra.mxu1 %v2957_v14  ;;  %v2337_v14 = vcombine.low %v1208_v5, %v1222_v9  ;;  %v1231_v20 = vrot.slane %v1230_v10, 4  ;;  %v2981_v10 = vld [vmem:[%s3412_s1 + $0x1c0] sm:$0xff]   ;;  %v2987_v50 = vld [vmem:[%s3412_s1 + $0xd8] sm:$0xff]  }
  0x44   : > { %2749 = vmatpush3.bf16.msra.mxu0 %v2958_v19  ;;  %2662 = vmatprep.subr.bf16.mxu1 %v2960_v21  ;;  %v519_v19 = vshll.u32 %v496_v11, 16  ;;  %v564_v1 = vor.u32 %v563_v63, %v560_v57  ;;  %v2982_v11 = vld [vmem:[%s3087_s10 + $0x18] ss:$8 sps:$4 sm:$0xff]  }
  0x45   : > { %2758 = vmatprep.subr.bf16.mxu0 %v2961_v24 }
  0x46   : > { %2655 = vmatmul.mubr.bf16.vlgmr.msra.gmra.mrb[0].mxu1 %v2962_v25  ;;  %v518_v25 = vrot.slane %v516_v18, 4  ;;  %v565_v5 = vrot.slane %v564_v1, 4  ;;  %v2984_v18 = vld [vmem:[%s3412_s1 + $0x1c8] sm:$0xff]   ;;  %v2989_v1 = vld [vmem:[%s3412_s1 + $0xe0] sm:$0xff]  }
  0x47   : > { %2663 = vmatpush3.bf16.msra.mxu1 %v2960_v21  ;;  %2751 = vmatmul.mubr.bf16.vlgmr.msra.gmra.mrb[0].mxu0 %v2336_v28  ;;  %v525_v21 = vshll.u32 %v497_v12, 16  ;;  %v2970_v28 = vld [vmem:[%s3412_s1 + $0x1a0] sm:$0xff]  }
  0x48   : > { %2759 = vmatpush3.bf16.msra.mxu0 %v2961_v24  ;;  %2664 = vmatprep.subr.bf16.mxu1 %v2963_v26  ;;  %v1245_v24 = vrot.slane %v1244_v15, 4  ;;  %v504_v12 = vld [vmem:[%s3087_s10 + $0x20] sm:$0xf]  ;;  %v505_v15 = vld [vmem:[%s3087_s10 + $0x24] sm:$0x1] }
  0x49   : > { %2760 = vmatprep.subr.bf16.mxu0 %v2964_v29  ;;  %2658 = vmatprep.mubr.bf16.mxu1 %v2973_v37  ;;  %v527_v35 = vrot.slane %v525_v21, 5  ;;  %v2980_v37 = vld [vmem:[%s3087_s10 + $0x8] ss:$8 sps:$4 sm:$0xff]   ;;  %v581_v21 = vshll.u32 %v505_v15, 16 }
  0x4a   : > { %2754 = vmatprep.mubr.bf16.mxu0 %v2337_v14  ;;  %v1250_v33 = vsel %vm3158_vm2, %v1245_v24, %v1249_v8  ;;  %v2983_v14 = vld [vmem:[%s3412_s1 + $0xc8] sm:$0xff]   ;;  %v595_v24 = vshll.u32 %v507_v17, 16  ;;  %v2421_v17 = vld [vmem:[%s3087_s10 + $0x10] sm:$0xf] }
  0x4b   : > { %2665 = vmatpush3.bf16.msra.mxu1 %v2963_v26  ;;  %v521_v26 = vrot.slane %v519_v19, 5  ;;  %v572_v19 = vshrl.u32 %v504_v12, 16  ;;  %v2419_v15 = vld [vmem:[%s3087_s10 + $0x8] sm:$0xf]  ;;  %v1781_v23 = vshll.u32 %v2421_v17, 16 }
  0x4c   : > { %2761 = vmatpush3.bf16.msra.mxu0 %v2964_v29  ;;  %2666 = vmatprep.subr.bf16.mxu1 %v2965_v43  ;;  %v1236_v29 = vsel %vm3158_vm2, %v1231_v20, %v1235_v3  ;;  %v569_v3 = vrot.slane %v567_v58, 5  ;;  %v575_v20 = vshll.u32 %v504_v12, 16  ;;  %v2995_v58 = vld [vmem:[%s3087_s10 + $0x38] ss:$8 sps:$4 sm:$0xff]  }
  0x4d   : > { %2762 = vmatprep.subr.bf16.mxu0 %v2966_v52  ;;  %v522_v34 = vor.u32 %v521_v26, %v518_v25  ;;  %v2338_v39 = vcombine.low %v1236_v29, %v1250_v33  ;;  %v2993_v25 = vld [vmem:[%s3087_s10 + $0x28] ss:$8 sps:$4 sm:$0xff]   ;;  %v574_v26 = vrot.slane %v572_v19, 4  ;;  %v588_v29 = vrot.slane %v586_v22, 4  ;;  %v509_v33 = vld [vmem:[%s3087_s10 + $0x34] sm:$0x1] }
  0x4e   : > { %2659 = vmatmul.mubr.bf16.gmra.mrb[4].mxu1 %v2976_v48  ;;  %v547_v48 = vshll.u32 %v500_v41, 16  ;;  %v570_v9 = vsel %vm3158_vm2, %v565_v5, %v569_v3  ;;  %v577_v27 = vrot.slane %v575_v20, 5  ;;  %v609_v40 = vshll.u32 %v509_v33, 16  ;;  %v2986_v41 = vld [vmem:[%s3412_s1 + $0x1d0] sm:$0xff]   ;;  %v2990_v5 = vld [vmem:[%s3412_s1 + $0x1e0] sm:$0xff]   ;;  %v2997_v12 = vld [vmem:[%s3412_s1 + $0xf8] sm:$0xff]  }
  0x4f   : > { %2667 = vmatpush3.bf16.msra.mxu1 %v2965_v43  ;;  %v523_v42 = vrot.slane %v522_v34, 4  ;;  %v501_v43 = vld [vmem:[%s3087_s10 + $0x14] sm:$0x1]  ;;  %2755 = vmatmul.mubr.bf16.gmra.mrb[4].mxu0 %v2338_v39  ;;  %v510_v34 = vld [vmem:[%s3087_s10 + $0x38] sm:$0xf]  ;;  %v603_v39 = vshll.u32 %v508_v30, 16 }
  0x50   : > { %2763 = vmatpush3.bf16.msra.mxu0 %v2966_v52  ;;  %2668 = vmatprep.subr.bf16.mxu1 %v2967_v59  ;;  %v553_v49 = vshll.u32 %v501_v43, 16  ;;  %v546_v52 = vrot.slane %v544_v45, 4  ;;  %v549_v56 = vrot.slane %v547_v48, 5  ;;  %v578_v36 = vor.u32 %v577_v27, %v574_v26  ;;  %v2430_v33 = vld [vmem:[%s3087_s10 + $0x34] sm:$0x1] }
  0x51   : > { %2764 = vmatprep.subr.bf16.mxu0 %v2968_v4  ;;  %v528_v51 = vsel %vm3158_vm2, %v523_v42, %v527_v35  ;;  %2774 = vmatprep.mubr.bf16.mxu0 %v2980_v37  ;;  %v2985_v35 = vld [vmem:[%s3412_s1 + $0xd0] sm:$0xff]   ;;  %v511_v37 = vld [vmem:[%s3087_s10 + $0x3c] sm:$0x1]  ;;  %v592_v42 = vor.u32 %v591_v31, %v588_v29  ;;  %v614_v43 = vshrl.u32 %v510_v34, 16  ;;  %v617_v44 = vshll.u32 %v510_v34, 16 }
  0x52   : > { %v2219_v61 = vcombine.low %v528_v51, %v542_v55  ;;  %v555_v62 = vrot.slane %v553_v49, 5  ;;  %v550_v0 = vor.u32 %v549_v56, %v546_v52  ;;  %v623_v45 = vshll.u32 %v511_v37, 16  ;;  %v2429_v29 = vld [vmem:[%s3087_s10 + $0x30] sm:$0xf]  ;;  %v3002_v34 = vld [vmem:[%s3087_s10 + $0x60] ss:$8 sps:$4 sm:$0xff]  }
  0x53   : > { %2669 = vmatpush3.bf16.msra.mxu1 %v2967_v59  ;;  %v2974_v59 = vld [vmem:[%s3412_s1 + $0xb0] sm:$0xff]   ;;  %v579_v46 = vrot.slane %v578_v36, 4  ;;  %v605_v48 = vrot.slane %v603_v39, 5  ;;  %v611_v49 = vrot.slane %v609_v40, 5  ;;  %v593_v51 = vrot.slane %v592_v42, 4  ;;  %v3004_v39 = vld [vmem:[%s3412_s1 + $0x208] sm:$0xff]  }
  0x54   : > { %2765 = vmatpush3.bf16.msra.mxu0 %v2968_v4  ;;  %2670 = vmatprep.subr.bf16.mxu1 %v2969_v13  ;;  %v551_v2 = vrot.slane %v550_v0, 4  ;;  %v2977_v4 = vld [vmem:[%s3412_s1 + $0xb8] sm:$0xff]   ;;  %v616_v52 = vrot.slane %v614_v43, 4  ;;  %v619_v54 = vrot.slane %v617_v44, 5  ;;  %v625_v55 = vrot.slane %v623_v45, 5 }
  0x55   : > { %2766 = vmatprep.subr.bf16.mxu0 %v2970_v28  ;;  %2678 = vmatprep.mubr.bf16.mxu1 %v2219_v61  ;;  %v2988_v61 = vld [vmem:[%s3412_s1 + $0x1d8] sm:$0xff]   ;;  %v1764_v19 = vshrl.u32 %v2419_v15, 16  ;;  %v1767_v20 = vshll.u32 %v2419_v15, 16  ;;  %v1778_v22 = vshrl.u32 %v2421_v17, 16  ;;  %v1837_v42 = vshll.u32 %v2429_v29, 16  ;;  %v3011_v15 = vld [vmem:[%s3412_s1 + $0x220] sm:$0xff]  }
  0x56   : > { %v556_v8 = vsel %vm3158_vm2, %v551_v2, %v555_v62  ;;  %v1843_v43 = vshll.u32 %v2430_v33, 16  ;;  %v3005_v44 = vld [vmem:[%s3087_s10 + $0xb0] ss:$8 sps:$4 sm:$0xff]  }
  0x57   : > { %2671 = vmatpush3.bf16.msra.mxu1 %v2969_v13  ;;  %v2220_v13 = vcombine.low %v556_v8, %v570_v9  ;;  %v2991_v8 = vld [vmem:[%s3412_s1 + $0xe8] sm:$0xff]   ;;  %v1766_v26 = vrot.slane %v1764_v19, 4  ;;  %v1769_v27 = vrot.slane %v1767_v20, 5  ;;  %v1780_v31 = vrot.slane %v1778_v22, 4 }
  0x58   : > { %2767 = vmatpush3.bf16.msra.mxu0 %v2970_v28  ;;  %2672 = vmatprep.subr.bf16.mxu1 %v2971_v32  ;;  %v583_v28 = vrot.slane %v581_v21, 5  ;;  %v2992_v9 = vld [vmem:[%s3412_s1 + $0x1e8] sm:$0xff]   ;;  %v1773_v21 = vshll.u32 %v2420_v16, 16 }
  0x59   : > { %2768 = vmatprep.subr.bf16.mxu0 %v2972_v38  ;;  %v3012_v20 = vld [vmem:[%s3412_s1 + $0x228] sm:$0xff]  }
  0x5a   : > { %v584_v56 = vsel %vm3158_vm2, %v579_v46, %v583_v28  ;;  %v2428_v28 = vld [vmem:[%s3087_s10 + $0x2c] sm:$0x1]  ;;  %v1775_v45 = vrot.slane %v1773_v21, 5  ;;  %v2432_v21 = vld [vmem:[%s3087_s10 + $0x3c] sm:$0x1] }
  0x5b   : > { %2673 = vmatpush3.bf16.msra.mxu1 %v2971_v32  ;;  %v597_v32 = vrot.slane %v595_v24, 5 }
  0x5c   : > { %2769 = vmatpush3.bf16.msra.mxu0 %v2972_v38  ;;  %2674 = vmatprep.subr.bf16.mxu1 %v2974_v59  ;;  %v600_v38 = vshrl.u32 %v508_v30, 16  ;;  %v3001_v30 = vld [vmem:[%s3087_s10 + $0xa0] ss:$8 sps:$4 sm:$0xff]  }
  0x5d   : > { %2770 = vmatprep.subr.bf16.mxu0 %v2975_v60 }
  0x5e   : > { %v602_v47 = vrot.slane %v600_v38, 4  ;;  %v1829_v38 = vshll.u32 %v2428_v28, 16 }
  0x5f   : > { %2675 = vmatpush3.bf16.msra.mxu1 %v2974_v59  ;;  %v598_v59 = vsel %vm3158_vm2, %v593_v51, %v597_v32  ;;  %v1783_v32 = vrot.slane %v1781_v23, 5 }
  0x60   : > { %2771 = vmatpush3.bf16.msra.mxu0 %v2975_v60  ;;  %2676 = vmatprep.subr.bf16.mxu1 %v2977_v4  ;;  %v606_v57 = vor.u32 %v605_v48, %v602_v47  ;;  %v620_v60 = vor.u32 %v619_v54, %v616_v52  ;;  %v2221_v62 = vcombine.low %v584_v56, %v598_v59  ;;  %v1839_v54 = vrot.slane %v1837_v42, 5 }
  0x61   : > { %2772 = vmatprep.subr.bf16.mxu0 %v2978_v6  ;;  %v1784_v40 = vor.u32 %v1783_v32, %v1780_v31  ;;  %v1831_v56 = vrot.slane %v1829_v38, 5  ;;  %v1845_v59 = vrot.slane %v1843_v43, 5  ;;  %v2424_v31 = vld [vmem:[%s3087_s10 + $0x1c] sm:$0x1]  ;;  %v2426_v32 = vld [vmem:[%s3087_s10 + $0x24] sm:$0x1] }
  0x62   : > { %v607_v63 = vrot.slane %v606_v57, 4  ;;  %v621_v0 = vrot.slane %v620_v60, 4  ;;  %v3009_v57 = vld [vmem:[%s3412_s1 + $0x210] sm:$0xff]  }
  0x63   : > { %2677 = vmatpush3.bf16.msra.mxu1 %v2977_v4  ;;  %v3000_v4 = vld [vmem:[%s3087_s10 + $0x50] ss:$8 sps:$4 sm:$0xff]   ;;  %v1785_v51 = vrot.slane %v1784_v40, 4 }
  0x64   : > { %2773 = vmatpush3.bf16.msra.mxu0 %v2978_v6  ;;  %2686 = vmatprep.subr.bf16.mxu1 %v2979_v7  ;;  %v612_v2 = vsel %vm3158_vm2, %v607_v63, %v611_v49  ;;  %v626_v3 = vsel %vm3158_vm2, %v621_v0, %v625_v55  ;;  %v3006_v49 = vld [vmem:[%s3087_s10 + $0x70] ss:$8 sps:$4 sm:$0xff]  }
  0x65   : > { %2782 = vmatprep.subr.bf16.mxu0 %v2981_v10  ;;  %v2222_v6 = vcombine.low %v612_v2, %v626_v3  ;;  %v3010_v3 = vld [vmem:[%s3412_s1 + $0x218] sm:$0xff]  }
  0x66   : > { %2679 = vmatmul.mubr.bf16.vlgmr.msra.gmra.mrb[0].mxu1 %v2220_v13  ;;  %v2998_v13 = vld [vmem:[%s3412_s1 + $0x1f8] sm:$0xff]  }
  0x67   : > { %2687 = vmatpush3.bf16.msra.mxu1 %v2979_v7  ;;  %2775 = vmatmul.mubr.bf16.vlgmr.msra.gmra.mrb[0].mxu0 %v2982_v11  ;;  %v2999_v7 = vld [vmem:[%s3087_s10 + $0x90] ss:$8 sps:$4 sm:$0xff]  }
  0x68   : > { %2783 = vmatpush3.bf16.msra.mxu0 %v2981_v10  ;;  %2688 = vmatprep.subr.bf16.mxu1 %v2983_v14  ;;  %v2994_v10 = vld [vmem:[%s3412_s1 + $0xf0] sm:$0xff]  }
  0x69   : > { %2784 = vmatprep.subr.bf16.mxu0 %v2984_v18  ;;  %2778 = vmatprep.mubr.bf16.mxu0 %v2993_v25  ;;  %v2996_v11 = vld [vmem:[%s3412_s1 + $0x1f0] sm:$0xff]   ;;  %v2427_v25 = vld [vmem:[%s3087_s10 + $0x28] sm:$0xf] }
  0x6a   : > { %2682 = vmatprep.mubr.bf16.mxu1 %v2221_v62  ;;  %v1820_v36 = vshrl.u32 %v2427_v25, 16  ;;  %v1823_v37 = vshll.u32 %v2427_v25, 16 }
  0x6b   : > { %2689 = vmatpush3.bf16.msra.mxu1 %v2983_v14  ;;  %v3003_v14 = vld [vmem:[%s3412_s1 + $0x200] sm:$0xff]  }
  0x6c   : > { %2785 = vmatpush3.bf16.msra.mxu0 %v2984_v18  ;;  %2690 = vmatprep.subr.bf16.mxu1 %v2985_v35  ;;  %v2422_v18 = vld [vmem:[%s3087_s10 + $0x14] sm:$0x1]  ;;  %v1822_v47 = vrot.slane %v1820_v36, 4  ;;  %v1825_v48 = vrot.slane %v1823_v37, 5 }
  0x6d   : > { %2786 = vmatprep.subr.bf16.mxu0 %v2986_v41  ;;  %v1787_v24 = vshll.u32 %v2422_v18, 16  ;;  %v3013_v37 = vld [vmem:[%s3412_s1 + $0x230] sm:$0xff]  }
  0x6e   : > { %2683 = vmatmul.mubr.bf16.gmra.mrb[4].mxu1 %v2222_v6  ;;  %v1826_v55 = vor.u32 %v1825_v48, %v1822_v47  ;;  %v2433_v6 = vld [vmem:[%s3087_s10 + $0x40] sm:$0xf] }
  0x6f   : > { %2691 = vmatpush3.bf16.msra.mxu1 %v2985_v35  ;;  %2779 = vmatmul.mubr.bf16.gmra.mrb[4].mxu0 %v2995_v58  ;;  %v1770_v35 = vor.u32 %v1769_v27, %v1766_v26  ;;  %v1789_v46 = vrot.slane %v1787_v24, 5 }
  0x70   : > { %2787 = vmatpush3.bf16.msra.mxu0 %v2986_v41  ;;  %2692 = vmatprep.subr.bf16.mxu1 %v2987_v50  ;;  %v1834_v41 = vshrl.u32 %v2429_v29, 16  ;;  %v1827_v60 = vrot.slane %v1826_v55, 4 }
  0x71   : > { %2788 = vmatprep.subr.bf16.mxu0 %v2988_v61  ;;  %2798 = vmatprep.mubr.bf16.mxu0 %v3000_v4  ;;  %v1790_v63 = vsel %vm3158_vm2, %v1785_v51, %v1789_v46  ;;  %v3014_v46 = vld [vmem:[%s3412_s1 + $0x238] sm:$0xff]  }
  0x72   : > { %2702 = vmatprep.mubr.bf16.mxu1 %v2999_v7  ;;  %v1836_v52 = vrot.slane %v1834_v41, 4  ;;  %v1832_v2 = vsel %vm3158_vm2, %v1827_v60, %v1831_v56  ;;  %v1815_v41 = vshll.u32 %v2426_v32, 16 }
  0x73   : > { %2693 = vmatpush3.bf16.msra.mxu1 %v2987_v50  ;;  %v1771_v50 = vrot.slane %v1770_v35, 4 }
  0x74   : > { %2789 = vmatpush3.bf16.msra.mxu0 %v2988_v61  ;;  %2694 = vmatprep.subr.bf16.mxu1 %v2989_v1  ;;  %v1840_v58 = vor.u32 %v1839_v54, %v1836_v52  ;;  %v3007_v61 = vld [vmem:[%s3087_s10 + $0xc0] ss:$8 sps:$4 sm:$0xff]  }
  0x75   : > { %2790 = vmatprep.subr.bf16.mxu0 %v2990_v5  ;;  %v1776_v62 = vsel %vm3158_vm2, %v1771_v50, %v1775_v45  ;;  %v1817_v50 = vrot.slane %v1815_v41, 5 }
  0x76   : > { %v1841_v0 = vrot.slane %v1840_v58, 4  ;;  %v2451_v7 = vcombine.low %v1776_v62, %v1790_v63 }
  0x77   : > { %2695 = vmatpush3.bf16.msra.mxu1 %v2989_v1  ;;  %v3008_v1 = vld [vmem:[%s3087_s10 + $0x80] ss:$8 sps:$4 sm:$0xff]  }
  0x78   : > { %2791 = vmatpush3.bf16.msra.mxu0 %v2990_v5  ;;  %2696 = vmatprep.subr.bf16.mxu1 %v2991_v8  ;;  %v1846_v4 = vsel %vm3158_vm2, %v1841_v0, %v1845_v59  ;;  %v2431_v5 = vld [vmem:[%s3087_s10 + $0x38] sm:$0xf] }
  0x79   : > { %2792 = vmatprep.subr.bf16.mxu0 %v2992_v9 }
  0x7b   : > { %2697 = vmatpush3.bf16.msra.mxu1 %v2991_v8  ;;  %v2423_v8 = vld [vmem:[%s3087_s10 + $0x18] sm:$0xf] }
  0x7c   : > { %2793 = vmatpush3.bf16.msra.mxu0 %v2992_v9  ;;  %2698 = vmatprep.subr.bf16.mxu1 %v2994_v10  ;;  %v2425_v9 = vld [vmem:[%s3087_s10 + $0x20] sm:$0xf]  ;;  %v1792_v16 = vshrl.u32 %v2423_v8, 16  ;;  %v1795_v17 = vshll.u32 %v2423_v8, 16 }
  0x7d   : > { %2794 = vmatprep.subr.bf16.mxu0 %v2996_v11  ;;  %v1806_v18 = vshrl.u32 %v2425_v9, 16  ;;  %v1809_v19 = vshll.u32 %v2425_v9, 16  ;;  %v2463_v9 = vld [vmem:[%s3413_s2] ss:$0 sm:$0xff] }
  0x7e   : > { %v1794_v26 = vrot.slane %v1792_v16, 4  ;;  %v1797_v27 = vrot.slane %v1795_v17, 5 }
  0x7f   : > { %2699 = vmatpush3.bf16.msra.mxu1 %v2994_v10  ;;  %v2453_v10 = vcombine.low %v1832_v2, %v1846_v4  ;;  %v1808_v28 = vrot.slane %v1806_v18, 4  ;;  %v1811_v29 = vrot.slane %v1809_v19, 5 }
  0x80   : > { %2795 = vmatpush3.bf16.msra.mxu0 %v2996_v11  ;;  %2700 = vmatprep.subr.bf16.mxu1 %v2997_v12  ;;  %v1848_v11 = vshrl.u32 %v2431_v5, 16  ;;  %v1798_v38 = vor.u32 %v1797_v27, %v1794_v26 }
  0x81   : > { %2796 = vmatprep.subr.bf16.mxu0 %v2998_v13  ;;  %v1812_v40 = vor.u32 %v1811_v29, %v1808_v28 }
  0x82   : > { %v1850_v22 = vrot.slane %v1848_v11, 4  ;;  %v1799_v47 = vrot.slane %v1798_v38, 4 }
  0x83   : > { %2701 = vmatpush3.bf16.msra.mxu1 %v2997_v12  ;;  %v1851_v12 = vshll.u32 %v2431_v5, 16 }
  0x84   : > { %2797 = vmatpush3.bf16.msra.mxu0 %v2998_v13  ;;  %2830 = vmatprep.subr.bf16.mxu1 %v3003_v14  ;;  %v1862_v13 = vshrl.u32 %v2433_v6, 16 }
  0x85   : > { %2806 = vmatprep.subr.bf16.mxu0 %v3003_v14  ;;  %v1853_v23 = vrot.slane %v1851_v12, 5 }
  0x86   : > { %2703 = vmatmul.mubr.bf16.vlgmr.msra.gmra.mrb[0].mxu1 %v3001_v30  ;;  %v1864_v24 = vrot.slane %v1862_v13, 4  ;;  %v2434_v30 = vld [vmem:[%s3087_s10 + $0x44] sm:$0x1] }
  0x87   : > { %2799 = vmatmul.mubr.bf16.vlgmr.msra.gmra.mrb[0].mxu0 %v3002_v34  ;;  %2838 = vmatpush3.bf16.msra.mxu1 %v3003_v14  ;;  %v1854_v33 = vor.u32 %v1853_v23, %v1850_v22  ;;  %v1857_v34 = vshll.u32 %v2432_v21, 16  ;;  %v1871_v36 = vshll.u32 %v2434_v30, 16 }
  0x88   : > { %2807 = vmatpush3.bf16.msra.mxu0 %v3003_v14  ;;  %2831 = vmatprep.subr.bf16.mxu1 %v3004_v39  ;;  %v1865_v14 = vshll.u32 %v2433_v6, 16 }
  0x89   : > { %2808 = vmatprep.subr.bf16.mxu0 %v3004_v39  ;;  %2706 = vmatprep.mubr.bf16.mxu1 %v3005_v44  ;;  %v1855_v42 = vrot.slane %v1854_v33, 4  ;;  %v1859_v43 = vrot.slane %v1857_v34, 5  ;;  %v1873_v45 = vrot.slane %v1871_v36, 5 }
  0x8a   : > { %2802 = vmatprep.mubr.bf16.mxu0 %v3006_v49  ;;  %v1867_v25 = vrot.slane %v1865_v14, 5  ;;  %v1813_v49 = vrot.slane %v1812_v40, 4 }
  0x8b   : > { %2839 = vmatpush3.bf16.msra.mxu1 %v3004_v39  ;;  %v1860_v51 = vsel %vm3158_vm2, %v1855_v42, %v1859_v43 }
  0x8c   : > { %2809 = vmatpush3.bf16.msra.mxu0 %v3004_v39  ;;  %2832 = vmatprep.subr.bf16.mxu1 %v3009_v57  ;;  %v1868_v35 = vor.u32 %v1867_v25, %v1864_v24  ;;  %v1801_v39 = vshll.u32 %v2424_v31, 16  ;;  %v1818_v55 = vsel %vm3158_vm2, %v1813_v49, %v1817_v50 }
  0x8d   : > { %2810 = vmatprep.subr.bf16.mxu0 %v3009_v57 }
  0x8e   : > { %2707 = vmatmul.mubr.bf16.gmra.mrb[4].mxu1 %v3007_v61  ;;  %v1869_v44 = vrot.slane %v1868_v35, 4  ;;  %v1803_v48 = vrot.slane %v1801_v39, 5 }
  0x8f   : > { %2803 = vmatmul.mubr.bf16.gmra.mrb[4].mxu0 %v3008_v1  ;;  %2840 = vmatpush3.bf16.msra.mxu1 %v3009_v57 }
  0x90   : > { %2811 = vmatpush3.bf16.msra.mxu0 %v3009_v57  ;;  %2833 = vmatprep.subr.bf16.mxu1 %v3010_v3  ;;  %v1874_v52 = vsel %vm3158_vm2, %v1869_v44, %v1873_v45  ;;  %v1804_v54 = vsel %vm3158_vm2, %v1799_v47, %v1803_v48 }
  0x91   : > { %2812 = vmatprep.subr.bf16.mxu0 %v3010_v3  ;;  %2822 = vmatprep.mubr.bf16.mxu0 %v2451_v7  ;;  %v2454_v56 = vcombine.low %v1860_v51, %v1874_v52  ;;  %v2452_v57 = vcombine.low %v1804_v54, %v1818_v55 }
  0x92   : > { %2826 = vmatprep.mubr.bf16.mxu1 %v2453_v10 }
  0x93   : > { %2841 = vmatpush3.bf16.msra.mxu1 %v3010_v3 }
  0x94   : > { %2813 = vmatpush3.bf16.msra.mxu0 %v3010_v3  ;;  %2834 = vmatprep.subr.bf16.mxu1 %v3011_v15 }
  0x95   : > { %2814 = vmatprep.subr.bf16.mxu0 %v3011_v15 }
  0x97   : > { %2842 = vmatpush3.bf16.msra.mxu1 %v3011_v15 }
  0x98   : > { %2815 = vmatpush3.bf16.msra.mxu0 %v3011_v15  ;;  %2835 = vmatprep.subr.bf16.mxu1 %v3012_v20 }
  0x99   : > { %2816 = vmatprep.subr.bf16.mxu0 %v3012_v20 }
  0x9b   : > { %2843 = vmatpush3.bf16.msra.mxu1 %v3012_v20 }
  0x9c   : > { %2817 = vmatpush3.bf16.msra.mxu0 %v3012_v20  ;;  %2836 = vmatprep.subr.bf16.mxu1 %v3013_v37 }
  0x9d   : > { %2818 = vmatprep.subr.bf16.mxu0 %v3013_v37 }
  0x9f   : > { %2844 = vmatpush3.bf16.msra.mxu1 %v3013_v37 }
  0xa0   : > { %2819 = vmatpush3.bf16.msra.mxu0 %v3013_v37  ;;  %2837 = vmatprep.subr.bf16.mxu1 %v3014_v46 }
  0xa1   : > { %2820 = vmatprep.subr.bf16.mxu0 %v3014_v46 }
  0xa3   : > { %2845 = vmatpush3.bf16.msra.mxu1 %v3014_v46 }
  0xa4   : > { %2821 = vmatpush3.bf16.msra.mxu0 %v3014_v46 }
  0xa6   : > { %2827 = vmatmul.mubr.bf16.vlgmr.msra.gmra.mrb[8].mxu1 %v2454_v56 }
  0xa7   : > { %2823 = vmatmul.mubr.bf16.vlgmr.msra.gmra.mrb[0].mxu0 %v2452_v57 }
 0x159   : > { %v2704_v58 = vpop.f32.mrb[0].mxu1 }
 0x15a   : > { %v913_v59 = vpop.f32.mrb[1].mxu1 }
 0x15b   : > { %v2705_v60 = vpop.f32.mrb[2].mxu1 }
 0x15c   : > { %v916_v61 = vpop.f32.mrb[3].mxu1 }
 0x161   : > { %v2708_v62 = vpop.f32.mrb[4].mxu1 }
 0x162   : > { %v2804_v63 = vpop.f32.mrb[4].mxu0  ;;  %v929_v0 = vpop.f32.mrb[5].mxu1 }
 0x163   : > { %v2850_v1 = vadd.f32 %v2804_v63, %v2708_v62  ;;  %v1724_v2 = vpop.f32.mrb[5].mxu0  ;;  %v2709_v3 = vpop.f32.mrb[6].mxu1 }
 0x164   : > { %v2852_v4 = vadd.f32 %v1724_v2, %v929_v0  ;;  %v2805_v53 = vpop.f32.mrb[6].mxu0  ;;  %v932_v5 = vpop.f32.mrb[7].mxu1 }
 0x165   : > { %v2854_v6 = vadd.f32 %v2805_v53, %v2709_v3  ;;  %v1727_v7 = vpop.f32.mrb[7].mxu0 }
 0x166   : > { %v2856_v8 = vadd.f32 %v1727_v7, %v932_v5 }
 0x179   : > { %v2828_v10 = vpop.f32.mrb[8].mxu1 }
 0x17a   : > { %v2824_v11 = vpop.f32.mrb[0].mxu0  ;;  %v2851_v12 = vadd.f32 %v2850_v1, %v2828_v10  ;;  %v2006_v13 = vpop.f32.mrb[9].mxu1 }
 0x17b   : > { %v2846_v14 = vadd.f32 %v2824_v11, %v2704_v58  ;;  %v1990_v15 = vpop.f32.mrb[1].mxu0  ;;  %v2853_v16 = vadd.f32 %v2852_v4, %v2006_v13  ;;  %v2829_v17 = vpop.f32.mrb[10].mxu1 }
 0x17c   : > { %v2042_v18 = vadd.f32 %v2851_v12, %v2463_v9  ;;  %v2847_v19 = vadd.f32 %v1990_v15, %v913_v59  ;;  %v2825_v20 = vpop.f32.mrb[2].mxu0  ;;  %v2855_v21 = vadd.f32 %v2854_v6, %v2829_v17  ;;  %v2009_v22 = vpop.f32.mrb[11].mxu1 }
 0x17d   : > { %v2038_v23 = vadd.f32 %v2846_v14, %v2463_v9  ;;  %v2040_v24 = vadd.f32 %v2853_v16, %v2463_v9  ;;  %v2848_v25 = vadd.f32 %v2825_v20, %v2705_v60  ;;  %v1993_v26 = vpop.f32.mrb[3].mxu0  ;;  %v2857_v27 = vadd.f32 %v2856_v8, %v2009_v22 }
 0x17e   : > { %v2036_v28 = vadd.f32 %v2847_v19, %v2463_v9  ;;  %v2043_v29 = vadd.f32 %v2855_v21, %v2463_v9  ;;  %v2849_v30 = vadd.f32 %v1993_v26, %v916_v61  ;;  %v2050_v33 = vmax.f32 %v2042_v18, 0.0 }
 0x17f   : > { %v2039_v31 = vadd.f32 %v2848_v25, %v2463_v9  ;;  %v2041_v32 = vadd.f32 %v2857_v27, %v2463_v9  ;;  %v2046_v36 = vmax.f32 %v2038_v23, 0.0  ;;  %v2048_v37 = vmax.f32 %v2040_v24, 0.0 }
 0x180   : > { %v2051_v34 = vmax.f32 %v2043_v29, 0.0  ;;  %v2037_v35 = vadd.f32 %v2849_v30, %v2463_v9  ;;  %v2044_v40 = vmax.f32 %v2036_v28, 0.0 }
 0x181   : > { %v2047_v38 = vmax.f32 %v2039_v31, 0.0  ;;  %v2049_v39 = vmax.f32 %v2041_v32, 0.0 }
 0x182   : > { %v2501_v41 = vpack.c.bf16 %v2051_v34, %v2050_v33  ;;  %v2045_v42 = vmax.f32 %v2037_v35, 0.0 }
 0x183   : > { %v2491_v43 = vpack.c.bf16 %v2047_v38, %v2046_v36  ;;  %v2496_v44 = vpack.c.bf16 %v2049_v39, %v2048_v37 }
 0x184   : > { %2505 = vst [vmem:[%s170_s21 + $0x18] sm:$0xff] %v2501_v41   ;;  %v2486_v45 = vpack.c.bf16 %v2045_v42, %v2044_v40 }
 0x185   : > { %2503 = vst [vmem:[%s170_s21 + $0x8] sm:$0xff] %v2491_v43   ;;  %2504 = vst [vmem:[%s170_s21 + $0x10] sm:$0xff] %v2496_v44  }
 0x186   : > { %2487 = vst [vmem:[%s170_s21] sm:$0xff] %v2486_v45  }
 0x187 PF: > { %s13_s12 = sadd.s32 1, %s3021_s12  }
 0x188   : > { %p10_p4 = scmp.ge.s32.totalorder %s13_s12, 4  }
 0x18a   :  { %12 = sbr.rel (!%p10_p4) target bundleno = 1 (0x1), region = 75 }

// kernel: custom_deeplabv3_forward.7
= control target key start
LH: loop header
LB: loop body
LE: loop exit
PB: predicated region body
PF: predicated region fallthrough
CT: control target
= control target key end

     0   :  { %vm97_vm0 = vcmask 1043456   ;;  %vm72_vm1 = vcmask 64512   ;;  %vm286_vm2 = vcmask 261120   ;;  %s1877_s2 = inlined_call_operand.vmem [shape: bf16[8,32], index: 2, kind: input, shape index: {}]   ;;  %s1878_s0 = inlined_call_operand.vmem [shape: bf16[16,8,8], index: 0, kind: input, shape index: {}]   ;;  %s1879_s1 = inlined_call_operand.vmem [shape: bf16[32,8], index: 1, kind: input, shape index: {}]   ;;  %s1880_s3 = inlined_call_operand.vmem [shape: f32[16,32,32], index: 3, kind: output, shape index: {}]  }
   0x1   :  { %v31_v0 = vld [vmem:[%s1877_s2] sm:$0xf]  ;;  %v1449_v3 = vld [vmem:[%s1878_s0 + $0x8] sm:$0xff]   ;;  %v1450_v4 = vld [vmem:[%s1878_s0 + $0x10] sm:$0xff]  }
   0x2   :  { %1431 = vmatprep.subr.msk.bf16.mxu0 %vm97_vm0, %v31_v0  ;;  %v99_v1 = vsel %vm97_vm0, %v31_v0, 0  ;;  %v1448_v2 = vld [vmem:[%s1878_s0] sm:$0xff]   ;;  %v1451_v5 = vld [vmem:[%s1878_s0 + $0x18] sm:$0xff]   ;;  %v1453_v7 = vld [vmem:[%s1878_s0 + $0x28] sm:$0xff]  }
   0x3   :  { %1318 = vmatpush3.bf16.msra.mxu0 %v99_v1  ;;  %1319 = vmatprep.mubr.msk.bf16.mxu0 %vm72_vm1, %v1448_v2  ;;  %v1452_v6 = vld [vmem:[%s1878_s0 + $0x20] sm:$0xff]   ;;  %v1454_v8 = vld [vmem:[%s1878_s0 + $0x30] sm:$0xff]   ;;  %v1455_v9 = vld [vmem:[%s1878_s0 + $0x38] sm:$0xff]  }
   0x4   :  { %v1518_v10 = vld [vmem:[%s1879_s1] sm:$0xff]   ;;  %v1529_v18 = vld [vmem:[%s1879_s1 + $0x8] sm:$0xff]  }
   0x5   :  { %1337 = vmatprep.mubr.msk.bf16.mxu1 %vm72_vm1, %v1518_v10 }
   0x6   :  { %1320 = vmatmul.mubr.msk.bf16.vlgmr.msra.gmra.mrb[0].mxu0 %vm72_vm1, %v1449_v3 }
   0x7   :  { %1323 = vmatprep.mubr.msk.bf16.mxu0 %vm72_vm1, %v1450_v4 }
   0xe   :  { %1324 = vmatmul.mubr.msk.bf16.gmra.mrb[4].mxu0 %vm72_vm1, %v1451_v5 }
   0xf   :  { %1327 = vmatprep.mubr.msk.bf16.mxu0 %vm72_vm1, %v1452_v6 }
  0x16   :  { %1328 = vmatmul.mubr.msk.bf16.gmra.mrb[8].mxu0 %vm72_vm1, %v1453_v7 }
  0x17   :  { %1331 = vmatprep.mubr.msk.bf16.mxu0 %vm72_vm1, %v1454_v8 }
  0x1e   :  { %1332 = vmatmul.mubr.msk.bf16.gmra.mrb[12].mxu0 %vm72_vm1, %v1455_v9 }
  0x1f   :  { %1361 = vmatprep.mubr.msk.bf16.mxu0 %vm72_vm1, %v1518_v10 }
  0xd9   :  { %v1321_v11 = vpop.f32.mrb[0].mxu0 }
  0xda   :  { %v135_v12 = vpop.f32.mrb[1].mxu0  ;;  %v200_v19 = vpack.c.bf16 %v1321_v11, %v1321_v11 }
  0xdb   :  { %v198_v13 = vpack.c.bf16 %v135_v12, %v135_v12  ;;  %v1322_v14 = vpop.f32.mrb[2].mxu0 }
  0xdc   :  { %v138_v15 = vpop.f32.mrb[3].mxu0  ;;  %v349_v29 = vsel %vm97_vm0, %v200_v19, 0  ;;  %v201_v30 = vpack.c.bf16 %v1322_v14, %v1322_v14 }
  0xdd   :  { %v199_v16 = vpack.c.bf16 %v138_v15, %v138_v15  ;;  %1432 = vmatprep.subr.msk.bf16.mxu1 %vm97_vm0, %v198_v13  ;;  %v235_v17 = vsel %vm97_vm0, %v198_v13, 0 }
  0xde   :  { %1336 = vmatpush3.bf16.msra.mxu1 %v235_v17  ;;  %v406_v39 = vsel %vm97_vm0, %v201_v30, 0 }
  0xdf   :  { %1433 = vmatprep.subr.msk.bf16.mxu1 %vm97_vm0, %v199_v16  ;;  %v292_v20 = vsel %vm97_vm0, %v199_v16, 0 }
  0xe1   :  { %v1325_v21 = vpop.f32.mrb[4].mxu0  ;;  %1338 = vmatmul.mubr.msk.bf16.vlgmr.msra.gmra.mrb[0].mxu1 %vm72_vm1, %v1529_v18 }
  0xe2   :  { %v151_v22 = vpop.f32.mrb[5].mxu0  ;;  %1342 = vmatpush3.bf16.msra.mxu1 %v292_v20  ;;  %1343 = vmatprep.mubr.msk.bf16.mxu1 %vm72_vm1, %v1518_v10  ;;  %v204_v23 = vpack.c.bf16 %v1325_v21, %v1325_v21 }
  0xe3   :  { %v202_v24 = vpack.c.bf16 %v151_v22, %v151_v22  ;;  %v1326_v25 = vpop.f32.mrb[6].mxu0  ;;  %1434 = vmatprep.subr.msk.bf16.mxu1 %vm97_vm0, %v200_v19 }
  0xe4   :  { %v154_v26 = vpop.f32.mrb[7].mxu0  ;;  %v577_v28 = vsel %vm97_vm0, %v204_v23, 0  ;;  %v205_v44 = vpack.c.bf16 %v1326_v25, %v1326_v25 }
  0xe5   :  { %v463_v27 = vsel %vm97_vm0, %v202_v24, 0  ;;  %1436 = vmatprep.subr.msk.bf16.mxu0 %vm97_vm0, %v202_v24  ;;  %v203_v36 = vpack.c.bf16 %v154_v26, %v154_v26 }
  0xe6   :  { %1360 = vmatpush3.bf16.msra.mxu0 %v463_v27  ;;  %v634_v51 = vsel %vm97_vm0, %v205_v44, 0 }
  0xe7   :  { %1438 = vmatprep.subr.msk.bf16.mxu0 %vm97_vm0, %v204_v23  ;;  %v520_v45 = vsel %vm97_vm0, %v203_v36, 0 }
  0xe9   :  { %1344 = vmatmul.mubr.msk.bf16.vlgmr.msra.gmra.mrb[4].mxu1 %vm72_vm1, %v1529_v18  ;;  %1362 = vmatmul.mubr.msk.bf16.vlgmr.msra.gmra.mrb[16].mxu0 %vm72_vm1, %v1529_v18  ;;  %v1329_v31 = vpop.f32.mrb[8].mxu0 }
  0xea   :  { %1348 = vmatpush3.bf16.msra.mxu1 %v349_v29  ;;  %1372 = vmatpush3.bf16.msra.mxu0 %v577_v28  ;;  %v167_v32 = vpop.f32.mrb[9].mxu0  ;;  %v208_v37 = vpack.c.bf16 %v1329_v31, %v1329_v31 }
  0xeb   :  { %1435 = vmatprep.subr.msk.bf16.mxu1 %vm97_vm0, %v201_v30  ;;  %1349 = vmatprep.mubr.msk.bf16.mxu1 %vm72_vm1, %v1518_v10  ;;  %v206_v33 = vpack.c.bf16 %v167_v32, %v167_v32  ;;  %v1330_v34 = vpop.f32.mrb[10].mxu0 }
  0xec   :  { %1373 = vmatprep.mubr.msk.bf16.mxu0 %vm72_vm1, %v1518_v10  ;;  %v170_v35 = vpop.f32.mrb[11].mxu0  ;;  %v805_v46 = vsel %vm97_vm0, %v208_v37, 0  ;;  %v209_v52 = vpack.c.bf16 %v1330_v34, %v1330_v34 }
  0xed   :  { %1440 = vmatprep.subr.msk.bf16.mxu0 %vm97_vm0, %v206_v33  ;;  %v691_v38 = vsel %vm97_vm0, %v206_v33, 0  ;;  %v207_v48 = vpack.c.bf16 %v170_v35, %v170_v35 }
  0xee   :  { %v862_v56 = vsel %vm97_vm0, %v209_v52, 0 }
  0xef   :  { %v748_v53 = vsel %vm97_vm0, %v207_v48, 0 }
  0xf1   :  { %1350 = vmatmul.mubr.msk.bf16.vlgmr.msra.gmra.mrb[8].mxu1 %vm72_vm1, %v1529_v18  ;;  %1374 = vmatmul.mubr.msk.bf16.vlgmr.msra.gmra.mrb[20].mxu0 %vm72_vm1, %v1529_v18  ;;  %v1333_v40 = vpop.f32.mrb[12].mxu0 }
  0xf2   :  { %1354 = vmatpush3.bf16.msra.mxu1 %v406_v39  ;;  %1355 = vmatprep.mubr.msk.bf16.mxu1 %vm72_vm1, %v1518_v10  ;;  %v183_v41 = vpop.f32.mrb[13].mxu0  ;;  %v212_v49 = vpack.c.bf16 %v1333_v40, %v1333_v40 }
  0xf3   :  { %1437 = vmatprep.subr.msk.bf16.mxu1 %vm97_vm0, %v203_v36  ;;  %1384 = vmatpush3.bf16.msra.mxu0 %v691_v38  ;;  %v1334_v42 = vpop.f32.mrb[14].mxu0  ;;  %v210_v47 = vpack.c.bf16 %v183_v41, %v183_v41 }
  0xf4   :  { %1385 = vmatprep.mubr.msk.bf16.mxu0 %vm72_vm1, %v1518_v10  ;;  %1442 = vmatprep.subr.msk.bf16.mxu0 %vm97_vm0, %v208_v37  ;;  %v186_v43 = vpop.f32.mrb[15].mxu0  ;;  %v1033_v54 = vsel %vm97_vm0, %v212_v49, 0  ;;  %v213_v57 = vpack.c.bf16 %v1334_v42, %v1334_v42 }
  0xf5   :  { %v919_v50 = vsel %vm97_vm0, %v210_v47, 0  ;;  %v211_v55 = vpack.c.bf16 %v186_v43, %v186_v43 }
  0xf6   :  { %v1090_v59 = vsel %vm97_vm0, %v213_v57, 0 }
  0xf7   :  { %v976_v58 = vsel %vm97_vm0, %v211_v55, 0 }
  0xf9   :  { %1356 = vmatmul.mubr.msk.bf16.vlgmr.msra.gmra.mrb[12].mxu1 %vm72_vm1, %v1529_v18  ;;  %1386 = vmatmul.mubr.msk.bf16.vlgmr.msra.gmra.mrb[24].mxu0 %vm72_vm1, %v1529_v18 }
  0xfa   :  { %1366 = vmatpush3.bf16.msra.mxu1 %v520_v45  ;;  %1367 = vmatprep.mubr.msk.bf16.mxu1 %vm72_vm1, %v1518_v10 }
  0xfb   :  { %1439 = vmatprep.subr.msk.bf16.mxu1 %vm97_vm0, %v205_v44  ;;  %1396 = vmatpush3.bf16.msra.mxu0 %v805_v46 }
  0xfc   :  { %1397 = vmatprep.mubr.msk.bf16.mxu0 %vm72_vm1, %v1518_v10  ;;  %1444 = vmatprep.subr.msk.bf16.mxu0 %vm97_vm0, %v210_v47 }
 0x101   :  { %1368 = vmatmul.mubr.msk.bf16.vlgmr.msra.gmra.mrb[16].mxu1 %vm72_vm1, %v1529_v18  ;;  %1398 = vmatmul.mubr.msk.bf16.vlgmr.msra.gmra.mrb[28].mxu0 %vm72_vm1, %v1529_v18 }
 0x102   :  { %1378 = vmatpush3.bf16.msra.mxu1 %v634_v51  ;;  %1379 = vmatprep.mubr.msk.bf16.mxu1 %vm72_vm1, %v1518_v10 }
 0x103   :  { %1441 = vmatprep.subr.msk.bf16.mxu1 %vm97_vm0, %v207_v48  ;;  %1408 = vmatpush3.bf16.msra.mxu0 %v919_v50 }
 0x104   :  { %1409 = vmatprep.mubr.msk.bf16.mxu0 %vm72_vm1, %v1518_v10  ;;  %1446 = vmatprep.subr.msk.bf16.mxu0 %vm97_vm0, %v212_v49 }
 0x109   :  { %1380 = vmatmul.mubr.msk.bf16.vlgmr.msra.gmra.mrb[20].mxu1 %vm72_vm1, %v1529_v18  ;;  %1410 = vmatmul.mubr.msk.bf16.vlgmr.msra.gmra.mrb[32].mxu0 %vm72_vm1, %v1529_v18 }
 0x10a   :  { %1390 = vmatpush3.bf16.msra.mxu1 %v748_v53  ;;  %1391 = vmatprep.mubr.msk.bf16.mxu1 %vm72_vm1, %v1518_v10 }
 0x10b   :  { %1443 = vmatprep.subr.msk.bf16.mxu1 %vm97_vm0, %v209_v52  ;;  %1420 = vmatpush3.bf16.msra.mxu0 %v1033_v54 }
 0x10c   :  { %1421 = vmatprep.mubr.msk.bf16.mxu0 %vm72_vm1, %v1518_v10 }
 0x111   :  { %1392 = vmatmul.mubr.msk.bf16.vlgmr.msra.gmra.mrb[24].mxu1 %vm72_vm1, %v1529_v18  ;;  %1422 = vmatmul.mubr.msk.bf16.vlgmr.msra.gmra.mrb[36].mxu0 %vm72_vm1, %v1529_v18 }
 0x112   :  { %1402 = vmatpush3.bf16.msra.mxu1 %v862_v56  ;;  %1403 = vmatprep.mubr.msk.bf16.mxu1 %vm72_vm1, %v1518_v10 }
 0x113   :  { %1445 = vmatprep.subr.msk.bf16.mxu1 %vm97_vm0, %v211_v55 }
 0x119   :  { %1404 = vmatmul.mubr.msk.bf16.vlgmr.msra.gmra.mrb[28].mxu1 %vm72_vm1, %v1529_v18 }
 0x11a   :  { %1414 = vmatpush3.bf16.msra.mxu1 %v976_v58  ;;  %1415 = vmatprep.mubr.msk.bf16.mxu1 %vm72_vm1, %v1518_v10 }
 0x11b   :  { %1447 = vmatprep.subr.msk.bf16.mxu1 %vm97_vm0, %v213_v57 }
 0x121   :  { %1416 = vmatmul.mubr.msk.bf16.vlgmr.msra.gmra.mrb[32].mxu1 %vm72_vm1, %v1529_v18 }
 0x122   :  { %1426 = vmatpush3.bf16.msra.mxu1 %v1090_v59  ;;  %1427 = vmatprep.mubr.msk.bf16.mxu1 %vm72_vm1, %v1518_v10 }
 0x129   :  { %1428 = vmatmul.mubr.msk.bf16.vlgmr.msra.gmra.mrb[36].mxu1 %vm72_vm1, %v1529_v18 }
 0x1b4   :  { %v1339_v60 = vpop.f32.mrb[0].mxu1 }
 0x1b5   :  { %289 = vst.msk [vmem:[%s1880_s3 + $0x10] sm:$0xff] %vm286_vm2, %v1339_v60  ;;  %v271_v61 = vpop.f32.mrb[1].mxu1 }
 0x1b6   :  { %287 = vst.msk [vmem:[%s1880_s3] sm:$0xff] %vm286_vm2, %v271_v61  ;;  %v1340_v62 = vpop.f32.mrb[2].mxu1 }
 0x1b7   :  { %290 = vst.msk [vmem:[%s1880_s3 + $0x18] sm:$0xff] %vm286_vm2, %v1340_v62  ;;  %v274_v63 = vpop.f32.mrb[3].mxu1 }
 0x1b8   :  { %288 = vst.msk [vmem:[%s1880_s3 + $0x8] sm:$0xff] %vm286_vm2, %v274_v63 }
 0x1bc   :  { %v1345_v0 = vpop.f32.mrb[4].mxu1  ;;  %v1363_v1 = vpop.f32.mrb[16].mxu0 }
 0x1bd   :  { %1174 = vst.msk [vmem:[%s1880_s3 + $0x30] sm:$0xff] %vm286_vm2, %v1345_v0  ;;  %v328_v2 = vpop.f32.mrb[5].mxu1  ;;  %1192 = vst.msk [vmem:[%s1880_s3 + $0x90] sm:$0xff] %vm286_vm2, %v1363_v1  ;;  %v499_v3 = vpop.f32.mrb[17].mxu0 }
 0x1be   :  { %1172 = vst.msk [vmem:[%s1880_s3 + $0x20] sm:$0xff] %vm286_vm2, %v328_v2  ;;  %v1346_v4 = vpop.f32.mrb[6].mxu1  ;;  %1190 = vst.msk [vmem:[%s1880_s3 + $0x80] sm:$0xff] %vm286_vm2, %v499_v3  ;;  %v1364_v5 = vpop.f32.mrb[18].mxu0 }
 0x1bf   :  { %1175 = vst.msk [vmem:[%s1880_s3 + $0x38] sm:$0xff] %vm286_vm2, %v1346_v4  ;;  %v331_v6 = vpop.f32.mrb[7].mxu1  ;;  %1193 = vst.msk [vmem:[%s1880_s3 + $0x98] sm:$0xff] %vm286_vm2, %v1364_v5  ;;  %v502_v7 = vpop.f32.mrb[19].mxu0 }
 0x1c0   :  { %1173 = vst.msk [vmem:[%s1880_s3 + $0x28] sm:$0xff] %vm286_vm2, %v331_v6  ;;  %1191 = vst.msk [vmem:[%s1880_s3 + $0x88] sm:$0xff] %vm286_vm2, %v502_v7 }
 0x1c4   :  { %v1351_v8 = vpop.f32.mrb[8].mxu1  ;;  %v1375_v9 = vpop.f32.mrb[20].mxu0 }
 0x1c5   :  { %1180 = vst.msk [vmem:[%s1880_s3 + $0x50] sm:$0xff] %vm286_vm2, %v1351_v8  ;;  %v385_v10 = vpop.f32.mrb[9].mxu1  ;;  %1204 = vst.msk [vmem:[%s1880_s3 + $0xd0] sm:$0xff] %vm286_vm2, %v1375_v9  ;;  %v613_v11 = vpop.f32.mrb[21].mxu0 }
 0x1c6   :  { %1178 = vst.msk [vmem:[%s1880_s3 + $0x40] sm:$0xff] %vm286_vm2, %v385_v10  ;;  %v1352_v12 = vpop.f32.mrb[10].mxu1  ;;  %1202 = vst.msk [vmem:[%s1880_s3 + $0xc0] sm:$0xff] %vm286_vm2, %v613_v11  ;;  %v1376_v13 = vpop.f32.mrb[22].mxu0 }
 0x1c7   :  { %1181 = vst.msk [vmem:[%s1880_s3 + $0x58] sm:$0xff] %vm286_vm2, %v1352_v12  ;;  %v388_v14 = vpop.f32.mrb[11].mxu1  ;;  %1205 = vst.msk [vmem:[%s1880_s3 + $0xd8] sm:$0xff] %vm286_vm2, %v1376_v13  ;;  %v616_v15 = vpop.f32.mrb[23].mxu0 }
 0x1c8   :  { %1179 = vst.msk [vmem:[%s1880_s3 + $0x48] sm:$0xff] %vm286_vm2, %v388_v14  ;;  %1203 = vst.msk [vmem:[%s1880_s3 + $0xc8] sm:$0xff] %vm286_vm2, %v616_v15 }
 0x1cc   :  { %v1357_v16 = vpop.f32.mrb[12].mxu1  ;;  %v1387_v17 = vpop.f32.mrb[24].mxu0 }
 0x1cd   :  { %1186 = vst.msk [vmem:[%s1880_s3 + $0x70] sm:$0xff] %vm286_vm2, %v1357_v16  ;;  %v442_v18 = vpop.f32.mrb[13].mxu1  ;;  %1216 = vst.msk [vmem:[%s1880_s3 + $0x110] sm:$0xff] %vm286_vm2, %v1387_v17  ;;  %v727_v19 = vpop.f32.mrb[25].mxu0 }
 0x1ce   :  { %1184 = vst.msk [vmem:[%s1880_s3 + $0x60] sm:$0xff] %vm286_vm2, %v442_v18  ;;  %v1358_v20 = vpop.f32.mrb[14].mxu1  ;;  %1214 = vst.msk [vmem:[%s1880_s3 + $0x100] sm:$0xff] %vm286_vm2, %v727_v19  ;;  %v1388_v21 = vpop.f32.mrb[26].mxu0 }
 0x1cf   :  { %1187 = vst.msk [vmem:[%s1880_s3 + $0x78] sm:$0xff] %vm286_vm2, %v1358_v20  ;;  %v445_v22 = vpop.f32.mrb[15].mxu1  ;;  %1217 = vst.msk [vmem:[%s1880_s3 + $0x118] sm:$0xff] %vm286_vm2, %v1388_v21  ;;  %v730_v23 = vpop.f32.mrb[27].mxu0 }
 0x1d0   :  { %1185 = vst.msk [vmem:[%s1880_s3 + $0x68] sm:$0xff] %vm286_vm2, %v445_v22  ;;  %1215 = vst.msk [vmem:[%s1880_s3 + $0x108] sm:$0xff] %vm286_vm2, %v730_v23 }
 0x1d4   :  { %v1369_v24 = vpop.f32.mrb[16].mxu1  ;;  %v1399_v25 = vpop.f32.mrb[28].mxu0 }
 0x1d5   :  { %1198 = vst.msk [vmem:[%s1880_s3 + $0xb0] sm:$0xff] %vm286_vm2, %v1369_v24  ;;  %v556_v26 = vpop.f32.mrb[17].mxu1  ;;  %1228 = vst.msk [vmem:[%s1880_s3 + $0x150] sm:$0xff] %vm286_vm2, %v1399_v25  ;;  %v841_v27 = vpop.f32.mrb[29].mxu0 }
 0x1d6   :  { %1196 = vst.msk [vmem:[%s1880_s3 + $0xa0] sm:$0xff] %vm286_vm2, %v556_v26  ;;  %v1370_v28 = vpop.f32.mrb[18].mxu1  ;;  %1226 = vst.msk [vmem:[%s1880_s3 + $0x140] sm:$0xff] %vm286_vm2, %v841_v27  ;;  %v1400_v29 = vpop.f32.mrb[30].mxu0 }
 0x1d7   :  { %1199 = vst.msk [vmem:[%s1880_s3 + $0xb8] sm:$0xff] %vm286_vm2, %v1370_v28  ;;  %v559_v30 = vpop.f32.mrb[19].mxu1  ;;  %1229 = vst.msk [vmem:[%s1880_s3 + $0x158] sm:$0xff] %vm286_vm2, %v1400_v29  ;;  %v844_v31 = vpop.f32.mrb[31].mxu0 }
 0x1d8   :  { %1197 = vst.msk [vmem:[%s1880_s3 + $0xa8] sm:$0xff] %vm286_vm2, %v559_v30  ;;  %1227 = vst.msk [vmem:[%s1880_s3 + $0x148] sm:$0xff] %vm286_vm2, %v844_v31 }
 0x1dc   :  { %v1381_v32 = vpop.f32.mrb[20].mxu1  ;;  %v1411_v33 = vpop.f32.mrb[32].mxu0 }
 0x1dd   :  { %1210 = vst.msk [vmem:[%s1880_s3 + $0xf0] sm:$0xff] %vm286_vm2, %v1381_v32  ;;  %v670_v34 = vpop.f32.mrb[21].mxu1  ;;  %1240 = vst.msk [vmem:[%s1880_s3 + $0x190] sm:$0xff] %vm286_vm2, %v1411_v33  ;;  %v955_v35 = vpop.f32.mrb[33].mxu0 }
 0x1de   :  { %1208 = vst.msk [vmem:[%s1880_s3 + $0xe0] sm:$0xff] %vm286_vm2, %v670_v34  ;;  %v1382_v36 = vpop.f32.mrb[22].mxu1  ;;  %1238 = vst.msk [vmem:[%s1880_s3 + $0x180] sm:$0xff] %vm286_vm2, %v955_v35  ;;  %v1412_v37 = vpop.f32.mrb[34].mxu0 }
 0x1df   :  { %1211 = vst.msk [vmem:[%s1880_s3 + $0xf8] sm:$0xff] %vm286_vm2, %v1382_v36  ;;  %v673_v38 = vpop.f32.mrb[23].mxu1  ;;  %1241 = vst.msk [vmem:[%s1880_s3 + $0x198] sm:$0xff] %vm286_vm2, %v1412_v37  ;;  %v958_v39 = vpop.f32.mrb[35].mxu0 }
 0x1e0   :  { %1209 = vst.msk [vmem:[%s1880_s3 + $0xe8] sm:$0xff] %vm286_vm2, %v673_v38  ;;  %1239 = vst.msk [vmem:[%s1880_s3 + $0x188] sm:$0xff] %vm286_vm2, %v958_v39 }
 0x1e4   :  { %v1393_v40 = vpop.f32.mrb[24].mxu1  ;;  %v1423_v41 = vpop.f32.mrb[36].mxu0 }
 0x1e5   :  { %1222 = vst.msk [vmem:[%s1880_s3 + $0x130] sm:$0xff] %vm286_vm2, %v1393_v40  ;;  %v784_v42 = vpop.f32.mrb[25].mxu1  ;;  %1252 = vst.msk [vmem:[%s1880_s3 + $0x1d0] sm:$0xff] %vm286_vm2, %v1423_v41  ;;  %v1069_v43 = vpop.f32.mrb[37].mxu0 }
 0x1e6   :  { %1220 = vst.msk [vmem:[%s1880_s3 + $0x120] sm:$0xff] %vm286_vm2, %v784_v42  ;;  %v1394_v44 = vpop.f32.mrb[26].mxu1  ;;  %1250 = vst.msk [vmem:[%s1880_s3 + $0x1c0] sm:$0xff] %vm286_vm2, %v1069_v43  ;;  %v1424_v45 = vpop.f32.mrb[38].mxu0 }
 0x1e7   :  { %1223 = vst.msk [vmem:[%s1880_s3 + $0x138] sm:$0xff] %vm286_vm2, %v1394_v44  ;;  %v787_v46 = vpop.f32.mrb[27].mxu1  ;;  %1253 = vst.msk [vmem:[%s1880_s3 + $0x1d8] sm:$0xff] %vm286_vm2, %v1424_v45  ;;  %v1072_v47 = vpop.f32.mrb[39].mxu0 }
 0x1e8   :  { %1221 = vst.msk [vmem:[%s1880_s3 + $0x128] sm:$0xff] %vm286_vm2, %v787_v46  ;;  %1251 = vst.msk [vmem:[%s1880_s3 + $0x1c8] sm:$0xff] %vm286_vm2, %v1072_v47 }
 0x1ec   :  { %v1405_v48 = vpop.f32.mrb[28].mxu1 }
 0x1ed   :  { %1234 = vst.msk [vmem:[%s1880_s3 + $0x170] sm:$0xff] %vm286_vm2, %v1405_v48  ;;  %v898_v49 = vpop.f32.mrb[29].mxu1 }
 0x1ee   :  { %1232 = vst.msk [vmem:[%s1880_s3 + $0x160] sm:$0xff] %vm286_vm2, %v898_v49  ;;  %v1406_v50 = vpop.f32.mrb[30].mxu1 }
 0x1ef   :  { %1235 = vst.msk [vmem:[%s1880_s3 + $0x178] sm:$0xff] %vm286_vm2, %v1406_v50  ;;  %v901_v51 = vpop.f32.mrb[31].mxu1 }
 0x1f0   :  { %1233 = vst.msk [vmem:[%s1880_s3 + $0x168] sm:$0xff] %vm286_vm2, %v901_v51 }
 0x1f4   :  { %v1417_v52 = vpop.f32.mrb[32].mxu1 }
 0x1f5   :  { %1246 = vst.msk [vmem:[%s1880_s3 + $0x1b0] sm:$0xff] %vm286_vm2, %v1417_v52  ;;  %v1012_v53 = vpop.f32.mrb[33].mxu1 }
 0x1f6   :  { %1244 = vst.msk [vmem:[%s1880_s3 + $0x1a0] sm:$0xff] %vm286_vm2, %v1012_v53  ;;  %v1418_v54 = vpop.f32.mrb[34].mxu1 }
 0x1f7   :  { %1247 = vst.msk [vmem:[%s1880_s3 + $0x1b8] sm:$0xff] %vm286_vm2, %v1418_v54  ;;  %v1015_v55 = vpop.f32.mrb[35].mxu1 }
 0x1f8   :  { %1245 = vst.msk [vmem:[%s1880_s3 + $0x1a8] sm:$0xff] %vm286_vm2, %v1015_v55 }
 0x1fc   :  { %v1429_v56 = vpop.f32.mrb[36].mxu1 }
 0x1fd   :  { %1258 = vst.msk [vmem:[%s1880_s3 + $0x1f0] sm:$0xff] %vm286_vm2, %v1429_v56  ;;  %v1126_v57 = vpop.f32.mrb[37].mxu1 }
 0x1fe   :  { %1256 = vst.msk [vmem:[%s1880_s3 + $0x1e0] sm:$0xff] %vm286_vm2, %v1126_v57  ;;  %v1430_v58 = vpop.f32.mrb[38].mxu1 }
 0x1ff   :  { %1259 = vst.msk [vmem:[%s1880_s3 + $0x1f8] sm:$0xff] %vm286_vm2, %v1430_v58  ;;  %v1129_v59 = vpop.f32.mrb[39].mxu1 }
 0x200   :  { %1257 = vst.msk [vmem:[%s1880_s3 + $0x1e8] sm:$0xff] %vm286_vm2, %v1129_v59 }

// kernel: custom_deeplabv3_forward.6
= control target key start
LH: loop header
LB: loop body
LE: loop exit
PB: predicated region body
PF: predicated region fallthrough
CT: control target
= control target key end

     0   :  { %s3400_s18 = smov 0   ;;  %s3999_s0 = inlined_call_operand.vmem [shape: bf16[2,10,10,128], index: 0, kind: input, shape index: {}]   ;;  %s4000_s1 = inlined_call_operand.vmem [shape: bf16[3,3,128,128], index: 1, kind: input, shape index: {}]   ;;  %s4001_s2 = inlined_call_operand.vmem [shape: f32[1,128], index: 2, kind: input, shape index: {}]   ;;  %s4002_s3 = inlined_call_operand.vmem [shape: bf16[128,128], index: 3, kind: input, shape index: {}]   ;;  %s4003_s4 = inlined_call_operand.vmem [shape: f32[1,128], index: 4, kind: input, shape index: {}]   ;;  %s4004_s5 = inlined_call_operand.vmem [shape: bf16[2,64,128], index: 5, kind: output, shape index: {}]  }
   0x1 LB: > { %s2453_s19 = sadd.s32 4294967295, %s3368_s18   ;;  %p2457_p0 = scmp.ge.s32.totalorder %s3368_s18, 1  ;;  %s3368_s18 = sphi %s3400_s18, %s15_s18  }
   0x2   : > { %p187_p1 = scmp.lt.s32.totalorder %s3368_s18, 3 }
   0x4   : > { %p188_p2 = pnand %p2457_p0, %p187_p1 }
   0x5   : > { %v3270_v0 = vld [vmem:[%s4000_s1 + $0x40] sm:$0xff] (!%p188_p2)   ;;  %p215_p3 = scmp.lt.s32.totalorder (!%p188_p2), %s2453_s19, 1  ;;  %v3272_v2 = vld [vmem:[%s4000_s1 + $0x48] sm:$0xff] (!%p188_p2)   ;;  %v3274_v4 = vld [vmem:[%s4000_s1 + $0x50] sm:$0xff] (!%p188_p2)   ;;  %vm258_vm0 = vsmask.f32 (!%p188_p2), 3328 }
   0x6   : > { %191 = sbr.rel (%p188_p2) target bundleno = 624 (0x270), region = 40  ;;  %v3271_v1 = vld [vmem:[%s4000_s1 + $0x100] sm:$0xff] (!%p188_p2)   ;;  %2957 = vmatprep.subr.bf16.mxu1 (!%p188_p2), %v3270_v0  ;;  %v3273_v3 = vld [vmem:[%s4000_s1 + $0x108] sm:$0xff] (!%p188_p2)   ;;  %v3275_v5 = vld [vmem:[%s4000_s1 + $0x110] sm:$0xff] (!%p188_p2)   ;;  %vm259_vm1 = vsmask.f32 (!%p188_p2), 7440 }
   0x7   : > { %3053 = vmatprep.subr.bf16.mxu0 (!%p188_p2), %v3271_v1  ;;  %2958 = vmatpush3.bf16.msra.mxu1 (!%p188_p2), %v3270_v0  ;;  %v3276_v6 = vld [vmem:[%s4000_s1 + $0x58] sm:$0xff] (!%p188_p2)   ;;  %v3278_v8 = vld [vmem:[%s4000_s1 + $0x60] sm:$0xff] (!%p188_p2)   ;;  %v3280_v10 = vld [vmem:[%s4000_s1 + $0x68] sm:$0xff] (!%p188_p2)   ;;  %vm680_vm3 = vcmask (!%p188_p2), 1042432   ;;  %vm681_vm4 = vcmask (!%p188_p2), 1046532  }
   0x8   : > { %3054 = vmatpush3.bf16.msra.mxu0 (!%p188_p2), %v3271_v1  ;;  %2959 = vmatprep.subr.bf16.mxu1 (!%p188_p2), %v3272_v2  ;;  %v3277_v7 = vld [vmem:[%s4000_s1 + $0x118] sm:$0xff] (!%p188_p2)   ;;  %v3279_v9 = vld [vmem:[%s4000_s1 + $0x120] sm:$0xff] (!%p188_p2)   ;;  %v3281_v14 = vld [vmem:[%s4000_s1 + $0x128] sm:$0xff] (!%p188_p2)  }
   0x9   : > { %3055 = vmatprep.subr.bf16.mxu0 (!%p188_p2), %v3273_v3  ;;  %v3282_v22 = vld [vmem:[%s4000_s1 + $0x70] sm:$0xff] (!%p188_p2)   ;;  %v3284_v37 = vld [vmem:[%s4000_s1 + $0x78] sm:$0xff] (!%p188_p2)   ;;  %vm3489_vm2 = vmor (!%p188_p2), %vm258_vm0, %vm259_vm1 }
   0xa   : > { %v3283_v23 = vld [vmem:[%s4000_s1 + $0x130] sm:$0xff] (!%p188_p2)   ;;  %v3285_v47 = vld [vmem:[%s4000_s1 + $0x138] sm:$0xff] (!%p188_p2)   ;;  %v3286_v63 = vld [vmem:[%s4000_s1] sm:$0xff] (!%p188_p2)  }
   0xb   : > { %2960 = vmatpush3.bf16.msra.mxu1 (!%p188_p2), %v3272_v2  ;;  %v3521_v1 = vld [vmem:[%s4000_s1 + $0x140] sm:$0xff] (!%p188_p2)   ;;  %vm3663_vm5 = vmor (!%p188_p2), %vm680_vm3, %vm681_vm4  ;;  %v3349_v38 = vld [vmem:[%s4000_s1 + $0x218] sm:$0xff] (!%p188_p2)  }
   0xc   : > { %3056 = vmatpush3.bf16.msra.mxu0 (!%p188_p2), %v3273_v3  ;;  %2961 = vmatprep.subr.bf16.mxu1 (!%p188_p2), %v3274_v4 }
   0xd   : > { %s4010_s19 = smov (!%p215_p3, %s2453_s19), 1  ;;  %3057 = vmatprep.subr.bf16.mxu0 %v3275_v5 }
   0xe   : > { %s3261_s11 = smul.u32 80, %s4010_s19  ;;  %s2805_s7 = sshll.u32 %s4010_s19, 5 }
   0xf   : > { %2962 = vmatpush3.bf16.msra.mxu1 %v3274_v4 }
  0x10   : > { %3058 = vmatpush3.bf16.msra.mxu0 %v3275_v5  ;;  %2963 = vmatprep.subr.bf16.mxu1 %v3276_v6  ;;  %s3444_s20 = scalar_lea.vmem %s3999_s0, %s3261_s11 }
  0x11   : > { %3059 = vmatprep.subr.bf16.mxu0 %v3277_v7  ;;  %v3450_v11 = vld [vmem:[%s3444_s20] sm:$0xf]  ;;  %v3453_v12 = vld [vmem:[%s3444_s20 + $0x8] sm:$0xf]  ;;  %v3456_v13 = vld [vmem:[%s3444_s20 + $0x4] sm:$0x1] }
  0x12   : > { %v3462_v15 = vld [vmem:[%s3444_s20 + $0xc] sm:$0x1]  ;;  %v262_v16 = vshrl.u32 %v3450_v11, 16  ;;  %v265_v17 = vshll.u32 %v3450_v11, 16  ;;  %v271_v18 = vshll.u32 %v3456_v13, 16  ;;  %v276_v19 = vshrl.u32 %v3453_v12, 16 }
  0x13   : > { %2964 = vmatpush3.bf16.msra.mxu1 %v3276_v6  ;;  %v279_v20 = vshll.u32 %v3453_v12, 16  ;;  %v285_v21 = vshll.u32 %v3462_v15, 16  ;;  %v2573_v30 = vld [vmem:[%s3444_s20 + $0x8] sm:$0xf]  ;;  %v3478_v31 = vld [vmem:[%s3444_s20 + $0xc] sm:$0x1] }
  0x14   : > { %3060 = vmatpush3.bf16.msra.mxu0 %v3277_v7  ;;  %2965 = vmatprep.subr.bf16.mxu1 %v3278_v8  ;;  %v264_v24 = vrot.slane %v262_v16, 4  ;;  %v267_v25 = vrot.slane %v265_v17, 5  ;;  %v273_v26 = vrot.slane %v271_v18, 5  ;;  %v278_v27 = vrot.slane %v276_v19, 4  ;;  %v2575_v33 = vld [vmem:[%s3444_s20 + $0x10] sm:$0xf] }
  0x15   : > { %3061 = vmatprep.subr.bf16.mxu0 %v3279_v9  ;;  %v281_v28 = vrot.slane %v279_v20, 5  ;;  %v287_v29 = vrot.slane %v285_v21, 5  ;;  %v3482_v34 = vld [vmem:[%s3444_s20 + $0x14] sm:$0x1]  ;;  %v1057_v35 = vshrl.u32 %v2573_v30, 16  ;;  %v1060_v36 = vshll.u32 %v2573_v30, 16 }
  0x16   : > { %v268_v32 = vor.u32 %v267_v25, %v264_v24  ;;  %v1066_v40 = vshll.u32 %v3478_v31, 16  ;;  %v1071_v41 = vshrl.u32 %v2575_v33, 16  ;;  %v1074_v42 = vshll.u32 %v2575_v33, 16  ;;  %v3499_v51 = vld [vmem:[%s3444_s20 + $0x10] sm:$0xf] }
  0x17   : > { %2966 = vmatpush3.bf16.msra.mxu1 %v3278_v8  ;;  %v282_v39 = vor.u32 %v281_v28, %v278_v27  ;;  %v1059_v44 = vrot.slane %v1057_v35, 4  ;;  %v1062_v45 = vrot.slane %v1060_v36, 5  ;;  %v1080_v46 = vshll.u32 %v3482_v34, 16  ;;  %v3504_v55 = vld [vmem:[%s3444_s20 + $0x18] sm:$0xf] }
  0x18   : > { %3062 = vmatpush3.bf16.msra.mxu0 %v3279_v9  ;;  %2967 = vmatprep.subr.bf16.mxu1 %v3280_v10  ;;  %v269_v43 = vrot.slane %v268_v32, 4  ;;  %v1073_v49 = vrot.slane %v1071_v41, 4  ;;  %v1076_v50 = vrot.slane %v1074_v42, 5  ;;  %v1068_v54 = vrot.slane %v1066_v40, 5  ;;  %v3507_v56 = vld [vmem:[%s3444_s20 + $0x14] sm:$0x1] }
  0x19   : > { %3063 = vmatprep.subr.bf16.mxu0 %v3281_v14  ;;  %v283_v48 = vrot.slane %v282_v39, 4  ;;  %v1063_v53 = vor.u32 %v1062_v45, %v1059_v44  ;;  %v1082_v59 = vrot.slane %v1080_v46, 5  ;;  %v3512_v60 = vld [vmem:[%s3444_s20 + $0x1c] sm:$0x1]  ;;  %v290_v61 = vshrl.u32 %v3499_v51, 16 }
  0x1a   : > { %v274_v52 = vsel %vm3489_vm2, %v269_v43, %v273_v26  ;;  %v1077_v58 = vor.u32 %v1076_v50, %v1073_v49  ;;  %v293_v2 = vshll.u32 %v3499_v51, 16  ;;  %v299_v3 = vshll.u32 %v3507_v56, 16  ;;  %v2577_v8 = vld [vmem:[%s3444_s20 + $0x18] sm:$0xf]  ;;  %v3532_v16 = vld [vmem:[%s3444_s20 + $0x1c] sm:$0x1] }
  0x1b   : > { %2968 = vmatpush3.bf16.msra.mxu1 %v3280_v10  ;;  %v288_v57 = vsel %vm3489_vm2, %v283_v48, %v287_v29  ;;  %v1064_v0 = vrot.slane %v1063_v53, 4  ;;  %v292_v5 = vrot.slane %v290_v61, 4  ;;  %v304_v6 = vshrl.u32 %v3504_v55, 16  ;;  %v2579_v17 = vld [vmem:[%s3444_s20 + $0x20] sm:$0xf]  ;;  %v3288_v43 = vld [vmem:[%s4000_s1 + $0x8] sm:$0xff]  }
  0x1c   : > { %3064 = vmatpush3.bf16.msra.mxu0 %v3281_v14  ;;  %2969 = vmatprep.subr.bf16.mxu1 %v3282_v22  ;;  %v2477_v62 = vcombine.low %v274_v52, %v288_v57  ;;  %v1078_v4 = vrot.slane %v1077_v58, 4  ;;  %v307_v7 = vshll.u32 %v3504_v55, 16  ;;  %v295_v10 = vrot.slane %v293_v2, 5  ;;  %v3538_v21 = vld [vmem:[%s3444_s20 + $0x24] sm:$0x1] }
  0x1d   : > { %3065 = vmatprep.subr.bf16.mxu0 %v3283_v23  ;;  %v1069_v9 = vsel %vm3489_vm2, %v1064_v0, %v1068_v54  ;;  %v313_v14 = vshll.u32 %v3512_v60, 16  ;;  %v306_v19 = vrot.slane %v304_v6, 4  ;;  %v301_v24 = vrot.slane %v299_v3, 5  ;;  %v3289_v54 = vld [vmem:[%s4000_s1 + $0x148] sm:$0xff]   ;;  %v3568_v0 = vld [vmem:[%s3444_s20 + $0x24] sm:$0x1] }
  0x1e   : > { %2973 = vmatprep.mubr.bf16.mxu1 %v2477_v62  ;;  %v1083_v18 = vsel %vm3489_vm2, %v1078_v4, %v1082_v59  ;;  %v309_v20 = vrot.slane %v307_v7, 5  ;;  %v1085_v27 = vshrl.u32 %v2577_v8, 16  ;;  %v1088_v28 = vshll.u32 %v2577_v8, 16  ;;  %v3290_v59 = vld [vmem:[%s4000_s1 + $0x10] sm:$0xff]   ;;  %v3562_v62 = vld [vmem:[%s3444_s20 + $0x20] sm:$0xf] }
  0x1f   : > { %2970 = vmatpush3.bf16.msra.mxu1 %v3282_v22  ;;  %v2605_v22 = vcombine.low %v1069_v9, %v1083_v18  ;;  %v315_v25 = vrot.slane %v313_v14, 5  ;;  %v1094_v29 = vshll.u32 %v3532_v16, 16  ;;  %v1099_v32 = vshrl.u32 %v2579_v17, 16  ;;  %v3571_v2 = vld [vmem:[%s3444_s20 + $0x2c] sm:$0x1]  ;;  %v3291_v9 = vld [vmem:[%s4000_s1 + $0x150] sm:$0xff]  }
  0x20   : > { %3066 = vmatpush3.bf16.msra.mxu0 %v3283_v23  ;;  %2971 = vmatprep.subr.bf16.mxu1 %v3284_v37  ;;  %v296_v23 = vor.u32 %v295_v10, %v292_v5  ;;  %v310_v26 = vor.u32 %v309_v20, %v306_v19  ;;  %v1102_v33 = vshll.u32 %v2579_v17, 16  ;;  %v1108_v35 = vshll.u32 %v3538_v21, 16  ;;  %v3292_v10 = vld [vmem:[%s4000_s1 + $0x18] sm:$0xff]  }
  0x21   : > { %3067 = vmatprep.subr.bf16.mxu0 %v3285_v47  ;;  %3069 = vmatprep.mubr.bf16.mxu0 %v2605_v22  ;;  %v1090_v39 = vrot.slane %v1088_v28, 5  ;;  %v1101_v41 = vrot.slane %v1099_v32, 4  ;;  %v1096_v46 = vrot.slane %v1094_v29, 5  ;;  %v1348_v57 = vrot.slane %v3478_v31, 5  ;;  %v3293_v29 = vld [vmem:[%s4000_s1 + $0x158] sm:$0xff]  }
  0x22   : > { %v297_v30 = vrot.slane %v296_v23, 4  ;;  %v311_v36 = vrot.slane %v310_v26, 4  ;;  %v1104_v42 = vrot.slane %v1102_v33, 5  ;;  %v318_v3 = vshrl.u32 %v3562_v62, 16  ;;  %v2581_v23 = vld [vmem:[%s3444_s20 + $0x28] sm:$0xf] }
  0x23   : > { %2972 = vmatpush3.bf16.msra.mxu1 %v3284_v37  ;;  %v1087_v37 = vrot.slane %v1085_v27, 4  ;;  %v321_v4 = vshll.u32 %v3562_v62, 16  ;;  %v327_v5 = vshll.u32 %v3568_v0, 16  ;;  %v341_v8 = vshll.u32 %v3571_v2, 16  ;;  %v3592_v26 = vld [vmem:[%s3444_s20 + $0x34] sm:$0x1] }
  0x24   : > { %3068 = vmatpush3.bf16.msra.mxu0 %v3285_v47  ;;  %2981 = vmatprep.subr.bf16.mxu1 %v3286_v63  ;;  %v302_v40 = vsel %vm3489_vm2, %v297_v30, %v301_v24  ;;  %v316_v44 = vsel %vm3489_vm2, %v311_v36, %v315_v25  ;;  %v1110_v47 = vrot.slane %v1108_v35, 5  ;;  %v1105_v49 = vor.u32 %v1104_v42, %v1101_v41  ;;  %v3588_v24 = vld [vmem:[%s3444_s20 + $0x2c] sm:$0x1]  ;;  %v2583_v25 = vld [vmem:[%s3444_s20 + $0x30] sm:$0xf]  ;;  %v3294_v30 = vld [vmem:[%s4000_s1 + $0x20] sm:$0xff]  }
  0x25   : > { %3077 = vmatprep.subr.bf16.mxu0 %v3521_v1  ;;  %v1091_v45 = vor.u32 %v1090_v39, %v1087_v37  ;;  %v2478_v48 = vcombine.low %v302_v40, %v316_v44  ;;  %v320_v14 = vrot.slane %v318_v3, 4  ;;  %v323_v17 = vrot.slane %v321_v4, 5 }
  0x26   : > { %v1106_v52 = vrot.slane %v1105_v49, 4  ;;  %v329_v18 = vrot.slane %v327_v5, 5  ;;  %v343_v22 = vrot.slane %v341_v8, 5  ;;  %v1113_v27 = vshrl.u32 %v2581_v23, 16  ;;  %v2585_v5 = vld [vmem:[%s3444_s20 + $0x38] sm:$0xf] }
  0x27   : > { %v1092_v50 = vrot.slane %v1091_v45, 4  ;;  %2974 = vmatmul.mubr.bf16.vlgmr.msra.gmra.mrb[0].mxu1 %v2478_v48  ;;  %v1116_v28 = vshll.u32 %v2581_v23, 16  ;;  %v1122_v33 = vshll.u32 %v3588_v24, 16  ;;  %v1127_v35 = vshrl.u32 %v2583_v25, 16 }
  0x28   : > { %2982 = vmatpush3.bf16.msra.mxu1 %v3286_v63  ;;  %v1111_v58 = vsel %vm3489_vm2, %v1106_v52, %v1110_v47  ;;  %v3565_v63 = vld [vmem:[%s3444_s20 + $0x28] sm:$0xf]  ;;  %v1130_v36 = vshll.u32 %v2583_v25, 16  ;;  %v1115_v39 = vrot.slane %v1113_v27, 4  ;;  %v1136_v41 = vshll.u32 %v3592_v26, 16 }
  0x29   : > { %v1097_v53 = vsel %vm3489_vm2, %v1092_v50, %v1096_v46  ;;  %2983 = vmatprep.subr.bf16.mxu1 %v3288_v43  ;;  %v332_v6 = vshrl.u32 %v3565_v63, 16  ;;  %v335_v7 = vshll.u32 %v3565_v63, 16  ;;  %v1118_v40 = vrot.slane %v1116_v28, 5  ;;  %v3603_v46 = vld [vmem:[%s3444_s20 + $0x30] sm:$0xf] }
  0x2a   : > { %v2606_v61 = vcombine.low %v1097_v53, %v1111_v58  ;;  %v1129_v44 = vrot.slane %v1127_v35, 4  ;;  %v1132_v45 = vrot.slane %v1130_v36, 5  ;;  %v1138_v49 = vrot.slane %v1136_v41, 5  ;;  %v3608_v50 = vld [vmem:[%s3444_s20 + $0x38] sm:$0xf] }
  0x2b   : > { %v334_v19 = vrot.slane %v332_v6, 4  ;;  %v337_v20 = vrot.slane %v335_v7, 5  ;;  %v1119_v48 = vor.u32 %v1118_v40, %v1115_v39  ;;  %v3611_v52 = vld [vmem:[%s3444_s20 + $0x34] sm:$0x1]  ;;  %v346_v53 = vshrl.u32 %v3603_v46, 16  ;;  %v3296_v6 = vld [vmem:[%s4000_s1 + $0x28] sm:$0xff]  }
  0x2c   : > { %3070 = vmatmul.mubr.bf16.vlgmr.msra.gmra.mrb[0].mxu0 %v2606_v61  ;;  %2984 = vmatpush3.bf16.msra.mxu1 %v3288_v43  ;;  %v1124_v43 = vrot.slane %v1122_v33, 5  ;;  %v3620_v61 = vld [vmem:[%s3444_s20 + $0x3c] sm:$0x1]  ;;  %v349_v3 = vshll.u32 %v3603_v46, 16  ;;  %v355_v4 = vshll.u32 %v3611_v52, 16  ;;  %v1141_v28 = vshrl.u32 %v2585_v5, 16 }
  0x2d   : > { %3078 = vmatpush3.bf16.msra.mxu0 %v3521_v1  ;;  %2985 = vmatprep.subr.bf16.mxu1 %v3290_v59  ;;  %v324_v1 = vor.u32 %v323_v17, %v320_v14  ;;  %v338_v32 = vor.u32 %v337_v20, %v334_v19  ;;  %v1120_v8 = vrot.slane %v1119_v48, 4  ;;  %v360_v14 = vshrl.u32 %v3608_v50, 16  ;;  %v3630_v17 = vld [vmem:[%s3444_s20 + $0x3c] sm:$0x1]  ;;  %v3638_v27 = vld [vmem:[%s3444_s20 + $0x44] sm:$0x1] }
  0x2e   : > { %3079 = vmatprep.subr.bf16.mxu0 %v3289_v54  ;;  %v351_v19 = vrot.slane %v349_v3, 5  ;;  %v357_v20 = vrot.slane %v355_v4, 5  ;;  %v369_v25 = vshll.u32 %v3620_v61, 16  ;;  %v1144_v36 = vshll.u32 %v2585_v5, 16 }
  0x2f   : > { %v325_v37 = vrot.slane %v324_v1, 4  ;;  %v339_v42 = vrot.slane %v338_v32, 4  ;;  %v1125_v23 = vsel %vm3489_vm2, %v1120_v8, %v1124_v43  ;;  %v362_v1 = vrot.slane %v360_v14, 4  ;;  %v3357_v8 = vld [vmem:[%s4002_s3 + $0x18] sm:$0xff]  }
  0x30   : > { %2986 = vmatpush3.bf16.msra.mxu1 %v3290_v59  ;;  %v1133_v59 = vor.u32 %v1132_v45, %v1129_v44  ;;  %v371_v40 = vrot.slane %v369_v25, 5  ;;  %v1143_v41 = vrot.slane %v1141_v28, 4  ;;  %v1146_v45 = vrot.slane %v1144_v36, 5  ;;  %v2619_v25 = vld [vmem:[%s3444_s20 + $0x18] sm:$0xe] }
  0x31   : > { %3080 = vmatpush3.bf16.msra.mxu0 %v3289_v54  ;;  %2987 = vmatprep.subr.bf16.mxu1 %v3292_v10  ;;  %v330_v47 = vsel %vm3489_vm2, %v325_v37, %v329_v18  ;;  %v3295_v54 = vld [vmem:[%s4000_s1 + $0x160] sm:$0xff]   ;;  %v344_v58 = vsel %vm3489_vm2, %v339_v42, %v343_v22  ;;  %v363_v22 = vshll.u32 %v3608_v50, 16  ;;  %v3298_v37 = vld [vmem:[%s4000_s1 + $0x30] sm:$0xff]   ;;  %v1150_v42 = vshll.u32 %v3630_v17, 16  ;;  %v3301_v28 = vld [vmem:[%s4000_s1 + $0x178] sm:$0xff]  }
  0x32   : > { %3081 = vmatprep.subr.bf16.mxu0 %v3291_v9  ;;  %v2479_v7 = vcombine.low %v330_v47, %v344_v58  ;;  %v1134_v18 = vrot.slane %v1133_v59, 4  ;;  %v1352_v47 = vrot.slane %v3482_v34, 5  ;;  %v1356_v48 = vrot.slane %v3532_v16, 5  ;;  %v3299_v58 = vld [vmem:[%s4000_s1 + $0x170] sm:$0xff]  }
  0x33   : > { %v365_v35 = vrot.slane %v363_v22, 5  ;;  %v1147_v4 = vor.u32 %v1146_v45, %v1143_v41  ;;  %v1152_v34 = vrot.slane %v1150_v42, 5  ;;  %v1360_v22 = vrot.slane %v3538_v21, 5  ;;  %v3304_v41 = vld [vmem:[%s4000_s1 + $0x180] sm:$0xff]  }
  0x34   : > { %2988 = vmatpush3.bf16.msra.mxu1 %v3292_v10  ;;  %v348_v10 = vrot.slane %v346_v53, 4  ;;  %2977 = vmatprep.mubr.bf16.mxu1 %v2479_v7  ;;  %v1139_v32 = vsel %vm3489_vm2, %v1134_v18, %v1138_v49  ;;  %v1164_v53 = vshll.u32 %v3638_v27, 16  ;;  %v2617_v7 = vld [vmem:[%s3444_s20 + $0x8] sm:$0xe]  ;;  %v2627_v36 = vrot.slane %v2619_v25, 9 }
  0x35   : > { %3082 = vmatpush3.bf16.msra.mxu0 %v3291_v9  ;;  %2989 = vmatprep.subr.bf16.mxu1 %v3294_v30  ;;  %v2587_v9 = vld [vmem:[%s3444_s20 + $0x40] sm:$0xf]  ;;  %v2607_v39 = vcombine.low %v1125_v23, %v1139_v32  ;;  %v366_v44 = vor.u32 %v365_v35, %v362_v1  ;;  %v2625_v14 = vrot.slane %v2617_v7, 9  ;;  %v1148_v18 = vrot.slane %v1147_v4, 4 }
  0x36   : > { %3083 = vmatprep.subr.bf16.mxu0 %v3293_v29  ;;  %v352_v33 = vor.u32 %v351_v19, %v348_v10  ;;  %v1158_v49 = vshll.u32 %v2587_v9, 16  ;;  %v2618_v10 = vld [vmem:[%s3444_s20 + $0x10] sm:$0xe]  ;;  %v2489_v19 = vcombine.low %v3450_v11, %v3453_v12  ;;  %v1166_v1 = vrot.slane %v1164_v53, 5  ;;  %v2620_v12 = vld [vmem:[%s3444_s20 + $0x20] sm:$0xe] }
  0x37   : > { %3073 = vmatprep.mubr.bf16.mxu0 %v2607_v39  ;;  %v367_v3 = vrot.slane %v366_v44, 4  ;;  %v1349_v32 = vsel %vm3663_vm5, %v2625_v14, %v1348_v57  ;;  %v1153_v21 = vsel %vm3489_vm2, %v1148_v18, %v1152_v34  ;;  %v3303_v35 = vld [vmem:[%s4000_s1 + $0x80] sm:$0xff]   ;;  %v1357_v42 = vsel %vm3663_vm5, %v2627_v36, %v1356_v48  ;;  %v3308_v44 = vld [vmem:[%s4000_s1 + $0x90] sm:$0xff]  }
  0x38   : > { %2990 = vmatpush3.bf16.msra.mxu1 %v3294_v30  ;;  %v3297_v30 = vld [vmem:[%s4000_s1 + $0x168] sm:$0xff]   ;;  %v353_v43 = vrot.slane %v352_v33, 4  ;;  %v1160_v16 = vrot.slane %v1158_v49, 5  ;;  %v1364_v45 = vrot.slane %v3588_v24, 5  ;;  %v1372_v53 = vrot.slane %v3630_v17, 5  ;;  %v3312_v18 = vld [vmem:[%s4000_s1 + $0xa0] sm:$0xff]  }
  0x39   : > { %3084 = vmatpush3.bf16.msra.mxu0 %v3293_v29  ;;  %2991 = vmatprep.subr.bf16.mxu1 %v3296_v6  ;;  %v1155_v29 = vshrl.u32 %v2587_v9, 16  ;;  %v1376_v24 = vrot.slane %v3638_v27, 5  ;;  %v689_v34 = vrot.slane %v3462_v15, 5  ;;  %v693_v17 = vrot.slane %v3507_v56, 5  ;;  %v657_v15 = vld [vmem:[%s3444_s20 + $0x8] sm:$0xe] }
  0x3a   : > { %3085 = vmatprep.subr.bf16.mxu0 %v3295_v54  ;;  %v358_v59 = vsel %vm3489_vm2, %v353_v43, %v357_v20  ;;  %v2626_v20 = vrot.slane %v2618_v10, 9  ;;  %v3306_v43 = vld [vmem:[%s4000_s1 + $0x88] sm:$0xff]   ;;  %v3309_v10 = vld [vmem:[%s4000_s1 + $0x190] sm:$0xff]   ;;  %v2502_v14 = vrot.slane %v657_v15, 9  ;;  %v660_v36 = vld [vmem:[%s3444_s20 + $0x20] sm:$0xe] }
  0x3b   : > { %v1157_v5 = vrot.slane %v1155_v29, 4  ;;  %v1368_v29 = vrot.slane %v3592_v26, 5  ;;  %v2492_v26 = vcombine.low %v3603_v46, %v3608_v50  ;;  %v3310_v46 = vld [vmem:[%s4000_s1 + $0x98] sm:$0xff]  }
  0x3c   : > { %2992 = vmatpush3.bf16.msra.mxu1 %v3296_v6  ;;  %v3300_v6 = vld [vmem:[%s4000_s1 + $0x38] sm:$0xff]   ;;  %v1353_v11 = vsel %vm3663_vm5, %v2626_v20, %v1352_v47 }
  0x3d   : > { %3086 = vmatpush3.bf16.msra.mxu0 %v3295_v54  ;;  %2993 = vmatprep.subr.bf16.mxu1 %v3298_v37  ;;  %v372_v54 = vsel %vm3489_vm2, %v367_v3, %v371_v40  ;;  %v1161_v23 = vor.u32 %v1160_v16, %v1157_v5  ;;  %v2649_v57 = vcombine.low %v1349_v32, %v1353_v11  ;;  %v656_v16 = vld [vmem:[%s3444_s20] sm:$0xe]  ;;  %v3311_v20 = vld [vmem:[%s4000_s1 + $0x198] sm:$0xff]  }
  0x3e   : > { %3087 = vmatprep.subr.bf16.mxu0 %v3297_v30  ;;  %v2480_v9 = vcombine.low %v358_v59, %v372_v54  ;;  %v2490_v40 = vcombine.low %v3499_v51, %v3504_v55  ;;  %v2491_v51 = vcombine.low %v3562_v62, %v3565_v63  ;;  %v685_v55 = vrot.slane %v3456_v13, 5  ;;  %v3307_v62 = vld [vmem:[%s4000_s1 + $0x188] sm:$0xff]   ;;  %v2622_v63 = vld [vmem:[%s3444_s20 + $0x30] sm:$0xe]  ;;  %v2624_v59 = vld [vmem:[%s3444_s20 + $0x40] sm:$0xe] }
  0x3f   : > { %v1162_v33 = vrot.slane %v1161_v23, 4  ;;  %v2621_v13 = vld [vmem:[%s3444_s20 + $0x28] sm:$0xe]  ;;  %v2630_v49 = vrot.slane %v2622_v63, 9  ;;  %v2632_v7 = vrot.slane %v2624_v59, 9  ;;  %v2501_v56 = vrot.slane %v656_v16, 9 }
  0x40   : > { %2994 = vmatpush3.bf16.msra.mxu1 %v3298_v37  ;;  %v2628_v37 = vrot.slane %v2620_v12, 9  ;;  %v2629_v48 = vrot.slane %v2621_v13, 9  ;;  %v697_v54 = vrot.slane %v3512_v60, 5  ;;  %v658_v23 = vld [vmem:[%s3444_s20 + $0x10] sm:$0xe]  ;;  %v3324_v63 = vld [vmem:[%s4000_s1 + $0x1c0] sm:$0xff]  }
  0x41   : > { %3088 = vmatpush3.bf16.msra.mxu0 %v3297_v30  ;;  %2978 = vmatmul.mubr.bf16.gmra.mrb[4].mxu1 %v2480_v9  ;;  %v1167_v31 = vsel %vm3489_vm2, %v1162_v33, %v1166_v1  ;;  %v1369_v4 = vsel %vm3663_vm5, %v2630_v49, %v1368_v29  ;;  %v690_v9 = vsel %vm3663_vm5, %v2502_v14, %v689_v34  ;;  %v659_v60 = vld [vmem:[%s3444_s20 + $0x18] sm:$0xe]  ;;  %v2503_v25 = vrot.slane %v658_v23, 9  ;;  %v3314_v33 = vld [vmem:[%s4000_s1 + $0xa8] sm:$0xff]   ;;  %v3811_v59 = vld [vmem:[%s3444_s20 + $0x1c] sm:$0x1] }
  0x42   : > { %3089 = vmatprep.subr.bf16.mxu0 %v3299_v58  ;;  %2995 = vmatprep.subr.bf16.mxu1 %v3300_v6  ;;  %v2608_v39 = vcombine.low %v1153_v21, %v1167_v31  ;;  %v1361_v30 = vsel %vm3663_vm5, %v2628_v37, %v1360_v22  ;;  %v1365_v3 = vsel %vm3663_vm5, %v2629_v48, %v1364_v45  ;;  %v3323_v32 = vld [vmem:[%s3444_s20 + $0x10] ss:$8 sps:$4 sm:$0xff]   ;;  %v661_v37 = vld [vmem:[%s3444_s20 + $0x28] sm:$0xe]  ;;  %v709_v45 = vrot.slane %v3611_v52, 5 }
  0x43   : > { %2997 = vmatprep.mubr.bf16.mxu1 %v2489_v19  ;;  %v2650_v47 = vcombine.low %v1357_v42, %v1361_v30  ;;  %v2651_v27 = vcombine.low %v1365_v3, %v1369_v4  ;;  %v686_v19 = vsel %vm3663_vm5, %v2501_v56, %v685_v55  ;;  %v694_v11 = vsel %vm3663_vm5, %v2503_v25, %v693_v17  ;;  %v3317_v31 = vld [vmem:[%s4000_s1 + $0xb0] sm:$0xff]   ;;  %v663_v55 = vld [vmem:[%s3444_s20 + $0x38] sm:$0xe]  ;;  %v3326_v52 = vld [vmem:[%s4000_s1 + $0xc8] sm:$0xff]  }
  0x44   : > { %2996 = vmatpush3.bf16.msra.mxu1 %v3300_v6  ;;  %3074 = vmatmul.mubr.bf16.gmra.mrb[4].mxu0 %v2608_v39  ;;  %v1377_v6 = vsel %vm3663_vm5, %v2632_v7, %v1376_v24  ;;  %v2525_v1 = vcombine.low %v686_v19, %v690_v9  ;;  %v3320_v39 = vld [vmem:[%s4000_s1 + $0xb8] sm:$0xff]   ;;  %v2506_v42 = vrot.slane %v661_v37, 9  ;;  %v705_v30 = vrot.slane %v3571_v2, 5  ;;  %v3325_v49 = vld [vmem:[%s3444_s20 + $0x20] ss:$8 sps:$4 sm:$0xff]   ;;  %v3329_v23 = vld [vmem:[%s4000_s1 + $0x1d0] sm:$0xff]  }
  0x45   : > { %3090 = vmatpush3.bf16.msra.mxu0 %v3299_v58  ;;  %3005 = vmatprep.subr.bf16.mxu1 %v3303_v35  ;;  %v2623_v58 = vld [vmem:[%s3444_s20 + $0x38] sm:$0xe]  ;;  %v2508_v13 = vrot.slane %v663_v55, 9  ;;  %v1743_v17 = vshll.u32 %v3811_v59, 16 }
  0x46   : > { %3091 = vmatprep.subr.bf16.mxu0 %v3301_v28  ;;  %3093 = vmatprep.mubr.bf16.mxu0 %v2649_v57  ;;  %v2631_v5 = vrot.slane %v2623_v58, 9  ;;  %v3315_v57 = vld [vmem:[%s4000_s1 + $0x1a8] sm:$0xff]   ;;  %v706_v2 = vsel %vm3663_vm5, %v2506_v42, %v705_v30  ;;  %v3321_v29 = vld [vmem:[%s4000_s1 + $0x1b8] sm:$0xff]   ;;  %v3333_v42 = vld [vmem:[%s4000_s1 + $0x1e0] sm:$0xff]  }
  0x47   : > { %v2699_v58 = vld [vmem:[%s3444_s20 + $0x18] sm:$0xf] }
  0x48   : > { %v1373_v50 = vsel %vm3663_vm5, %v2631_v5, %v1372_v53  ;;  %v2697_v53 = vld [vmem:[%s3444_s20 + $0x10] sm:$0xf]  ;;  %v1734_v7 = vshrl.u32 %v2699_v58, 16  ;;  %v1737_v34 = vshll.u32 %v2699_v58, 16  ;;  %v3869_v58 = vld [vmem:[%s3444_s20 + $0x3c] sm:$0x1] }
  0x49   : > { %3092 = vmatpush3.bf16.msra.mxu0 %v3301_v28  ;;  %2998 = vmatmul.mubr.bf16.vlgmr.msra.gmra.mrb[0].mxu1 %v2490_v40  ;;  %v2652_v22 = vcombine.low %v1373_v50, %v1377_v6  ;;  %v2504_v28 = vrot.slane %v659_v60, 9  ;;  %v2505_v40 = vrot.slane %v660_v36, 9  ;;  %v1720_v3 = vshrl.u32 %v2697_v53, 16  ;;  %v3327_v50 = vld [vmem:[%s4000_s1 + $0x1c8] sm:$0xff]   ;;  %v3337_v6 = vld [vmem:[%s3444_s20 + $0x30] ss:$8 sps:$4 sm:$0xff]  }
  0x4a   : > { %3101 = vmatprep.subr.bf16.mxu0 %v3304_v41  ;;  %3006 = vmatpush3.bf16.msra.mxu1 %v3303_v35  ;;  %v3313_v35 = vld [vmem:[%s4000_s1 + $0x1a0] sm:$0xff]   ;;  %v1723_v4 = vshll.u32 %v2697_v53, 16  ;;  %v1736_v15 = vrot.slane %v1734_v7, 4  ;;  %v1739_v56 = vrot.slane %v1737_v34, 5 }
  0x4b   : > { %3007 = vmatprep.subr.bf16.mxu1 %v3306_v43  ;;  %3001 = vmatprep.mubr.bf16.mxu1 %v2491_v51  ;;  %v698_v12 = vsel %vm3663_vm5, %v2504_v28, %v697_v54  ;;  %v662_v51 = vld [vmem:[%s3444_s20 + $0x30] sm:$0xe]  ;;  %v1722_v16 = vrot.slane %v1720_v3, 4  ;;  %v2701_v28 = vld [vmem:[%s3444_s20 + $0x20] sm:$0xf]  ;;  %v3340_v3 = vld [vmem:[%s4000_s1 + $0xf8] sm:$0xff]  }
  0x4c   : > { %3094 = vmatmul.mubr.bf16.vlgmr.msra.gmra.mrb[0].mxu0 %v2650_v47  ;;  %v2526_v21 = vcombine.low %v694_v11, %v698_v12  ;;  %v713_v47 = vrot.slane %v3620_v61, 5  ;;  %v3803_v61 = vld [vmem:[%s3444_s20 + $0x14] sm:$0x1]  ;;  %v1740_v19 = vor.u32 %v1739_v56, %v1736_v15  ;;  %v2703_v12 = vld [vmem:[%s3444_s20 + $0x28] sm:$0xf] }
  0x4d   : > { %3102 = vmatpush3.bf16.msra.mxu0 %v3304_v41  ;;  %3097 = vmatprep.mubr.bf16.mxu0 %v2651_v27  ;;  %v701_v41 = vrot.slane %v3568_v0, 5  ;;  %v1729_v5 = vshll.u32 %v3803_v61, 16  ;;  %v3328_v27 = vld [vmem:[%s4000_s1 + $0xd0] sm:$0xff]   ;;  %v1762_v36 = vshrl.u32 %v2703_v12, 16  ;;  %v1765_v37 = vshll.u32 %v2703_v12, 16 }
  0x4e   : > { %3008 = vmatpush3.bf16.msra.mxu1 %v3306_v43  ;;  %3103 = vmatprep.subr.bf16.mxu0 %v3307_v62  ;;  %v3318_v43 = vld [vmem:[%s4000_s1 + $0x1b0] sm:$0xff]   ;;  %v1741_v60 = vrot.slane %v1740_v19, 4  ;;  %v3876_v34 = vld [vmem:[%s3444_s20 + $0x44] sm:$0x1] }
  0x4f   : > { %3009 = vmatprep.subr.bf16.mxu1 %v3308_v44  ;;  %v702_v0 = vsel %vm3663_vm5, %v2505_v40, %v701_v41  ;;  %v1731_v54 = vrot.slane %v1729_v5, 5  ;;  %v3334_v40 = vld [vmem:[%s4000_s1 + $0xe8] sm:$0xff]   ;;  %v2707_v41 = vld [vmem:[%s3444_s20 + $0x38] sm:$0xf] }
  0x50   : > { %v2527_v48 = vcombine.low %v702_v0, %v706_v2  ;;  %v1793_v0 = vshll.u32 %v2707_v41, 16  ;;  %v3335_v2 = vld [vmem:[%s4000_s1 + $0x1e8] sm:$0xff]  }
  0x51   : > { %3002 = vmatmul.mubr.bf16.gmra.mrb[4].mxu1 %v2492_v26  ;;  %3104 = vmatpush3.bf16.msra.mxu0 %v3307_v62  ;;  %v2507_v62 = vrot.slane %v662_v51, 9  ;;  %v714_v26 = vsel %vm3663_vm5, %v2508_v13, %v713_v47  ;;  %v3336_v51 = vld [vmem:[%s4000_s1 + $0xf0] sm:$0xff]   ;;  %v1767_v13 = vrot.slane %v1765_v37, 5 }
  0x52   : > { %3010 = vmatpush3.bf16.msra.mxu1 %v3308_v44  ;;  %3105 = vmatprep.subr.bf16.mxu0 %v3309_v10  ;;  %v3322_v44 = vld [vmem:[%s4000_s1 + $0xc0] sm:$0xff]  }
  0x53   : > { %3011 = vmatprep.subr.bf16.mxu1 %v3310_v46  ;;  %3021 = vmatprep.mubr.bf16.mxu1 %v2525_v1  ;;  %v710_v24 = vsel %vm3663_vm5, %v2507_v62, %v709_v45  ;;  %v3339_v1 = vld [vmem:[%s3444_s20 + $0x40] ss:$8 sps:$4 sm:$0xff]   ;;  %v3861_v45 = vld [vmem:[%s3444_s20 + $0x2c] sm:$0x1]  ;;  %v1764_v62 = vrot.slane %v1762_v36, 4 }
  0x54   : > { %3098 = vmatmul.mubr.bf16.gmra.mrb[4].mxu0 %v2652_v22  ;;  %v3330_v22 = vld [vmem:[%s4000_s1 + $0xd8] sm:$0xff]   ;;  %v1771_v7 = vshll.u32 %v3861_v45, 16 }
  0x55   : > { %3106 = vmatpush3.bf16.msra.mxu0 %v3309_v10  ;;  %3117 = vmatprep.mubr.bf16.mxu0 %v3323_v32  ;;  %v2528_v10 = vcombine.low %v710_v24, %v714_v26  ;;  %v3331_v32 = vld [vmem:[%s4000_s1 + $0x1d8] sm:$0xff]   ;;  %v1795_v24 = vrot.slane %v1793_v0, 5  ;;  %v2711_v26 = vld [vmem:[%s3444_s20 + $0x48] sm:$0xf]  ;;  %v1768_v5 = vor.u32 %v1767_v13, %v1764_v62  ;;  %v2011_v13 = vrot.slane %v3803_v61, 5 }
  0x56   : > { %3012 = vmatpush3.bf16.msra.mxu1 %v3310_v46  ;;  %3107 = vmatprep.subr.bf16.mxu0 %v3311_v20  ;;  %v1725_v46 = vrot.slane %v1723_v4, 5 }
  0x57   : > { %3013 = vmatprep.subr.bf16.mxu1 %v3312_v18  ;;  %v1769_v19 = vrot.slane %v1768_v5, 4  ;;  %v3350_v5 = vld [vmem:[%s4000_s1 + $0x220] sm:$0xff]  }
  0x58   : > { %v1726_v14 = vor.u32 %v1725_v46, %v1722_v16  ;;  %v1818_v16 = vshrl.u32 %v2711_v26, 16  ;;  %v1821_v46 = vshll.u32 %v2711_v26, 16  ;;  %v3348_v26 = vld [vmem:[%s4000_s1 + $0x210] sm:$0xff]  }
  0x59   : > { %3108 = vmatpush3.bf16.msra.mxu0 %v3311_v20  ;;  %v1745_v20 = vrot.slane %v1743_v17, 5 }
  0x5a   : > { %3014 = vmatpush3.bf16.msra.mxu1 %v3312_v18  ;;  %3109 = vmatprep.subr.bf16.mxu0 %v3313_v35  ;;  %v3342_v18 = vld [vmem:[%s3444_s20 + $0x8] ss:$8 sps:$4 sm:$0xff]   ;;  %v1727_v9 = vrot.slane %v1726_v14, 4 }
  0x5b   : > { %3015 = vmatprep.subr.bf16.mxu1 %v3314_v33  ;;  %v1746_v11 = vsel %vm3489_vm2, %v1741_v60, %v1745_v20  ;;  %v1773_v20 = vrot.slane %v1771_v7, 5  ;;  %v3351_v7 = vld [vmem:[%s4000_s1 + $0x228] sm:$0xff]  }
  0x5c   : > { %v1732_v25 = vsel %vm3489_vm2, %v1727_v9, %v1731_v54  ;;  %v3341_v54 = vld [vmem:[%s4000_s1 + $0x1f8] sm:$0xff]  }
  0x5d   : > { %3110 = vmatpush3.bf16.msra.mxu0 %v3313_v35  ;;  %v3843_v35 = vld [vmem:[%s3444_s20 + $0x24] sm:$0x1]  ;;  %v3343_v9 = vld [vmem:[%s3444_s20 + $0x18] ss:$8 sps:$4 sm:$0xff]  }
  0x5e   : > { %3016 = vmatpush3.bf16.msra.mxu1 %v3314_v33  ;;  %3111 = vmatprep.subr.bf16.mxu0 %v3315_v57  ;;  %v2729_v33 = vcombine.low %v1732_v25, %v1746_v11  ;;  %v1757_v55 = vshll.u32 %v3843_v35, 16  ;;  %v1820_v25 = vrot.slane %v1818_v16, 4  ;;  %v2744_v16 = vld [vmem:[%s3444_s20 + $0x28] sm:$0xe] }
  0x5f   : > { %3017 = vmatprep.subr.bf16.mxu1 %v3317_v31 }
  0x60   : > { %v1759_v14 = vrot.slane %v1757_v55, 5 }
  0x61   : > { %3112 = vmatpush3.bf16.msra.mxu0 %v3315_v57  ;;  %v1751_v57 = vshll.u32 %v2701_v28, 16 }
  0x62   : > { %3018 = vmatpush3.bf16.msra.mxu1 %v3317_v31  ;;  %3113 = vmatprep.subr.bf16.mxu0 %v3318_v43  ;;  %v1748_v31 = vshrl.u32 %v2701_v28, 16  ;;  %v1823_v28 = vrot.slane %v1821_v46, 5  ;;  %v2745_v46 = vld [vmem:[%s3444_s20 + $0x30] sm:$0xe] }
  0x63   : > { %3019 = vmatprep.subr.bf16.mxu1 %v3320_v39  ;;  %v1753_v47 = vrot.slane %v1751_v57, 5 }
  0x65   : > { %3114 = vmatpush3.bf16.msra.mxu0 %v3318_v43 }
  0x66   : > { %3020 = vmatpush3.bf16.msra.mxu1 %v3320_v39  ;;  %3115 = vmatprep.subr.bf16.mxu0 %v3321_v29  ;;  %v2705_v39 = vld [vmem:[%s3444_s20 + $0x30] sm:$0xf] }
  0x67   : > { %3029 = vmatprep.subr.bf16.mxu1 %v3322_v44  ;;  %v1776_v30 = vshrl.u32 %v2705_v39, 16  ;;  %v1779_v43 = vshll.u32 %v2705_v39, 16  ;;  %v1774_v39 = vsel %vm3489_vm2, %v1769_v19, %v1773_v20  ;;  %v2031_v20 = vrot.slane %v3869_v58, 5 }
  0x69   : > { %3022 = vmatmul.mubr.bf16.vlgmr.msra.gmra.mrb[0].mxu1 %v2526_v21  ;;  %3116 = vmatpush3.bf16.msra.mxu0 %v3321_v29  ;;  %v3332_v21 = vld [vmem:[%s4000_s1 + $0xe0] sm:$0xff]   ;;  %v1750_v29 = vrot.slane %v1748_v31, 4 }
  0x6a   : > { %3030 = vmatpush3.bf16.msra.mxu1 %v3322_v44  ;;  %3025 = vmatprep.mubr.bf16.mxu1 %v2527_v48  ;;  %v1790_v44 = vshrl.u32 %v2707_v41, 16  ;;  %v1778_v48 = vrot.slane %v1776_v30, 4  ;;  %v3344_v31 = vld [vmem:[%s4000_s1 + $0x200] sm:$0xff]   ;;  %v1824_v41 = vor.u32 %v1823_v28, %v1820_v25  ;;  %v2742_v30 = vld [vmem:[%s3444_s20 + $0x18] sm:$0xe]  ;;  %v2035_v28 = vrot.slane %v3876_v34, 5 }
  0x6b   : > { %3031 = vmatprep.subr.bf16.mxu1 %v3326_v52  ;;  %3125 = vmatprep.subr.bf16.mxu0 %v3324_v63  ;;  %v1754_v4 = vor.u32 %v1753_v47, %v1750_v29  ;;  %v3345_v47 = vld [vmem:[%s4000_s1 + $0x208] sm:$0xff]  }
  0x6c   : > { %3118 = vmatmul.mubr.bf16.vlgmr.msra.gmra.mrb[0].mxu0 %v3325_v49  ;;  %v2709_v49 = vld [vmem:[%s3444_s20 + $0x40] sm:$0xf]  ;;  %v1792_v53 = vrot.slane %v1790_v44, 4 }
  0x6d   : > { %3126 = vmatpush3.bf16.msra.mxu0 %v3324_v63  ;;  %3121 = vmatprep.mubr.bf16.mxu0 %v3337_v6  ;;  %v3864_v63 = vld [vmem:[%s3444_s20 + $0x34] sm:$0x1]  ;;  %v1804_v17 = vshrl.u32 %v2709_v49, 16 }
  0x6e   : > { %3032 = vmatpush3.bf16.msra.mxu1 %v3326_v52  ;;  %3127 = vmatprep.subr.bf16.mxu0 %v3327_v50  ;;  %v1781_v52 = vrot.slane %v1779_v43, 5  ;;  %v1785_v15 = vshll.u32 %v3864_v63, 16  ;;  %v1796_v56 = vor.u32 %v1795_v24, %v1792_v53 }
  0x6f   : > { %3033 = vmatprep.subr.bf16.mxu1 %v3328_v27  ;;  %v1806_v60 = vrot.slane %v1804_v17, 4  ;;  %v3352_v17 = vld [vmem:[%s4000_s1 + $0x230] sm:$0xff]  }
  0x70   : > { %v1782_v6 = vor.u32 %v1781_v52, %v1778_v48  ;;  %v1787_v11 = vrot.slane %v1785_v15, 5  ;;  %v1797_v12 = vrot.slane %v1796_v56, 4  ;;  %v2750_v48 = vrot.slane %v2742_v30, 9 }
  0x71   : > { %3026 = vmatmul.mubr.bf16.gmra.mrb[4].mxu1 %v2528_v10  ;;  %3128 = vmatpush3.bf16.msra.mxu0 %v3327_v50  ;;  %v3338_v50 = vld [vmem:[%s4000_s1 + $0x1f0] sm:$0xff]   ;;  %v1799_v10 = vshll.u32 %v3869_v58, 16  ;;  %v2015_v52 = vrot.slane %v3811_v59, 5  ;;  %v2019_v15 = vrot.slane %v3843_v35, 5  ;;  %v2752_v56 = vrot.slane %v2744_v16, 9 }
  0x72   : > { %3034 = vmatpush3.bf16.msra.mxu1 %v3328_v27  ;;  %3045 = vmatprep.mubr.bf16.mxu1 %v3342_v18  ;;  %v1807_v27 = vshll.u32 %v2709_v49, 16  ;;  %v1755_v18 = vrot.slane %v1754_v4, 4  ;;  %v3347_v49 = vld [vmem:[%s3444_s20 + $0x38] ss:$8 sps:$4 sm:$0xff]  }
  0x73   : > { %3035 = vmatprep.subr.bf16.mxu1 %v3330_v22  ;;  %3129 = vmatprep.subr.bf16.mxu0 %v3329_v23  ;;  %v2016_v59 = vsel %vm3663_vm5, %v2750_v48, %v2015_v52 }
  0x74   : > { %3122 = vmatmul.mubr.bf16.gmra.mrb[4].mxu0 %v3339_v1  ;;  %v1809_v1 = vrot.slane %v1807_v27, 5  ;;  %v1760_v37 = vsel %vm3489_vm2, %v1755_v18, %v1759_v14  ;;  %v2743_v27 = vld [vmem:[%s3444_s20 + $0x20] sm:$0xe]  ;;  %v3353_v14 = vld [vmem:[%s4000_s1 + $0x238] sm:$0xff]   ;;  %v2027_v18 = vrot.slane %v3864_v63, 5 }
  0x75   : > { %3130 = vmatpush3.bf16.msra.mxu0 %v3329_v23  ;;  %3141 = vmatprep.mubr.bf16.mxu0 %v2729_v33  ;;  %v3889_v23 = vld [vmem:[%s3444_s20 + $0x4c] sm:$0x1]  ;;  %v3346_v33 = vld [vmem:[%s3444_s20 + $0x28] ss:$8 sps:$4 sm:$0xff]   ;;  %v2730_v55 = vcombine.low %v1760_v37, %v1774_v39  ;;  %v3361_v39 = vld [vmem:[%s4002_s3 + $0x38] sm:$0xff]  }
  0x76   : > { %3036 = vmatpush3.bf16.msra.mxu1 %v3330_v22  ;;  %3131 = vmatprep.subr.bf16.mxu0 %v3331_v32  ;;  %v1813_v22 = vshll.u32 %v3876_v34, 16  ;;  %v1827_v36 = vshll.u32 %v3889_v23, 16  ;;  %v3355_v34 = vld [vmem:[%s4002_s3 + $0x8] sm:$0xff]   ;;  %v3360_v37 = vld [vmem:[%s4002_s3 + $0x30] sm:$0xff]  }
  0x77   : > { %3037 = vmatprep.subr.bf16.mxu1 %v3332_v21 }
  0x78   : > { %v1815_v57 = vrot.slane %v1813_v22, 5  ;;  %v1829_v29 = vrot.slane %v1827_v36, 5  ;;  %v3359_v36 = vld [vmem:[%s4002_s3 + $0x28] sm:$0xff]  }
  0x79   : > { %3132 = vmatpush3.bf16.msra.mxu0 %v3331_v32  ;;  %v1783_v32 = vrot.slane %v1782_v6, 4  ;;  %v2751_v6 = vrot.slane %v2743_v27, 9 }
  0x7a   : > { %3038 = vmatpush3.bf16.msra.mxu1 %v3332_v21  ;;  %3133 = vmatprep.subr.bf16.mxu0 %v3333_v42  ;;  %v1801_v21 = vrot.slane %v1799_v10, 5  ;;  %v2023_v10 = vrot.slane %v3861_v45, 5 }
  0x7b   : > { %3039 = vmatprep.subr.bf16.mxu1 %v3334_v40  ;;  %v1788_v43 = vsel %vm3489_vm2, %v1783_v32, %v1787_v11  ;;  %v2020_v22 = vsel %vm3663_vm5, %v2751_v6, %v2019_v15  ;;  %v2039_v11 = vrot.slane %v3889_v23, 5  ;;  %v3356_v23 = vld [vmem:[%s4002_s3 + $0x10] sm:$0xff]  }
  0x7c   : > { %v2024_v35 = vsel %vm3663_vm5, %v2752_v56, %v2023_v10 }
  0x7d   : > { %3134 = vmatpush3.bf16.msra.mxu0 %v3333_v42  ;;  %v2741_v42 = vld [vmem:[%s3444_s20 + $0x10] sm:$0xe]  ;;  %v2774_v63 = vcombine.low %v2020_v22, %v2024_v35 }
  0x7e   : > { %3040 = vmatpush3.bf16.msra.mxu1 %v3334_v40  ;;  %3135 = vmatprep.subr.bf16.mxu0 %v3335_v2  ;;  %v1810_v40 = vor.u32 %v1809_v1, %v1806_v60  ;;  %v2749_v62 = vrot.slane %v2741_v42, 9  ;;  %v2748_v1 = vld [vmem:[%s3444_s20 + $0x48] sm:$0xe] }
  0x7f   : > { %3041 = vmatprep.subr.bf16.mxu1 %v3336_v51  ;;  %v2756_v32 = vrot.slane %v2748_v1, 9  ;;  %v2786_v1 = vld [vmem:[%s4003_s4] ss:$0 sm:$0xff] }
  0x80   : > { %v1811_v0 = vrot.slane %v1810_v40, 4  ;;  %v2012_v61 = vsel %vm3663_vm5, %v2749_v62, %v2011_v13 }
  0x81   : > { %3136 = vmatpush3.bf16.msra.mxu0 %v3335_v2  ;;  %v1825_v2 = vrot.slane %v1824_v41, 4  ;;  %v2773_v4 = vcombine.low %v2012_v61, %v2016_v59 }
  0x82   : > { %3042 = vmatpush3.bf16.msra.mxu1 %v3336_v51  ;;  %3137 = vmatprep.subr.bf16.mxu0 %v3338_v50  ;;  %v1802_v51 = vsel %vm3489_vm2, %v1797_v12, %v1801_v21  ;;  %v1816_v53 = vsel %vm3489_vm2, %v1811_v0, %v1815_v57  ;;  %v2040_v21 = vsel %vm3663_vm5, %v2756_v32, %v2039_v11  ;;  %v3358_v57 = vld [vmem:[%s4002_s3 + $0x20] sm:$0xff]  }
  0x83   : > { %3043 = vmatprep.subr.bf16.mxu1 %v3340_v3  ;;  %v2731_v44 = vcombine.low %v1788_v43, %v1802_v51  ;;  %v1830_v24 = vsel %vm3489_vm2, %v1825_v2, %v1829_v29  ;;  %v2785_v2 = vld [vmem:[%s4001_s2] ss:$0 sm:$0xff] }
  0x85   : > { %3138 = vmatpush3.bf16.msra.mxu0 %v3338_v50  ;;  %v2746_v50 = vld [vmem:[%s3444_s20 + $0x38] sm:$0xe] }
  0x86   : > { %3044 = vmatpush3.bf16.msra.mxu1 %v3340_v3  ;;  %3139 = vmatprep.subr.bf16.mxu0 %v3341_v54  ;;  %v2732_v3 = vcombine.low %v1816_v53, %v1830_v24  ;;  %v2754_v19 = vrot.slane %v2746_v50, 9 }
  0x88   : > { %v2032_v60 = vsel %vm3663_vm5, %v2754_v19, %v2031_v20 }
  0x89   : > { %3046 = vmatmul.mubr.bf16.vlgmr.msra.gmra.mrb[0].mxu1 %v3343_v9  ;;  %3140 = vmatpush3.bf16.msra.mxu0 %v3341_v54  ;;  %v2753_v54 = vrot.slane %v2745_v46, 9  ;;  %v2747_v9 = vld [vmem:[%s3444_s20 + $0x40] sm:$0xe]  ;;  %s224_s20 = scalar_lea.vmem %s4004_s5, %s2805_s7 }
  0x8a   : > { %3049 = vmatprep.mubr.bf16.mxu1 %v3346_v33  ;;  %3149 = vmatprep.subr.bf16.mxu0 %v3344_v31  ;;  %v2755_v25 = vrot.slane %v2747_v9, 9 }
  0x8b   : > { %v2028_v45 = vsel %vm3663_vm5, %v2753_v54, %v2027_v18 }
  0x8c   : > { %3142 = vmatmul.mubr.bf16.vlgmr.msra.gmra.mrb[0].mxu0 %v2730_v55  ;;  %v2775_v58 = vcombine.low %v2028_v45, %v2032_v60  ;;  %v2036_v12 = vsel %vm3663_vm5, %v2755_v25, %v2035_v28 }
  0x8d   : > { %3150 = vmatpush3.bf16.msra.mxu0 %v3344_v31  ;;  %3145 = vmatprep.mubr.bf16.mxu0 %v2731_v44  ;;  %v2776_v33 = vcombine.low %v2036_v12, %v2040_v21  ;;  %v3354_v31 = vld [vmem:[%s4002_s3] sm:$0xff]  }
  0x8e   : > { %3151 = vmatprep.subr.bf16.mxu0 %v3345_v47  ;;  %3173 = vmatprep.subr.bf16.mxu1 %v3354_v31 }
  0x8f   : > { %3174 = vmatpush3.bf16.msra.mxu1 %v3354_v31 }
  0x90   : > { %3175 = vmatprep.subr.bf16.mxu1 %v3355_v34 }
  0x91   : > { %3050 = vmatmul.mubr.bf16.gmra.mrb[4].mxu1 %v3347_v49  ;;  %3152 = vmatpush3.bf16.msra.mxu0 %v3345_v47 }
  0x92   : > { %3153 = vmatprep.subr.bf16.mxu0 %v3348_v26 }
  0x93   : > { %3176 = vmatpush3.bf16.msra.mxu1 %v3355_v34 }
  0x94   : > { %3146 = vmatmul.mubr.bf16.gmra.mrb[4].mxu0 %v2732_v3  ;;  %3177 = vmatprep.subr.bf16.mxu1 %v3356_v23 }
  0x95   : > { %3154 = vmatpush3.bf16.msra.mxu0 %v3348_v26  ;;  %3165 = vmatprep.mubr.bf16.mxu0 %v2773_v4 }
  0x96   : > { %3155 = vmatprep.subr.bf16.mxu0 %v3349_v38 }
  0x97   : > { %3178 = vmatpush3.bf16.msra.mxu1 %v3356_v23 }
  0x98   : > { %3179 = vmatprep.subr.bf16.mxu1 %v3357_v8 }
  0x99   : > { %3156 = vmatpush3.bf16.msra.mxu0 %v3349_v38 }
  0x9a   : > { %3157 = vmatprep.subr.bf16.mxu0 %v3350_v5 }
  0x9b   : > { %3180 = vmatpush3.bf16.msra.mxu1 %v3357_v8 }
  0x9c   : > { %3181 = vmatprep.subr.bf16.mxu1 %v3358_v57 }
  0x9d   : > { %3158 = vmatpush3.bf16.msra.mxu0 %v3350_v5 }
  0x9e   : > { %3159 = vmatprep.subr.bf16.mxu0 %v3351_v7 }
  0x9f   : > { %3182 = vmatpush3.bf16.msra.mxu1 %v3358_v57 }
  0xa0   : > { %3183 = vmatprep.subr.bf16.mxu1 %v3359_v36 }
  0xa1   : > { %3160 = vmatpush3.bf16.msra.mxu0 %v3351_v7 }
  0xa2   : > { %3161 = vmatprep.subr.bf16.mxu0 %v3352_v17 }
  0xa3   : > { %3184 = vmatpush3.bf16.msra.mxu1 %v3359_v36 }
  0xa4   : > { %3185 = vmatprep.subr.bf16.mxu1 %v3360_v37 }
  0xa5   : > { %3162 = vmatpush3.bf16.msra.mxu0 %v3352_v17 }
  0xa6   : > { %3163 = vmatprep.subr.bf16.mxu0 %v3353_v14 }
  0xa7   : > { %3186 = vmatpush3.bf16.msra.mxu1 %v3360_v37 }
  0xa8   : > { %3187 = vmatprep.subr.bf16.mxu1 %v3361_v39 }
  0xa9   : > { %3164 = vmatpush3.bf16.msra.mxu0 %v3353_v14 }
  0xab   : > { %3188 = vmatpush3.bf16.msra.mxu1 %v3361_v39 }
  0xac   : > { %3166 = vmatmul.mubr.bf16.vlgmr.msra.gmra.mrb[0].mxu0 %v2774_v63 }
  0xad   : > { %3169 = vmatprep.mubr.bf16.mxu0 %v2775_v58 }
  0xb4   : > { %3170 = vmatmul.mubr.bf16.gmra.mrb[4].mxu0 %v2776_v33 }
 0x15c   : > { %v3047_v40 = vpop.f32.mrb[0].mxu1 }
 0x15d   : > { %v1001_v41 = vpop.f32.mrb[1].mxu1 }
 0x15e   : > { %v3048_v42 = vpop.f32.mrb[2].mxu1 }
 0x15f   : > { %v1004_v30 = vpop.f32.mrb[3].mxu1 }
 0x164   : > { %v3051_v43 = vpop.f32.mrb[4].mxu1 }
 0x165   : > { %v1017_v51 = vpop.f32.mrb[5].mxu1 }
 0x166   : > { %v3052_v55 = vpop.f32.mrb[6].mxu1 }
 0x167   : > { %v1020_v44 = vpop.f32.mrb[7].mxu1 }
 0x17f   : > { %v3167_v0 = vpop.f32.mrb[0].mxu0 }
 0x180   : > { %v3197_v29 = vadd.f32 %v3167_v0, %v3047_v40  ;;  %v2156_v47 = vpop.f32.mrb[1].mxu0 }
 0x181   : > { %v3198_v62 = vadd.f32 %v2156_v47, %v1001_v41  ;;  %v3168_v13 = vpop.f32.mrb[2].mxu0 }
 0x182   : > { %v2204_v48 = vadd.f32 %v3197_v29, %v2785_v2  ;;  %v3199_v52 = vadd.f32 %v3168_v13, %v3048_v42  ;;  %v2159_v49 = vpop.f32.mrb[3].mxu0 }
 0x183   : > { %v2202_v53 = vadd.f32 %v3198_v62, %v2785_v2  ;;  %v3200_v24 = vadd.f32 %v2159_v49, %v1004_v30 }
 0x184   : > { %v2205_v26 = vadd.f32 %v3199_v52, %v2785_v2  ;;  %v2212_v59 = vmax.f32 %v2204_v48, 0.0 }
 0x185   : > { %v2203_v61 = vadd.f32 %v3200_v24, %v2785_v2  ;;  %v2210_v4 = vmax.f32 %v2202_v53, 0.0 }
 0x186   : > { %v2213_v3 = vmax.f32 %v2205_v26, 0.0 }
 0x187   : > { %v2211_v38 = vmax.f32 %v2203_v61, 0.0  ;;  %v3171_v5 = vpop.f32.mrb[4].mxu0 }
 0x188   : > { %v2219_v7 = vpack.c.bf16 %v2213_v3, %v2212_v59  ;;  %v3201_v17 = vadd.f32 %v3171_v5, %v3051_v43  ;;  %v2172_v27 = vpop.f32.mrb[5].mxu0 }
 0x189   : > { %v3202_v16 = vadd.f32 %v2172_v27, %v1017_v51  ;;  %v3172_v46 = vpop.f32.mrb[6].mxu0  ;;  %v2218_v50 = vpack.c.bf16 %v2211_v38, %v2210_v4 }
 0x18a   : > { %v2208_v6 = vadd.f32 %v3201_v17, %v2785_v2  ;;  %v3203_v15 = vadd.f32 %v3172_v46, %v3052_v55  ;;  %v2175_v56 = vpop.f32.mrb[7].mxu0 }
 0x18b   : > { %v2206_v10 = vadd.f32 %v3202_v16, %v2785_v2  ;;  %v3204_v14 = vadd.f32 %v2175_v56, %v1020_v44  ;;  %3189 = vmatprep.mubr.bf16.mxu1 %v2218_v50 }
 0x18c   : > { %v2209_v54 = vadd.f32 %v3203_v15, %v2785_v2  ;;  %3190 = vmatmul.mubr.bf16.vlgmr.msra.gmra.mrb[8].mxu1 %v2219_v7  ;;  %v2216_v19 = vmax.f32 %v2208_v6, 0.0 }
 0x18d   : > { %v2207_v18 = vadd.f32 %v3204_v14, %v2785_v2  ;;  %v2214_v22 = vmax.f32 %v2206_v10, 0.0 }
 0x18e   : > { %v2217_v20 = vmax.f32 %v2209_v54, 0.0 }
 0x18f   : > { %v2215_v35 = vmax.f32 %v2207_v18, 0.0 }
 0x190   : > { %v2221_v9 = vpack.c.bf16 %v2217_v20, %v2216_v19 }
 0x191   : > { %v2220_v45 = vpack.c.bf16 %v2215_v35, %v2214_v22 }
 0x193   : > { %3193 = vmatprep.mubr.bf16.mxu1 %v2220_v45 }
 0x194   : > { %3194 = vmatmul.mubr.bf16.gmra.mrb[12].mxu1 %v2221_v9 }
 0x25f   : > { %v3191_v60 = vpop.f32.mrb[8].mxu1 }
 0x260   : > { %v2327_v63 = vpop.f32.mrb[9].mxu1  ;;  %v2336_v58 = vadd.f32 %v3191_v60, %v2786_v1 }
 0x261   : > { %v3192_v25 = vpop.f32.mrb[10].mxu1  ;;  %v2328_v11 = vadd.f32 %v2786_v1, %v2327_v63 }
 0x262   : > { %v2339_v28 = vadd.f32 %v3192_v25, %v2786_v1  ;;  %v2330_v32 = vpop.f32.mrb[11].mxu1 }
 0x263   : > { %v2331_v12 = vadd.f32 %v2786_v1, %v2330_v32 }
 0x264   : > { %v2822_v21 = vpack.c.bf16 %v2339_v28, %v2336_v58 }
 0x265   : > { %v2817_v33 = vpack.c.bf16 %v2331_v12, %v2328_v11 }
 0x266   : > { %2834 = vst [vmem:[%s224_s20 + $0x8] sm:$0xff] %v2822_v21  }
 0x267   : > { %2818 = vst [vmem:[%s224_s20] sm:$0xff] %v2817_v33   ;;  %v3195_v31 = vpop.f32.mrb[12].mxu1 }
 0x268   : > { %v2343_v34 = vpop.f32.mrb[13].mxu1  ;;  %v2352_v8 = vadd.f32 %v3195_v31, %v2786_v1 }
 0x269   : > { %v3196_v23 = vpop.f32.mrb[14].mxu1  ;;  %v2344_v37 = vadd.f32 %v2786_v1, %v2343_v34 }
 0x26a   : > { %v2355_v57 = vadd.f32 %v3196_v23, %v2786_v1  ;;  %v2346_v36 = vpop.f32.mrb[15].mxu1 }
 0x26b   : > { %v2347_v39 = vadd.f32 %v2786_v1, %v2346_v36 }
 0x26c   : > { %v2832_v40 = vpack.c.bf16 %v2355_v57, %v2352_v8 }
 0x26d   : > { %v2827_v41 = vpack.c.bf16 %v2347_v39, %v2344_v37 }
 0x26e   : > { %2836 = vst [vmem:[%s224_s20 + $0x18] sm:$0xff] %v2832_v40  }
 0x26f   : > { %2835 = vst [vmem:[%s224_s20 + $0x10] sm:$0xff] %v2827_v41  }
 0x270 PF: > { %s15_s18 = sadd.s32 1, %s3368_s18  }
 0x271   : > { %p12_p4 = scmp.ge.s32.totalorder %s15_s18, 4  }
 0x273   :  { %14 = sbr.rel (!%p12_p4) target bundleno = 1 (0x1), region = 80 }

</bundles_post_ra>
